<compile_context>
chip_gen: v5e
topology: v5e:2x2
jax: 0.10.0
libtpu: 0.0.40
codegen_flags: <defaults>
</compile_context>

<pallas_src>
import jax
import jax.numpy as jnp
from jax.experimental import pallas as pl
from jax.experimental.pallas import tpu as pltpu

EPS = 1e-5


def bn_conv_kernel(x_ref, gamma_ref, beta_ref, w_ref, o_ref):
    # x_ref:     [Cin, M]      f32 activations (full block, resident across grid)
    # gamma_ref: [Cin, 1]      f32 BN scale
    # beta_ref:  [Cin, 1]      f32 BN shift
    # w_ref:     [tCout, Cin]  bf16 1x1-conv weight tile
    # o_ref:     [tCout, M]    f32 output tile
    x = x_ref[...]
    inv_m = jnp.float32(1.0 / x.shape[1])

    # --- BatchNorm2d (training mode: biased batch stats), single pass, f32 ---
    s1 = jnp.sum(x, axis=1, keepdims=True)                 # [Cin, 1]
    s2 = jnp.sum(x * x, axis=1, keepdims=True)             # [Cin, 1]
    mean = s1 * inv_m
    var = jnp.maximum(s2 * inv_m - mean * mean, 0.0)       # clamp tiny fp drift
    inv_std = jax.lax.rsqrt(var + EPS)
    scale = gamma_ref[...] * inv_std                       # fold gamma into scale
    shift = beta_ref[...] - mean * scale
    xn = x * scale + shift                                 # [Cin, M], f32

    # --- Conv2d 1x1 (no bias): MXU matmul, bf16 operands, f32 accumulation ---
    xn16 = xn.astype(jnp.bfloat16)
    acc = jnp.dot(w_ref[...], xn16, preferred_element_type=jnp.float32)
    o_ref[...] = acc.astype(o_ref.dtype)


def bn_conv2d_1x1(x_nchw, gamma, beta, w_oihw, cout_tiles=2):
    """x_nchw: [N, Cin, H, W]; w_oihw: [Cout, Cin, 1, 1] -> [N, Cout, H, W]."""
    N, Cin, H, W = x_nchw.shape
    Cout = w_oihw.shape[0]
    M = N * H * W

    # NCHW -> [Cin, M]: a free reshape for N == 1 (the module's case).
    if N == 1:
        x2d = x_nchw.reshape(Cin, M).astype(jnp.float32)
    else:
        x2d = jnp.transpose(x_nchw, (1, 0, 2, 3)).reshape(Cin, M).astype(jnp.float32)

    # Weight prep (reshape is free; bf16 cast would be hoisted / done once in a
    # real inference loop).
    w2d = w_oihw.reshape(Cout, Cin).astype(jnp.bfloat16)
    gamma2d = gamma.reshape(Cin, 1).astype(jnp.float32)
    beta2d = beta.reshape(Cin, 1).astype(jnp.float32)

    # Cout tiling: sublane dim only needs to be a multiple of 8 (no padding).
    if (cout_tiles < 1) or (Cout % cout_tiles != 0) or ((Cout // cout_tiles) % 8 != 0):
        cout_tiles = 1
    tc = Cout // cout_tiles

    out2d = pl.pallas_call(
        bn_conv_kernel,
        out_shape=jax.ShapeDtypeStruct((Cout, M), jnp.float32),
        grid=(cout_tiles,),
        in_specs=[
            pl.BlockSpec((Cin, M), lambda j: (0, 0)),   # x: same block every step
            pl.BlockSpec((Cin, 1), lambda j: (0, 0)),   # gamma
            pl.BlockSpec((Cin, 1), lambda j: (0, 0)),   # beta
            pl.BlockSpec((tc, Cin), lambda j: (j, 0)),  # weight tile over Cout
        ],
        out_specs=pl.BlockSpec((tc, M), lambda j: (j, 0)),
        compiler_params=pltpu.CompilerParams(
            dimension_semantics=("parallel",)),
    )(x2d, gamma2d, beta2d, w2d)

    # [Cout, M] -> NCHW (free reshape for N == 1).
    if N == 1:
        return out2d.reshape(1, Cout, H, W)
    return jnp.transpose(out2d.reshape(Cout, N, H, W), (1, 0, 2, 3))


if __name__ == "__main__":
    N, Cin, H, W = 1, 304, 7, 7
    Cout = 1824

    key = jax.random.PRNGKey(0)
    kx, kw = jax.random.split(key)

    x = jax.random.normal(kx, (N, Cin, H, W), dtype=jnp.float32)

    # Deterministic parameter init matching the module's __init__:
    # BatchNorm2d default affine init: gamma = 1, beta = 0.
    gamma = jnp.ones((Cin,), dtype=jnp.float32)
    beta = jnp.zeros((Cin,), dtype=jnp.float32)
    # Conv2d weight [Cout, Cin, 1, 1], kaiming-uniform-like scale.
    bound = (1.0 / Cin) ** 0.5
    w = jax.random.uniform(kw, (Cout, Cin, 1, 1), dtype=jnp.float32,
                           minval=-bound, maxval=bound)

    out = bn_conv2d_1x1(x, gamma, beta, w)
    out = jax.block_until_ready(out)
    assert out.shape == (N, Cout, H, W), out.shape

    # Pure-JAX f32 reference (BN training-mode batch stats + 1x1 conv); the
    # bf16 weight/activation feed of the MXU introduces ~1e-3 drift.
    mean = jnp.mean(x, axis=(0, 2, 3), keepdims=True)
    var = jnp.mean((x - mean) ** 2, axis=(0, 2, 3), keepdims=True)
    xn = (x - mean) * jax.lax.rsqrt(var + EPS) * gamma.reshape(1, Cin, 1, 1) \
         + beta.reshape(1, Cin, 1, 1)
    ref = jnp.einsum("nchw,oc->nohw", xn, w.reshape(Cout, Cin))
    max_err = float(jnp.max(jnp.abs(out - ref)))
    assert jnp.allclose(out, ref, rtol=5e-2, atol=5e-2), max_err

    print("KERNEL_OK")
</pallas_src>

<mosaic_0001>
module attributes {stable_mosaic.version = 11 : i64} {
  func.func @bn_conv_kernel(%arg0: i32, %arg1: memref<304x49xf32, #tpu.memory_space<vmem>>, %arg2: memref<304x1xf32, #tpu.memory_space<vmem>>, %arg3: memref<304x1xf32, #tpu.memory_space<vmem>>, %arg4: memref<912x304xbf16, #tpu.memory_space<vmem>>, %arg5: memref<912x49xf32, #tpu.memory_space<vmem>>) attributes {dimension_semantics = [#tpu.dimension_semantics<parallel>], iteration_bounds = array<i64: 2>, scalar_prefetch = 0 : i64, scratch_operands = 0 : i64, tpu.core_type = #tpu.core_type<tc>, window_params = [{pipeline_mode = #tpu.pipeline_mode<synchronous>, transform_indices = @transform_0, window_bounds = array<i64: 304, 49>}, {pipeline_mode = #tpu.pipeline_mode<synchronous>, transform_indices = @transform_1, window_bounds = array<i64: 304, 1>}, {pipeline_mode = #tpu.pipeline_mode<synchronous>, transform_indices = @transform_2, window_bounds = array<i64: 304, 1>}, {transform_indices = @transform_3, window_bounds = array<i64: 912, 304>}, {transform_indices = @transform_4, window_bounds = array<i64: 912, 49>}]} {
    %c0 = arith.constant 0 : index
    %c0_0 = arith.constant 0 : index
    %0 = vector.load %arg1[%c0, %c0_0] : memref<304x49xf32, #tpu.memory_space<vmem>>, vector<304x49xf32>
    %cst = arith.constant dense<0.000000e+00> : vector<304xf32>
    %1 = vector.multi_reduction <add>, %0, %cst [1] : vector<304x49xf32> to vector<304xf32>
    %2 = vector.shape_cast %1 : vector<304xf32> to vector<304x1xf32>
    %3 = arith.mulf %0, %0 : vector<304x49xf32>
    %cst_1 = arith.constant dense<0.000000e+00> : vector<304xf32>
    %4 = vector.multi_reduction <add>, %3, %cst_1 [1] : vector<304x49xf32> to vector<304xf32>
    %5 = vector.shape_cast %4 : vector<304xf32> to vector<304x1xf32>
    %cst_2 = arith.constant 0.0204081628 : f32
    %6 = vector.broadcast %cst_2 : f32 to vector<304x1xf32>
    %7 = arith.mulf %2, %6 : vector<304x1xf32>
    %cst_3 = arith.constant 0.0204081628 : f32
    %8 = vector.broadcast %cst_3 : f32 to vector<304x1xf32>
    %9 = arith.mulf %5, %8 : vector<304x1xf32>
    %10 = arith.mulf %7, %7 : vector<304x1xf32>
    %11 = arith.subf %9, %10 : vector<304x1xf32>
    %cst_4 = arith.constant 0.000000e+00 : f32
    %12 = vector.broadcast %cst_4 : f32 to vector<304x1xf32>
    %13 = arith.maximumf %11, %12 : vector<304x1xf32>
    %cst_5 = arith.constant 9.99999974E-6 : f32
    %14 = vector.broadcast %cst_5 : f32 to vector<304x1xf32>
    %15 = arith.addf %13, %14 : vector<304x1xf32>
    %16 = math.rsqrt %15 : vector<304x1xf32>
    %c0_6 = arith.constant 0 : index
    %c0_7 = arith.constant 0 : index
    %17 = vector.load %arg2[%c0_6, %c0_7] : memref<304x1xf32, #tpu.memory_space<vmem>>, vector<304x1xf32>
    %18 = arith.mulf %17, %16 : vector<304x1xf32>
    %c0_8 = arith.constant 0 : index
    %c0_9 = arith.constant 0 : index
    %19 = vector.load %arg3[%c0_8, %c0_9] : memref<304x1xf32, #tpu.memory_space<vmem>>, vector<304x1xf32>
    %20 = arith.mulf %7, %18 : vector<304x1xf32>
    %21 = arith.subf %19, %20 : vector<304x1xf32>
    %22 = vector.broadcast %18 : vector<304x1xf32> to vector<304x49xf32>
    %23 = arith.mulf %0, %22 : vector<304x49xf32>
    %24 = vector.broadcast %21 : vector<304x1xf32> to vector<304x49xf32>
    %25 = arith.addf %23, %24 : vector<304x49xf32>
    %26 = arith.truncf %25 : vector<304x49xf32> to vector<304x49xbf16>
    %c0_10 = arith.constant 0 : index
    %c0_11 = arith.constant 0 : index
    %27 = vector.load %arg4[%c0_10, %c0_11] : memref<912x304xbf16, #tpu.memory_space<vmem>>, vector<912x304xbf16>
    %cst_12 = arith.constant dense<0.000000e+00> : vector<912x49xf32>
    %28 = tpu.matmul %27, %26, %cst_12 {dimension_numbers = #tpu.dot_dimension_numbers<[1], [0], [0], [1], [0, 0, 1, 1], [], []>} : vector<912x304xbf16>, vector<304x49xbf16>, vector<912x49xf32> -> vector<912x49xf32>
    %c0_13 = arith.constant 0 : index
    %c0_14 = arith.constant 0 : index
    %29 = vector.load %arg5[%c0_13, %c0_14] : memref<912x49xf32, #tpu.memory_space<vmem>>, vector<912x49xf32>
    tpu.vector_store %arg5[%c0_13, %c0_14], %28 {strides = array<i32>} : memref<912x49xf32, #tpu.memory_space<vmem>>, vector<912x49xf32>,
    return
  }
  func.func @transform_0(%arg0: i32) -> (i32, i32) {
    %c0_i32 = arith.constant 0 : i32
    %c0_i32_0 = arith.constant 0 : i32
    %c0_i32_1 = arith.constant 0 : i32
    return %c0_i32, %c0_i32_0 : i32, i32
  }
  func.func @transform_1(%arg0: i32) -> (i32, i32) {
    %c0_i32 = arith.constant 0 : i32
    %c0_i32_0 = arith.constant 0 : i32
    %c0_i32_1 = arith.constant 0 : i32
    return %c0_i32, %c0_i32_0 : i32, i32
  }
  func.func @transform_2(%arg0: i32) -> (i32, i32) {
    %c0_i32 = arith.constant 0 : i32
    %c0_i32_0 = arith.constant 0 : i32
    %c0_i32_1 = arith.constant 0 : i32
    return %c0_i32, %c0_i32_0 : i32, i32
  }
  func.func @transform_3(%arg0: i32) -> (i32, i32) {
    %c0_i32 = arith.constant 0 : i32
    %c0_i32_0 = arith.constant 0 : i32
    return %arg0, %c0_i32 : i32, i32
  }
  func.func @transform_4(%arg0: i32) -> (i32, i32) {
    %c0_i32 = arith.constant 0 : i32
    %c0_i32_0 = arith.constant 0 : i32
    return %arg0, %c0_i32 : i32, i32
  }
}

</mosaic_0001>

<bundles_post_ra>
// kernel: tpu_custom_call.1
= control target key start
LH: loop header
LB: loop body
LE: loop exit
PB: predicated region body
PF: predicated region fallthrough
CT: control target
= control target key end

     0   :  { %s5191_s15 = smov 0   ;;  %s8038_s0 = inlined_call_operand.vmem [shape: f32[304,49], index: 0, kind: input, shape index: {}]   ;;  %s8039_s1 = inlined_call_operand.vmem [shape: f32[304,1], index: 1, kind: input, shape index: {}]   ;;  %s8040_s2 = inlined_call_operand.vmem [shape: f32[304,1], index: 2, kind: input, shape index: {}]   ;;  %s8041_s3 = inlined_call_operand.vmem [shape: bf16[1824,304], index: 3, kind: input, shape index: {}]   ;;  %s8042_s4 = inlined_call_operand.vmem [shape: f32[1824,49], index: 4, kind: output, shape index: {}]  }
   0x1 LB: > { %s4090_s16 = sadd.s32 4294967295, %s5163_s15   ;;  %p4094_p0 = scmp.ge.s32.totalorder %s5163_s15, 1  ;;  %s5163_s15 = sphi %s5191_s15, %s14_s15  }
   0x2   : > { %p164_p1 = scmp.lt.s32.totalorder %s5163_s15, 3 }
   0x4   : > { %p165_p2 = pnand %p4094_p0, %p164_p1 }
   0x6   : > { %168 = sbr.rel (%p165_p2) target bundleno = 1363 (0x553), region = 36 }
   0xb   : > { %v241_v0 = vld [vmem:[%s8038_s0 + $0x120] sm:$0xff]  ;;  %vm243_vm0 = vcmask 400384   ;;  %v235_v1 = vld [vmem:[%s8038_s0 + $0xf0] sm:$0xff]  ;;  %v242_v6 = vld [vmem:[%s8038_s0 + $0x128] sm:$0xff]  ;;  %s191_s29 = smul.u32 114, %s4090_s16 }
   0xc   : > { %v219_v2 = vld [vmem:[%s8038_s0 + $0x70] sm:$0xff]  ;;  %v352_v3 = vsel %vm243_vm0, %v241_v0, 0.0  ;;  %v334_v4 = vsel %vm243_vm0, %v235_v1, 0.0  ;;  %v236_v7 = vld [vmem:[%s8038_s0 + $0xf8] sm:$0xff]  ;;  %v355_v9 = vsel %vm243_vm0, %v242_v6, 0.0  ;;  %v388_v12 = vmul.f32 %v235_v1, %v235_v1  ;;  %v233_v24 = vld [vmem:[%s8038_s0 + $0xe0] sm:$0xff] }
   0xd   : > { %v286_v5 = vsel %vm243_vm0, %v219_v2, 0.0  ;;  %353 = vadd.xlane.f32.xlu2 %v352_v3  ;;  %335 = vadd.xlane.f32.xlu1 %v334_v4  ;;  %v220_v8 = vld [vmem:[%s8038_s0 + $0x78] sm:$0xff]  ;;  %v337_v10 = vsel %vm243_vm0, %v236_v7, 0.0  ;;  %v372_v14 = vmul.f32 %v219_v2, %v219_v2  ;;  %v395_v18 = vmul.f32 %v242_v6, %v242_v6  ;;  %v218_v25 = vld [vmem:[%s8038_s0 + $0x68] sm:$0xff]  ;;  %v217_v26 = vld [vmem:[%s8038_s0 + $0x60] sm:$0xff]  ;;  %p192_p3 = scmp.lt.s32.totalorder %s191_s29, 227 }
   0xe   : > { %287 = vadd.xlane.f32.xlu0 %v286_v5  ;;  %v289_v11 = vsel %vm243_vm0, %v220_v8, 0.0  ;;  %v373_v13 = vmul.f32 %v220_v8, %v220_v8  ;;  %v486_v15 = vsel %vm243_vm0, %v388_v12, 0.0  ;;  %v394_v19 = vmul.f32 %v241_v0, %v241_v0  ;;  %v240_v30 = vld [vmem:[%s8038_s0 + $0x118] sm:$0xff]  ;;  %v239_v31 = vld [vmem:[%s8038_s0 + $0x110] sm:$0xff]  ;;  %v234_v32 = vld [vmem:[%s8038_s0 + $0xe8] sm:$0xff] }
   0xf   : > { %v438_v17 = vsel %vm243_vm0, %v372_v14, 0.0  ;;  %v389_v20 = vmul.f32 %v236_v7, %v236_v7  ;;  %v507_v21 = vsel %vm243_vm0, %v395_v18, 0.0  ;;  %v328_v27 = vsel %vm243_vm0, %v233_v24, 0.0  ;;  %v231_v48 = vld [vmem:[%s8038_s0 + $0xd0] sm:$0xff]  ;;  %v216_v49 = vld [vmem:[%s8038_s0 + $0x58] sm:$0xff]  ;;  %v238_v54 = vld [vmem:[%s8038_s0 + $0x108] sm:$0xff] }
  0x10   : > { %v441_v16 = vsel %vm243_vm0, %v373_v13, 0.0  ;;  %v504_v22 = vsel %vm243_vm0, %v394_v19, 0.0  ;;  %v283_v28 = vsel %vm243_vm0, %v218_v25, 0.0  ;;  %v280_v29 = vsel %vm243_vm0, %v217_v26, 0.0  ;;  %v215_v50 = vld [vmem:[%s8038_s0 + $0x50] sm:$0xff]  ;;  %v237_v55 = vld [vmem:[%s8038_s0 + $0x100] sm:$0xff] }
  0x11   : > { %v489_v23 = vsel %vm243_vm0, %v389_v20, 0.0  ;;  %v349_v33 = vsel %vm243_vm0, %v240_v30, 0.0  ;;  %v346_v34 = vsel %vm243_vm0, %v239_v31, 0.0  ;;  %v331_v35 = vsel %vm243_vm0, %v234_v32, 0.0  ;;  %v232_v56 = vld [vmem:[%s8038_s0 + $0xd8] sm:$0xff]  ;;  %v229_v8 = vld [vmem:[%s8038_s0 + $0xc0] sm:$0xff] }
  0x12   : > { %v386_v36 = vmul.f32 %v233_v24, %v233_v24  ;;  %v371_v37 = vmul.f32 %v218_v25, %v218_v25  ;;  %v370_v38 = vmul.f32 %v217_v26, %v217_v26  ;;  %v393_v42 = vmul.f32 %v240_v30, %v240_v30  ;;  %v227_v26 = vld [vmem:[%s8038_s0 + $0xb0] sm:$0xff]  ;;  %v212_v30 = vld [vmem:[%s8038_s0 + $0x38] sm:$0xff]  ;;  %s8148_s29 = smov (!%p192_p3, %s191_s29), 227 }
  0x13   : > { %v392_v43 = vmul.f32 %v239_v31, %v239_v31  ;;  %v387_v44 = vmul.f32 %v234_v32, %v234_v32  ;;  %v322_v51 = vsel %vm243_vm0, %v231_v48, 0.0  ;;  %v277_v52 = vsel %vm243_vm0, %v216_v49, 0.0  ;;  %s5030_s11 = smul.u32 12, %s8148_s29  ;;  %s4096_s12 = sshll.u32 %s8148_s29, 3 }
  0x14   : > { %v480_v39 = vsel %vm243_vm0, %v386_v36, 0.0  ;;  %v435_v40 = vsel %vm243_vm0, %v371_v37, 0.0  ;;  %v432_v41 = vsel %vm243_vm0, %v370_v38, 0.0  ;;  %v501_v45 = vsel %vm243_vm0, %v393_v42, 0.0  ;;  %s7113_s18 = scalar_lea.vmem %s8042_s4, %s4096_s12 }
  0x15   : > { %356 = vadd.xlane.f32.xlu2 %v355_v9  ;;  %338 = vadd.xlane.f32.xlu1 %v337_v10  ;;  %v498_v46 = vsel %vm243_vm0, %v392_v43, 0.0  ;;  %v483_v47 = vsel %vm243_vm0, %v387_v44, 0.0  ;;  %v274_v53 = vsel %vm243_vm0, %v215_v50, 0.0  ;;  %v343_v57 = vsel %vm243_vm0, %v238_v54, 0.0  ;;  %v214_v9 = vld [vmem:[%s8038_s0 + $0x48] sm:$0xff]  ;;  %v213_v10 = vld [vmem:[%s8038_s0 + $0x40] sm:$0xff]  ;;  %s6882_s14 = scalar_lea.vmem %s8041_s3, %s5030_s11 }
  0x16   : > { %290 = vadd.xlane.f32.xlu0 %v289_v11  ;;  %v340_v58 = vsel %vm243_vm0, %v237_v55, 0.0  ;;  %v325_v59 = vsel %vm243_vm0, %v232_v56, 0.0  ;;  %v384_v60 = vmul.f32 %v231_v48, %v231_v48  ;;  %v369_v61 = vmul.f32 %v216_v49, %v216_v49 }
  0x17   : > { %v368_v62 = vmul.f32 %v215_v50, %v215_v50  ;;  %v391_v2 = vmul.f32 %v238_v54, %v238_v54  ;;  %v390_v3 = vmul.f32 %v237_v55, %v237_v55  ;;  %v385_v4 = vmul.f32 %v232_v56, %v232_v56  ;;  %v226_v54 = vld [vmem:[%s8038_s0 + $0xa8] sm:$0xff] }
  0x18   : > { %v474_v63 = vsel %vm243_vm0, %v384_v60, 0.0  ;;  %v429_v0 = vsel %vm243_vm0, %v369_v61, 0.0  ;;  %v316_v11 = vsel %vm243_vm0, %v229_v8, 0.0  ;;  %v271_v12 = vsel %vm243_vm0, %v214_v9, 0.0 }
  0x19   : > { %v426_v1 = vsel %vm243_vm0, %v368_v62, 0.0  ;;  %v495_v5 = vsel %vm243_vm0, %v391_v2, 0.0  ;;  %v492_v6 = vsel %vm243_vm0, %v390_v3, 0.0  ;;  %v477_v7 = vsel %vm243_vm0, %v385_v4, 0.0 }
  0x1a   : > { %v268_v13 = vsel %vm243_vm0, %v213_v10, 0.0  ;;  %v367_v14 = vmul.f32 %v214_v9, %v214_v9  ;;  %v310_v32 = vsel %vm243_vm0, %v227_v26, 0.0  ;;  %v380_v36 = vmul.f32 %v227_v26, %v227_v26  ;;  %v224_v26 = vld [vmem:[%s8038_s0 + $0x98] sm:$0xff] }
  0x1b   : > { %v307_v60 = vsel %vm243_vm0, %v226_v54, 0.0  ;;  %v379_v62 = vmul.f32 %v226_v54, %v226_v54 }
  0x1c   : > { %v462_v42 = vsel %vm243_vm0, %v380_v36, 0.0 }
  0x1d   : > { %487 = vadd.xlane.f32.xlu2 %v486_v15  ;;  %442 = vadd.xlane.f32.xlu1 %v441_v16  ;;  %v366_v15 = vmul.f32 %v213_v10, %v213_v10  ;;  %v230_v16 = vld [vmem:[%s8038_s0 + $0xc8] sm:$0xff]  ;;  %v459_v4 = vsel %vm243_vm0, %v379_v62, 0.0 }
  0x1e   : > { %439 = vadd.xlane.f32.xlu0 %v438_v17  ;;  %v423_v17 = vsel %vm243_vm0, %v367_v14, 0.0  ;;  %v319_v19 = vsel %vm243_vm0, %v230_v16, 0.0  ;;  %v383_v20 = vmul.f32 %v230_v16, %v230_v16 }
  0x1f   : > { %v420_v18 = vsel %vm243_vm0, %v366_v15, 0.0 }
  0x25   : > { %508 = vadd.xlane.f32.xlu2 %v507_v21  ;;  %505 = vadd.xlane.f32.xlu1 %v504_v22  ;;  %v382_v21 = vmul.f32 %v229_v8, %v229_v8  ;;  %v211_v22 = vld [vmem:[%s8038_s0 + $0x30] sm:$0xff]  ;;  %v208_v8 = vld [vmem:[%s8038_s0 + $0x18] sm:$0xff] }
  0x26   : > { %490 = vadd.xlane.f32.xlu0 %v489_v23  ;;  %v471_v23 = vsel %vm243_vm0, %v383_v20, 0.0  ;;  %v262_v24 = vsel %vm243_vm0, %v211_v22, 0.0  ;;  %v364_v37 = vmul.f32 %v211_v22, %v211_v22  ;;  %v253_v14 = vsel %vm243_vm0, %v208_v8, 0.0 }
  0x27   : > { %v468_v25 = vsel %vm243_vm0, %v382_v21, 0.0 }
  0x28   : > { %v414_v43 = vsel %vm243_vm0, %v364_v37, 0.0 }
  0x2d   : > { %329 = vadd.xlane.f32.xlu2 %v328_v27  ;;  %284 = vadd.xlane.f32.xlu1 %v283_v28  ;;  %v228_v27 = vld [vmem:[%s8038_s0 + $0xb8] sm:$0xff] }
  0x2e   : > { %281 = vadd.xlane.f32.xlu0 %v280_v29  ;;  %v381_v44 = vmul.f32 %v228_v27, %v228_v27 }
  0x35   : > { %350 = vadd.xlane.f32.xlu2 %v349_v33  ;;  %347 = vadd.xlane.f32.xlu1 %v346_v34  ;;  %v313_v33 = vsel %vm243_vm0, %v228_v27, 0.0  ;;  %v265_v34 = vsel %vm243_vm0, %v212_v30, 0.0 }
  0x36   : > { %332 = vadd.xlane.f32.xlu0 %v331_v35  ;;  %v365_v35 = vmul.f32 %v212_v30, %v212_v30 }
  0x3d   : > { %481 = vadd.xlane.f32.xlu2 %v480_v39  ;;  %436 = vadd.xlane.f32.xlu1 %v435_v40 }
  0x3e   : > { %433 = vadd.xlane.f32.xlu0 %v432_v41  ;;  %v417_v41 = vsel %vm243_vm0, %v365_v35, 0.0 }
  0x45   : > { %502 = vadd.xlane.f32.xlu2 %v501_v45  ;;  %499 = vadd.xlane.f32.xlu1 %v498_v46  ;;  %v210_v45 = vld [vmem:[%s8038_s0 + $0x28] sm:$0xff]  ;;  %v209_v46 = vld [vmem:[%s8038_s0 + $0x20] sm:$0xff] }
  0x46   : > { %484 = vadd.xlane.f32.xlu0 %v483_v47  ;;  %v259_v50 = vsel %vm243_vm0, %v210_v45, 0.0 }
  0x4d   : > { %323 = vadd.xlane.f32.xlu2 %v322_v51  ;;  %278 = vadd.xlane.f32.xlu1 %v277_v52  ;;  %v256_v51 = vsel %vm243_vm0, %v209_v46, 0.0  ;;  %v465_v52 = vsel %vm243_vm0, %v381_v44, 0.0 }
  0x4e   : > { %275 = vadd.xlane.f32.xlu0 %v274_v53  ;;  %v362_v53 = vmul.f32 %v209_v46, %v209_v46 }
  0x55   : > { %344 = vadd.xlane.f32.xlu2 %v343_v57  ;;  %341 = vadd.xlane.f32.xlu1 %v340_v58  ;;  %v225_v57 = vld [vmem:[%s8038_s0 + $0xa0] sm:$0xff] }
  0x56   : > { %326 = vadd.xlane.f32.xlu0 %v325_v59  ;;  %v408_v59 = vsel %vm243_vm0, %v362_v53, 0.0  ;;  %v304_v61 = vsel %vm243_vm0, %v225_v57, 0.0 }
  0x5d   : > { %475 = vadd.xlane.f32.xlu2 %v474_v63  ;;  %430 = vadd.xlane.f32.xlu1 %v429_v0  ;;  %v378_v63 = vmul.f32 %v225_v57, %v225_v57  ;;  %v363_v0 = vmul.f32 %v210_v45, %v210_v45 }
  0x5e   : > { %427 = vadd.xlane.f32.xlu0 %v426_v1 }
  0x65   : > { %496 = vadd.xlane.f32.xlu2 %v495_v5  ;;  %493 = vadd.xlane.f32.xlu1 %v492_v6  ;;  %v456_v5 = vsel %vm243_vm0, %v378_v63, 0.0  ;;  %v411_v6 = vsel %vm243_vm0, %v363_v0, 0.0 }
  0x66   : > { %478 = vadd.xlane.f32.xlu0 %v477_v7  ;;  %v223_v7 = vld [vmem:[%s8038_s0 + $0x90] sm:$0xff] }
  0x6d   : > { %317 = vadd.xlane.f32.xlu2 %v316_v11  ;;  %272 = vadd.xlane.f32.xlu1 %v271_v12  ;;  %v207_v11 = vld [vmem:[%s8038_s0 + $0x10] sm:$0xff] }
  0x6e   : > { %269 = vadd.xlane.f32.xlu0 %v268_v13  ;;  %v298_v13 = vsel %vm243_vm0, %v223_v7, 0.0  ;;  %v250_v16 = vsel %vm243_vm0, %v207_v11, 0.0 }
  0x75   : > { %424 = vadd.xlane.f32.xlu2 %v423_v17  ;;  %421 = vadd.xlane.f32.xlu1 %v420_v18  ;;  %v361_v18 = vmul.f32 %v208_v8, %v208_v8 }
  0x76   : > { %320 = vadd.xlane.f32.xlu0 %v319_v19  ;;  %v360_v19 = vmul.f32 %v207_v11, %v207_v11 }
  0x7d   : > { %472 = vadd.xlane.f32.xlu1 %v471_v23  ;;  %263 = vadd.xlane.f32.xlu2 %v262_v24 }
  0x7e   : > { %469 = vadd.xlane.f32.xlu0 %v468_v25 }
  0x80   : > { %v5319_v28 = vpop.xlane.xlu2 %353  ;;  %v5321_v29 = vpop.xlane.xlu1 %335 }
  0x81   : > { %v5326_v31 = vpop.xlane.xlu0 %287  ;;  %v5402_v27 = vmul.f32 0.020408163, %v5321_v29  ;;  %v5420_v45 = vmul.f32 0.020408163, %v5319_v28 }
  0x82   : > { %v5392_v21 = vmul.f32 0.020408163, %v5326_v31 }
  0x83   : > { %v622_v62 = vmul.f32 %v5420_v45, %v5420_v45 }
  0x84   : > { %v600_v29 = vmul.f32 %v5392_v21, %v5392_v21 }
  0x85   : > { %311 = vadd.xlane.f32.xlu1 %v310_v32  ;;  %314 = vadd.xlane.f32.xlu2 %v313_v33  ;;  %v405_v33 = vsel %vm243_vm0, %v361_v18, 0.0  ;;  %v221_v18 = vld [vmem:[%s8038_s0 + $0x80] sm:$0xff] }
  0x86   : > { %266 = vadd.xlane.f32.xlu0 %v265_v34  ;;  %v402_v34 = vsel %vm243_vm0, %v360_v19, 0.0  ;;  %v5461_v19 = vld [vmem:[%s8038_s0 + $0x88] sm:$0xff] }
  0x88   : > { %v5331_v38 = vpop.xlane.xlu2 %356  ;;  %v5333_v39 = vpop.xlane.xlu1 %338 }
  0x89   : > { %v291_v40 = vpop.xlane.xlu0 %290  ;;  %v5407_v31 = vmul.f32 0.020408163, %v5333_v39  ;;  %v616_v39 = vmul.f32 %v5402_v27, %v5402_v27 }
  0x8a   : > { %v5387_v17 = vmul.f32 0.020408163, %v291_v40  ;;  %v301_v40 = vsel %vm243_vm0, %v224_v26, 0.0 }
  0x8b   : > { %v617_v46 = vmul.f32 %v5407_v31, %v5407_v31 }
  0x8c   : > { %v601_v22 = vmul.f32 %v5387_v17, %v5387_v17 }
  0x8d   : > { %418 = vadd.xlane.f32.xlu1 %v417_v41  ;;  %463 = vadd.xlane.f32.xlu2 %v462_v42 }
  0x8e   : > { %415 = vadd.xlane.f32.xlu0 %v414_v43 }
  0x90   : > { %v488_v47 = vpop.xlane.xlu2 %487  ;;  %v443_v48 = vpop.xlane.xlu1 %442 }
  0x91   : > { %v5344_v49 = vpop.xlane.xlu0 %439  ;;  %v563_v23 = vmul.f32 0.020408163, %v443_v48  ;;  %v578_v35 = vmul.f32 0.020408163, %v488_v47  ;;  %v377_v47 = vmul.f32 %v224_v26, %v224_v26 }
  0x92   : > { %v562_v42 = vmul.f32 0.020408163, %v5344_v49 }
  0x93   : > { %v639_v41 = vsub.f32 %v563_v23, %v601_v22  ;;  %v654_v48 = vsub.f32 %v578_v35, %v616_v39  ;;  %v453_v63 = vsel %vm243_vm0, %v377_v47, 0.0 }
  0x94   : > { %v638_v54 = vsub.f32 %v562_v42, %v600_v29 }
  0x95   : > { %260 = vadd.xlane.f32.xlu2 %v259_v50  ;;  %257 = vadd.xlane.f32.xlu1 %v256_v51  ;;  %v376_v51 = vmul.f32 %v223_v7, %v223_v7  ;;  %v677_v53 = vmax.f32 %v639_v41, 0.0 }
  0x96   : > { %466 = vadd.xlane.f32.xlu0 %v465_v52  ;;  %v205_v52 = vld [vmem:[%s8038_s0] sm:$0xff]  ;;  %v676_v7 = vmax.f32 %v638_v54, 0.0 }
  0x97   : > { %v244_v0 = vsel %vm243_vm0, %v205_v52, 0.0 }
  0x98   : > { %v5352_v55 = vpop.xlane.xlu2 %508  ;;  %v5354_v56 = vpop.xlane.xlu1 %505 }
  0x99   : > { %v491_v58 = vpop.xlane.xlu0 %490  ;;  %v585_v22 = vmul.f32 0.020408163, %v5352_v55  ;;  %v292_v55 = vsel %vm243_vm0, %v221_v18, 0.0 }
  0x9a   : > { %v579_v43 = vmul.f32 0.020408163, %v491_v58  ;;  %v584_v58 = vmul.f32 0.020408163, %v5354_v56  ;;  %v450_v56 = vsel %vm243_vm0, %v376_v51, 0.0 }
  0x9c   : > { %v660_v8 = vsub.f32 %v584_v58, %v622_v62 }
  0x9d   : > { %409 = vadd.xlane.f32.xlu2 %v408_v59  ;;  %308 = vadd.xlane.f32.xlu1 %v307_v60  ;;  %v655_v59 = vsub.f32 %v579_v43, %v617_v46 }
  0x9e   : > { %305 = vadd.xlane.f32.xlu0 %v304_v61 }
  0xa0   : > { %v330_v1 = vpop.xlane.xlu2 %329  ;;  %v5362_v2 = vpop.xlane.xlu1 %284 }
  0xa1   : > { %v5364_v3 = vpop.xlane.xlu0 %281  ;;  %v5384_v15 = vmul.f32 0.020408163, %v330_v1  ;;  %v5442_v1 = vmul.f32 0.020408163, %v5331_v38 }
  0xa2   : > { %v5485_v29 = vmul.f32 0.020408163, %v5364_v3 }
  0xa3   : > { %v614_v20 = vmul.f32 %v5384_v15, %v5384_v15 }
  0xa5   : > { %460 = vadd.xlane.f32.xlu2 %v459_v4  ;;  %457 = vadd.xlane.f32.xlu1 %v456_v5  ;;  %v692_v4 = vmax.f32 %v654_v48, 0.0  ;;  %v374_v48 = vmul.f32 %v221_v18, %v221_v18 }
  0xa6   : > { %412 = vadd.xlane.f32.xlu0 %v411_v6  ;;  %v5445_v6 = vadd.f32 1e-05, %v677_v53  ;;  %v358_v53 = vmul.f32 %v205_v52, %v205_v52 }
  0xa7   : > { %v5451_v38 = vadd.f32 1e-05, %v692_v4 }
  0xa8   : > { %v351_v9 = vpop.xlane.xlu2 %350  ;;  %v5375_v10 = vpop.xlane.xlu1 %347  ;;  %vm894_vm8 = vweird.f32 %v5445_v6 }
  0xa9   : > { %v5380_v12 = vpop.xlane.xlu0 %332  ;;  %v5411_v36 = vmul.f32 0.020408163, %v351_v9  ;;  %v693_v9 = vmax.f32 %v655_v59, 0.0  ;;  %vm1044_vm7 = vweird.f32 %v5451_v38 }
  0xaa   : > { %v5515_v4 = vmul.f32 0.020408163, %v5380_v12  ;;  %v1146_v12 = vld [vmem:[%s8039_s1 + $0xe0] sm:$0xff] }
  0xab   : > { %v621_v50 = vmul.f32 %v5411_v36, %v5411_v36 }
  0xad   : > { %299 = vadd.xlane.f32.xlu2 %v298_v13  ;;  %254 = vadd.xlane.f32.xlu1 %v253_v14  ;;  %v623_v14 = vmul.f32 %v5442_v1, %v5442_v1 }
  0xae   : > { %251 = vadd.xlane.f32.xlu0 %v250_v16 }
  0xaf   : > { %v661_v42 = vsub.f32 %v585_v22, %v623_v14  ;;  %v396_v14 = vsel %vm243_vm0, %v358_v53, 0.0 }
  0xb0   : > { %v482_v24 = vpop.xlane.xlu2 %481  ;;  %v5396_v25 = vpop.xlane.xlu1 %436 }
  0xb1   : > { %v576_v30 = vmul.f32 0.020408163, %v482_v24  ;;  %v5404_v32 = vpop.xlane.xlu0 %433  ;;  %v699_v54 = vmax.f32 %v661_v42, 0.0 }
  0xb2   : > { %v560_v51 = vmul.f32 0.020408163, %v5404_v32 }
  0xb3   : > { %v652_v37 = vsub.f32 %v576_v30, %v614_v20  ;;  %v5464_v20 = vadd.f32 1e-05, %v676_v7  ;;  %v206_v30 = vld [vmem:[%s8038_s0 + $0x8] sm:$0xff]  ;;  %v444_v7 = vsel %vm243_vm0, %v374_v48, 0.0 }
  0xb4   : > { %v247_v41 = vsel %vm243_vm0, %v206_v30, 0.0  ;;  %v359_v47 = vmul.f32 %v206_v30, %v206_v30 }
  0xb5   : > { %v690_v44 = vmax.f32 %v652_v37, 0.0  ;;  %406 = vadd.xlane.f32.xlu2 %v405_v33  ;;  %403 = vadd.xlane.f32.xlu1 %v402_v34  ;;  %v698_v33 = vmax.f32 %v660_v8, 0.0  ;;  %v5474_v34 = vadd.f32 1e-05, %v693_v9  ;;  %vm884_vm10 = vweird.f32 %v5464_v20 }
  0xb6   : > { %302 = vadd.xlane.f32.xlu0 %v301_v40  ;;  %v295_v40 = vsel %vm243_vm0, %v5461_v19, 0.0 }
  0xb7   : > { %v5426_v49 = vadd.f32 1e-05, %v690_v44  ;;  %v5489_v43 = vadd.f32 1e-05, %v698_v33  ;;  %vm1054_vm12 = vweird.f32 %v5474_v34 }
  0xb8   : > { %v503_v28 = vpop.xlane.xlu2 %502  ;;  %v5431_v57 = vpop.xlane.xlu1 %499 }
  0xb9   : > { %5043 = vrsqrt.f32 %v5426_v49  ;;  %v583_v60 = vmul.f32 0.020408163, %v503_v28  ;;  %v5435_v61 = vpop.xlane.xlu0 %484  ;;  %vm1024_vm2 = vweird.f32 %v5426_v49 }
  0xba   : > { %5045 = vrsqrt.f32 %v5445_v6 }
  0xbb   : > { %v659_v5 = vsub.f32 %v583_v60, %v621_v50  ;;  %v598_v50 = vmul.f32 %v5485_v29, %v5485_v29  ;;  %v5165_v60 = vmov 0  }
  0xbc   : > { %5041 = vset.pattern.permute.xlu2 %v5165_v60  ;;  %5040 = vset.pattern.permute.xlu1 %v5165_v60 }
  0xbd   : > { %v697_v11 = vmax.f32 %v659_v5, 0.0  ;;  %454 = vadd.xlane.f32.xlu1 %v453_v63  ;;  %245 = vadd.xlane.f32.xlu2 %v244_v0  ;;  %v636_v9 = vsub.f32 %v560_v51, %v598_v50  ;;  %v1153_v51 = vld [vmem:[%s8039_s1 + $0x118] sm:$0xff] }
  0xbe   : > { %451 = vadd.xlane.f32.xlu0 %v450_v56  ;;  %v399_v56 = vsel %vm243_vm0, %v359_v47, 0.0 }
  0xbf   : > { %v5447_v13 = vpop.eup %5043  ;;  %v5453_v16 = vadd.f32 1e-05, %v697_v11  ;;  %5042 = vset.pattern.permute.xlu0 %v5165_v60  ;;  %v674_v42 = vmax.f32 %v636_v9, 0.0 }
  0xc0   : > { %v1019_v23 = vmul.f32 %v5447_v13, %v5426_v49  ;;  %v324_v24 = vpop.xlane.xlu2 %323  ;;  %v5469_v26 = vpop.xlane.xlu1 %278  ;;  %vm1025_vm1 = vweird.f32 %v5447_v13  ;;  %v5534_v49 = vadd.f32 1e-05, %v699_v54 }
  0xc1   : > { %5047 = vrsqrt.f32 %v5453_v16  ;;  %v5477_v35 = vpop.xlane.xlu0 %275  ;;  %v5492_v44 = vpop.eup %5045  ;;  %v5523_v11 = vmul.f32 0.020408163, %v324_v24  ;;  %vm1026_vm3 = vmor %vm1024_vm2, %vm1025_vm1  ;;  %vm1094_vm5 = vweird.f32 %v5453_v16  ;;  %v5578_v9 = vadd.f32 1e-05, %v674_v42 }
  0xc2   : > { %v1020_v37 = vmul.f32 %v5447_v13, %v1019_v23  ;;  %5049 = vrsqrt.f32 %v5451_v38  ;;  %v889_v63 = vmul.f32 %v5492_v44, %v5445_v6  ;;  %vm895_vm9 = vweird.f32 %v5492_v44 }
  0xc3   : > { %5051 = vrsqrt.f32 %v5464_v20  ;;  %vm5625_vm13 = vmor %vm894_vm8, %vm895_vm9  ;;  %vm1114_vm9 = vweird.f32 %v5534_v49 }
  0xc4   : > { %v1021_v39 = vmul.f32 0.5, %v1020_v37  ;;  %5053 = vrsqrt.f32 %v5474_v34  ;;  %v890_v23 = vmul.f32 %v5492_v44, %v889_v63 }
  0xc5   : > { %293 = vadd.xlane.f32.xlu1 %v292_v55  ;;  %296 = vadd.xlane.f32.xlu2 %v295_v40  ;;  %5055 = vrsqrt.f32 %v5489_v43 }
  0xc6   : > { %v1022_v46 = vsub.f32 1.5, %v1021_v39  ;;  %248 = vadd.xlane.f32.xlu0 %v247_v41  ;;  %v615_v41 = vmul.f32 %v5515_v4, %v5515_v4  ;;  %v612_v39 = vmul.f32 %v5523_v11, %v5523_v11  ;;  %5057 = vrsqrt.f32 %v5534_v49 }
  0xc7   : > { %v5494_v3 = vpop.eup %5047  ;;  %5059 = vrsqrt.f32 %v5578_v9 }
  0xc8   : > { %v1089_v28 = vmul.f32 %v5494_v3, %v5453_v16  ;;  %v345_v58 = vpop.xlane.xlu2 %344  ;;  %v5501_v59 = vpop.xlane.xlu1 %341  ;;  %v1023_v32 = vmul.f32 %v5447_v13, %v1022_v46  ;;  %vm1095_vm4 = vweird.f32 %v5494_v3  ;;  %v577_v46 = vmul.f32 0.020408163, %v5435_v61 }
  0xc9   : > { %v5503_v62 = vpop.eup %5049  ;;  %v5508_v0 = vpop.xlane.xlu0 %326  ;;  %vm1096_vm6 = vmor %vm1094_vm5, %vm1095_vm4  ;;  %vm1104_vm5 = vweird.f32 %v5489_v43 }
  0xca   : > { %v5512_v52 = vpop.eup %5051  ;;  %v1090_v5 = vmul.f32 %v5494_v3, %v1089_v28  ;;  %v1039_v18 = vmul.f32 %v5503_v62, %v5451_v38  ;;  %v1027_v24 = vsel %vm1026_vm3, %v5447_v13, %v1023_v32  ;;  %v375_v13 = vmul.f32 %v5461_v19, %v5461_v19 }
  0xcb   : > { %v5520_v8 = vpop.eup %5053  ;;  %v879_v30 = vmul.f32 %v5512_v52, %v5464_v20  ;;  %v5539_v55 = vmul.f32 %v1146_v12, %v1027_v24  ;;  %v891_v28 = vmul.f32 0.5, %v890_v23  ;;  %vm885_vm11 = vweird.f32 %v5512_v52 }
  0xcc   : > { %v1091_v22 = vmul.f32 0.5, %v1090_v5  ;;  %v1049_v33 = vmul.f32 %v5520_v8, %v5474_v34  ;;  %v5542_v40 = vpop.eup %5055  ;;  %v1040_v61 = vmul.f32 %v5503_v62, %v1039_v18  ;;  %v447_v5 = vsel %vm243_vm0, %v375_v13, 0.0  ;;  %vm5652_vm15 = vmor %vm884_vm10, %vm885_vm11 }
  0xcd   : > { %400 = vadd.xlane.f32.xlu1 %v399_v56  ;;  %445 = vadd.xlane.f32.xlu2 %v444_v7  ;;  %v5560_v53 = vmul.f32 %v5539_v55, %v5384_v15  ;;  %v880_v54 = vmul.f32 %v5512_v52, %v879_v30  ;;  %v1099_v60 = vmul.f32 %v5542_v40, %v5489_v43  ;;  %v5572_v15 = vmul.f32 0.020408163, %v345_v58 }
  0xce   : > { %v1092_v37 = vsub.f32 1.5, %v1091_v22  ;;  %397 = vadd.xlane.f32.xlu0 %v396_v14  ;;  %v1050_v7 = vmul.f32 %v5520_v8, %v1049_v33  ;;  %v653_v14 = vsub.f32 %v577_v46, %v615_v41  ;;  %v1041_v23 = vmul.f32 0.5, %v1040_v61 }
  0xcf   : > { %v881_v12 = vmul.f32 0.5, %v880_v54  ;;  %v892_v58 = vsub.f32 1.5, %v891_v28  ;;  %v1100_v30 = vmul.f32 %v5542_v40, %v1099_v60  ;;  %v619_v24 = vmul.f32 %v5572_v15, %v5572_v15 }
  0xd0   : > { %v476_v47 = vpop.xlane.xlu2 %475  ;;  %v5552_v48 = vpop.xlane.xlu1 %430  ;;  %v1093_v50 = vmul.f32 %v5494_v3, %v1092_v37  ;;  %v1051_v37 = vmul.f32 0.5, %v1050_v7  ;;  %v5592_v41 = vmul.f32 0.020408163, %v5362_v2  ;;  %vm1045_vm14 = vweird.f32 %v5503_v62 }
  0xd1   : > { %v574_v16 = vmul.f32 0.020408163, %v476_v47  ;;  %v5564_v19 = vpop.xlane.xlu0 %427  ;;  %v882_v13 = vsub.f32 1.5, %v881_v12  ;;  %v1101_v54 = vmul.f32 0.5, %v1100_v30  ;;  %v893_v61 = vmul.f32 %v5492_v44, %v892_v58  ;;  %vm5677_vm2 = vmor %vm1044_vm7, %vm1045_vm14 }
  0xd2   : > { %v1097_v63 = vsel %vm1096_vm6, %v5494_v3, %v1093_v50  ;;  %v5584_v3 = vpop.eup %5057  ;;  %v561_v50 = vmul.f32 0.020408163, %v5396_v25  ;;  %v1052_v28 = vsub.f32 1.5, %v1051_v37  ;;  %v599_v60 = vmul.f32 %v5592_v41, %v5592_v41 }
  0xd3   : > { %v650_v32 = vsub.f32 %v574_v16, %v612_v39  ;;  %v5575_v56 = vmul.f32 %v1153_v51, %v1097_v63  ;;  %v1109_v2 = vmul.f32 %v5584_v3, %v5534_v49  ;;  %v1042_v51 = vsub.f32 1.5, %v1041_v23  ;;  %v5617_v7 = vpop.eup %5059 }
  0xd4   : > { %v883_v25 = vmul.f32 %v5512_v52, %v882_v13  ;;  %v637_v12 = vsub.f32 %v561_v50, %v599_v60  ;;  %v1102_v23 = vsub.f32 1.5, %v1101_v54  ;;  %v897_v30 = vsel %vm5625_vm13, %v5492_v44, %v893_v61 }
  0xd5   : > { %v688_v18 = vmax.f32 %v650_v32, 0.0  ;;  %v5582_v22 = vmul.f32 %v5575_v56, %v5411_v36  ;;  %v691_v36 = vmax.f32 %v653_v14, 0.0  ;;  %v5613_v32 = vmul.f32 0.020408163, %v5375_v10 }
  0xd6   : > { %448 = vadd.xlane.f32.xlu0 %v447_v5  ;;  %v1110_v14 = vmul.f32 %v5584_v3, %v1109_v2  ;;  %v1053_v13 = vmul.f32 %v5520_v8, %v1052_v28  ;;  %vm1055_vm1 = vweird.f32 %v5520_v8  ;;  %v859_v2 = vmul.f32 %v5617_v7, %v5578_v9 }
  0xd7   : > { %v5589_v33 = vadd.f32 1e-05, %v688_v18  ;;  %v5610_v63 = vadd.f32 1e-05, %v691_v36  ;;  %v887_v20 = vsel %vm5652_vm15, %v5512_v52, %v883_v25  ;;  %v582_v61 = vmul.f32 0.020408163, %v5431_v57  ;;  %vm5688_vm3 = vmor %vm1054_vm12, %vm1055_vm1 }
  0xd8   : > { %v497_v42 = vpop.xlane.xlu2 %496  ;;  %v5595_v39 = vpop.xlane.xlu1 %493  ;;  %v1111_v54 = vmul.f32 0.5, %v1110_v14  ;;  %v1103_v25 = vmul.f32 %v5542_v40, %v1102_v23  ;;  %vm1105_vm4 = vweird.f32 %v5542_v40  ;;  %v5695_v38 = vmul.f32 0.020408163, %v5477_v35  ;;  %v1148_v18 = vld [vmem:[%s8039_s1 + $0xf0] sm:$0xff] }
  0xd9   : > { %5061 = vrsqrt.f32 %v5589_v33  ;;  %v581_v46 = vmul.f32 0.020408163, %v497_v42  ;;  %v5599_v47 = vpop.xlane.xlu0 %478  ;;  %v1133_v42 = vld [vmem:[%s8039_s1 + $0x78] sm:$0xff]  ;;  %v1057_v34 = vsel %vm5688_vm3, %v5520_v8, %v1053_v13  ;;  %v860_v23 = vmul.f32 %v5617_v7, %v859_v2  ;;  %vm5713_vm6 = vmor %vm1104_vm5, %vm1105_vm4 }
  0xda   : > { %5063 = vrsqrt.f32 %v5610_v63  ;;  %v1107_v13 = vsel %vm5713_vm6, %v5542_v40, %v1103_v25  ;;  %v596_v2 = vmul.f32 %v5695_v38, %v5695_v38  ;;  %vm1115_vm7 = vweird.f32 %v5584_v3 }
  0xdb   : > { %v657_v16 = vsub.f32 %v581_v46, %v619_v24  ;;  %v1043_v24 = vmul.f32 %v5503_v62, %v1042_v51  ;;  %v620_v46 = vmul.f32 %v5613_v32, %v5613_v32  ;;  %v1132_v51 = vld [vmem:[%s8039_s1 + $0x70] sm:$0xff]  ;;  %v5745_v57 = vmul.f32 0.020408163, %v5508_v0  ;;  %vm5764_vm11 = vmor %vm1114_vm9, %vm1115_vm7 }
  0xdc   : > { %vm1004_vm10 = vweird.f32 %v5589_v33  ;;  %vm865_vm12 = vweird.f32 %v5617_v7  ;;  %vm864_vm15 = vweird.f32 %v5578_v9  ;;  %v1151_v9 = vld [vmem:[%s8039_s1 + $0x108] sm:$0xff]  ;;  %vm1034_vm5 = vweird.f32 %v5610_v63 }
  0xdd   : > { %v695_v5 = vmax.f32 %v657_v16, 0.0  ;;  %v675_v16 = vmax.f32 %v637_v12, 0.0  ;;  %v1047_v52 = vsel %vm5677_vm2, %v5503_v62, %v1043_v24  ;;  %v1170_v12 = vmul.f32 %v1132_v51, %v887_v20  ;;  %v1149_v62 = vld [vmem:[%s8039_s1 + $0xf8] sm:$0xff]  ;;  %vm5811_vm2 = vmor %vm864_vm15, %vm865_vm12 }
  0xde   : > { %v658_v24 = vsub.f32 %v582_v61, %v620_v46  ;;  %v5719_v44 = vmul.f32 %v1148_v18, %v1047_v52  ;;  %v1187_v43 = vmul.f32 %v1149_v62, %v1057_v34  ;;  %v558_v46 = vmul.f32 0.020408163, %v5564_v19 }
  0xdf   : > { %v5630_v10 = vpop.eup %5061  ;;  %v5632_v58 = vadd.f32 1e-05, %v695_v5  ;;  %v5681_v5 = vmul.f32 %v1133_v42, %v897_v30  ;;  %v5711_v30 = vadd.f32 1e-05, %v675_v16  ;;  %v1112_v42 = vsub.f32 1.5, %v1111_v54  ;;  %v1154_v54 = vld [vmem:[%s8039_s1 + $0x120] sm:$0xff] }
  0xe0   : > { %v999_v6 = vmul.f32 %v5630_v10, %v5589_v33  ;;  %v5641_v37 = vpop.xlane.xlu2 %317  ;;  %v5643_v36 = vpop.xlane.xlu1 %272  ;;  %v696_v19 = vmax.f32 %v658_v24, 0.0  ;;  %v5747_v25 = vmul.f32 %v1154_v54, %v1107_v13  ;;  %v634_v34 = vsub.f32 %v558_v46, %v596_v2  ;;  %v1155_v33 = vld [vmem:[%s8039_s1 + $0x128] sm:$0xff] }
  0xe1   : > { %5065 = vrsqrt.f32 %v5632_v58  ;;  %v5663_v50 = vpop.xlane.xlu0 %269  ;;  %v5709_v35 = vpop.eup %5063  ;;  %v1113_v18 = vmul.f32 %v5584_v3, %v1112_v42  ;;  %vm1005_vm8 = vweird.f32 %v5630_v10  ;;  %v1246_v42 = vmul.f32 %v1170_v12, %v5392_v21 }
  0xe2   : > { %v1000_v28 = vmul.f32 %v5630_v10, %v999_v6  ;;  %v1029_v40 = vmul.f32 %v5709_v35, %v5610_v63  ;;  %5067 = vrsqrt.f32 %v5711_v30  ;;  %v5758_v13 = vadd.f32 1e-05, %v696_v19  ;;  %vm5778_vm13 = vmor %vm1004_vm10, %vm1005_vm8 }
  0xe3   : > { %v613_v21 = vmul.f32 %v5745_v57, %v5745_v57  ;;  %vm1074_vm1 = vweird.f32 %v5632_v58  ;;  %vm1035_vm4 = vweird.f32 %v5709_v35  ;;  %vm874_vm8 = vweird.f32 %v5711_v30 }
  0xe4   : > { %v1001_v14 = vmul.f32 0.5, %v1000_v28  ;;  %v861_v28 = vmul.f32 0.5, %v860_v23  ;;  %v1225_v23 = vld [vmem:[%s8040_s2 + $0xf8] sm:$0xff]  ;;  %v1030_v6 = vmul.f32 %v5709_v35, %v1029_v40  ;;  %v1144_v40 = vld [vmem:[%s8039_s1 + $0xd0] sm:$0xff]  ;;  %5069 = vrsqrt.f32 %v5758_v13  ;;  %vm1036_vm6 = vmor %vm1034_vm5, %vm1035_vm4 }
  0xe5   : > { %1385 = vperm.xlu2 %5041, %v5681_v5  }
  0xe6   : > { %1380 = vperm.xlu1 %5040, %v1170_v12   ;;  %v1002_v20 = vsub.f32 1.5, %v1001_v14  ;;  %v1263_v14 = vmul.f32 %v1187_v43, %v5407_v31  ;;  %v862_v0 = vsub.f32 1.5, %v861_v28  ;;  %v672_v12 = vmax.f32 %v634_v34, 0.0 }
  0xe7   : > { %v5717_v8 = vpop.eup %5065  ;;  %v1031_v19 = vmul.f32 0.5, %v1030_v6 }
  0xe8   : > { %v1069_v51 = vmul.f32 %v5717_v8, %v5632_v58  ;;  %v5729_v16 = vpop.xlane.xlu2 %424  ;;  %v5731_v61 = vpop.xlane.xlu1 %421  ;;  %v1003_v24 = vmul.f32 %v5630_v10, %v1002_v20  ;;  %v1301_v49 = vsub.f32 %v1225_v23, %v1263_v14  ;;  %v1208_v14 = vld [vmem:[%s8040_s2 + $0x70] sm:$0xff]  ;;  %vm1075_vm14 = vweird.f32 %v5717_v8  ;;  %v1209_v20 = vld [vmem:[%s8040_s2 + $0x78] sm:$0xff] }
  0xe9   : > { %v5738_v60 = vpop.xlane.xlu0 %320  ;;  %v5782_v46 = vpop.eup %5067  ;;  %v1284_v6 = vsub.f32 %v1208_v14, %v1246_v42  ;;  %vm1076_vm3 = vmor %vm1074_vm1, %vm1075_vm14  ;;  %v1032_v58 = vsub.f32 1.5, %v1031_v19 }
  0xea   : > { %v1070_v52 = vmul.f32 %v5717_v8, %v1069_v51  ;;  %1460 = vperm.xlu0 %5042, %v5719_v44   ;;  %v1007_v28 = vsel %vm5778_vm13, %v5630_v10, %v1003_v24  ;;  %v5821_v24 = vadd.f32 1e-05, %v672_v12  ;;  %vm875_vm7 = vweird.f32 %v5782_v46 }
  0xeb   : > { %vm876_vm9 = vmor %vm874_vm8, %vm875_vm7 }
  0xec   : > { %v1071_v62 = vmul.f32 0.5, %v1070_v52  ;;  %5071 = vrsqrt.f32 %v5821_v24  ;;  %vm844_vm14 = vweird.f32 %v5821_v24 }
  0xed   : > { %1465 = vperm.xlu2 %5041, %v1187_v43   ;;  %v1117_v43 = vsel %vm5764_vm11, %v5584_v3, %v1113_v18  ;;  %v575_v3 = vmul.f32 0.020408163, %v5599_v47  ;;  %v863_v47 = vmul.f32 %v5617_v7, %v862_v0  ;;  %v869_v18 = vmul.f32 %v5782_v46, %v5711_v30 }
  0xee   : > { %1490 = vperm.xlu1 %5040, %v5747_v25   ;;  %v1072_v2 = vsub.f32 1.5, %v1071_v62  ;;  %v1193_v10 = vmul.f32 %v1155_v33, %v1117_v43  ;;  %v5815_v62 = vmul.f32 %v1144_v40, %v1007_v28  ;;  %v1247_v43 = vmul.f32 %v5681_v5, %v5387_v17 }
  0xef   : > { %v651_v0 = vsub.f32 %v575_v3, %v613_v21  ;;  %v867_v31 = vsel %vm5811_vm2, %v5617_v7, %v863_v47  ;;  %v870_v42 = vmul.f32 %v5782_v46, %v869_v18  ;;  %v1262_v7 = vmul.f32 %v5719_v44, %v5402_v27 }
  0xf0   : > { %v5787_v51 = vpop.xlane.xlu1 %472  ;;  %v5789_v54 = vpop.xlane.xlu2 %263  ;;  %v1073_v23 = vmul.f32 %v5717_v8, %v1072_v2  ;;  %v5842_v21 = vmul.f32 %v5815_v62, %v5523_v11  ;;  %v5856_v27 = vmul.f32 0.020408163, %v5469_v26  ;;  %v1224_v11 = vld [vmem:[%s8040_s2 + $0xf0] sm:$0xff]  ;;  %v1033_v40 = vmul.f32 %v5709_v35, %v1032_v58 }
  0xf1   : > { %v5797_v52 = vpop.xlane.xlu0 %469  ;;  %v689_v17 = vmax.f32 %v651_v0, 0.0  ;;  %v1285_v19 = vsub.f32 %v1209_v20, %v1247_v43  ;;  %v871_v14 = vmul.f32 0.5, %v870_v42  ;;  %v559_v26 = vmul.f32 0.020408163, %v5552_v48  ;;  %v1231_v20 = vld [vmem:[%s8040_s2 + $0x128] sm:$0xff] }
  0xf2   : > { %1693 = vperm.xlu0 %5042, %v1301_v49   ;;  %v1130_v49 = vld [vmem:[%s8039_s1 + $0x60] sm:$0xff]  ;;  %v1077_v2 = vsel %vm1076_vm3, %v5717_v8, %v1073_v23  ;;  %v5844_v8 = vpop.eup %5069  ;;  %v1300_v18 = vsub.f32 %v1224_v11, %v1262_v7  ;;  %v597_v34 = vmul.f32 %v5856_v27, %v5856_v27  ;;  %v1037_v23 = vsel %vm1036_vm6, %v5709_v35, %v1033_v40 }
  0xf3   : > { %v5832_v33 = vmul.f32 %v1151_v9, %v1077_v2  ;;  %v1168_v3 = vmul.f32 %v1130_v49, %v867_v31  ;;  %v5869_v47 = vadd.f32 1e-05, %v689_v17  ;;  %v1147_v9 = vld [vmem:[%s8039_s1 + $0xe8] sm:$0xff]  ;;  %v5877_v0 = vpop.eup %5071  ;;  %v1268_v48 = vmul.f32 %v5747_v25, %v5420_v45  ;;  %v1230_v31 = vld [vmem:[%s8040_s2 + $0x120] sm:$0xff] }
  0xf4   : > { %v872_v63 = vsub.f32 1.5, %v871_v14  ;;  %v635_v58 = vsub.f32 %v559_v26, %v597_v34  ;;  %v1185_v2 = vmul.f32 %v1147_v9, %v1037_v23  ;;  %v1269_v43 = vmul.f32 %v1193_v10, %v5442_v1 }
  0xf5   : > { %1495 = vperm.xlu2 %5041, %v1193_v10   ;;  %v5853_v28 = vmul.f32 %v5832_v33, %v5572_v15  ;;  %v1079_v15 = vmul.f32 %v5844_v8, %v5758_v13  ;;  %5073 = vrsqrt.f32 %v5869_v47  ;;  %v5892_v42 = vmul.f32 0.020408163, %v5501_v59 }
  0xf6   : > { %1608 = vperm.xlu1 %5040, %v1284_v6   ;;  %v839_v45 = vmul.f32 %v5877_v0, %v5821_v24  ;;  %v1306_v7 = vsub.f32 %v1230_v31, %v1268_v48  ;;  %v673_v11 = vmax.f32 %v635_v58, 0.0  ;;  %v580_v1 = vmul.f32 0.020408163, %v5595_v39  ;;  %v1206_v39 = vld [vmem:[%s8040_s2 + $0x60] sm:$0xff] }
  0xf7   : > { %v1080_v6 = vmul.f32 %v5844_v8, %v1079_v15  ;;  %v873_v59 = vmul.f32 %v5782_v46, %v872_v63  ;;  %v5905_v10 = vmul.f32 0.020408163, %v5663_v50  ;;  %v1307_v40 = vsub.f32 %v1231_v20, %v1269_v43 }
  0xf8   : > { %v5847_v5 = vpop.xlane.xlu1 %311  ;;  %v5849_v12 = vpop.xlane.xlu2 %314  ;;  %v618_v14 = vmul.f32 %v5892_v42, %v5892_v42  ;;  %v840_v15 = vmul.f32 %v5877_v0, %v839_v45  ;;  %v556_v23 = vmul.f32 0.020408163, %v5731_v61  ;;  %vm1085_vm10 = vweird.f32 %v5844_v8 }
  0xf9   : > { %v5858_v44 = vpop.xlane.xlu0 %266  ;;  %v1081_v17 = vmul.f32 0.5, %v1080_v6  ;;  %v594_v34 = vmul.f32 %v5905_v10, %v5905_v10  ;;  %v5939_v61 = vmul.f32 0.020408163, %v5738_v60  ;;  %v5943_v20 = vmul.f32 0.020408163, %v5641_v37 }
  0xfa   : > { %1370 = vperm.xlu0 %5042, %v1168_v3   ;;  %v656_v30 = vsub.f32 %v580_v1, %v618_v14  ;;  %v841_v63 = vmul.f32 0.5, %v840_v15  ;;  %vm1084_vm11 = vweird.f32 %v5758_v13  ;;  %v573_v13 = vmul.f32 0.020408163, %v5787_v51 }
  0xfb   : > { %v5915_v26 = vpop.eup %5073  ;;  %v1082_v50 = vsub.f32 1.5, %v1081_v17  ;;  %v1261_v17 = vmul.f32 %v1185_v2, %v5515_v4  ;;  %vm5952_vm12 = vmor %vm1084_vm11, %vm1085_vm10  ;;  %v611_v4 = vmul.f32 %v5939_v61, %v5939_v61  ;;  %vm845_vm13 = vweird.f32 %v5877_v0 }
  0xfc   : > { %v1009_v6 = vmul.f32 %v5915_v26, %v5869_v47  ;;  %v694_v43 = vmax.f32 %v656_v30, 0.0  ;;  %vm846_vm15 = vmor %vm844_vm14, %vm845_vm13  ;;  %vm1015_vm1 = vweird.f32 %v5915_v26  ;;  %vm1014_vm2 = vweird.f32 %v5869_v47 }
  0xfd   : > { %1613 = vperm.xlu2 %5041, %v1285_v19   ;;  %v1244_v19 = vmul.f32 %v1168_v3, %v5485_v29  ;;  %v5919_v29 = vadd.f32 1e-05, %v673_v11  ;;  %v877_v3 = vsel %vm876_vm9, %v5782_v46, %v873_v59  ;;  %v1083_v45 = vmul.f32 %v5844_v8, %v1082_v50  ;;  %v1223_v59 = vld [vmem:[%s8040_s2 + $0xe8] sm:$0xff]  ;;  %vm6028_vm3 = vmor %vm1014_vm2, %vm1015_vm1 }
  0xfe   : > { %1688 = vperm.xlu1 %5040, %v1300_v18   ;;  %v1131_v18 = vld [vmem:[%s8039_s1 + $0x68] sm:$0xff]  ;;  %v842_v11 = vsub.f32 1.5, %v841_v63  ;;  %v1010_v1 = vmul.f32 %v5915_v26, %v1009_v6  ;;  %v5956_v37 = vadd.f32 1e-05, %v694_v43  ;;  %v1299_v15 = vsub.f32 %v1223_v59, %v1261_v17  ;;  %v1128_v43 = vld [vmem:[%s8039_s1 + $0x50] sm:$0xff] }
  0xff   : > { %v1282_v48 = vsub.f32 %v1206_v39, %v1244_v19  ;;  %v1169_v46 = vmul.f32 %v1131_v18, %v877_v3  ;;  %5075 = vrsqrt.f32 %v5919_v29  ;;  %v1152_v39 = vld [vmem:[%s8039_s1 + $0x110] sm:$0xff]  ;;  %v5987_v6 = vmul.f32 0.020408163, %v5643_v36 }
 0x100   : > { %v5886_v35 = vpop.xlane.xlu1 %418  ;;  %v5888_v49 = vpop.xlane.xlu2 %463  ;;  %v1011_v51 = vmul.f32 0.5, %v1010_v1  ;;  %5077 = vrsqrt.f32 %v5956_v37  ;;  %vm854_vm5 = vweird.f32 %v5919_v29  ;;  %vm1064_vm8 = vweird.f32 %v5956_v37 }
 0x101   : > { %v5896_v25 = vpop.xlane.xlu0 %415  ;;  %v1245_v17 = vmul.f32 %v1169_v46, %v5592_v41  ;;  %v555_v47 = vmul.f32 0.020408163, %v5886_v35 }
 0x102   : > { %1455 = vperm.xlu0 %5042, %v1185_v2   ;;  %v1087_v2 = vsel %vm5952_vm12, %v5844_v8, %v1083_v45  ;;  %v843_v8 = vmul.f32 %v5877_v0, %v842_v11  ;;  %v1012_v63 = vsub.f32 1.5, %v1011_v51  ;;  %v557_v45 = vmul.f32 0.020408163, %v5729_v16  ;;  %v1204_v51 = vld [vmem:[%s8040_s2 + $0x50] sm:$0xff] }
 0x103   : > { %v1190_v3 = vmul.f32 %v1152_v39, %v1087_v2  ;;  %v6008_v16 = vmul.f32 0.020408163, %v5858_v44 }
 0x104   : > { %v847_v24 = vsel %vm846_vm15, %v5877_v0, %v843_v8  ;;  %v1207_v0 = vld [vmem:[%s8040_s2 + $0x68] sm:$0xff] }
 0x105   : > { %1718 = vperm.xlu2 %5041, %v1306_v7   ;;  %v632_v7 = vsub.f32 %v556_v23, %v594_v34  ;;  %v5972_v50 = vpop.eup %5075  ;;  %v1166_v59 = vmul.f32 %v1128_v43, %v847_v24  ;;  %v1283_v44 = vsub.f32 %v1207_v0, %v1245_v17  ;;  %v1266_v24 = vmul.f32 %v1190_v3, %v5613_v32  ;;  %v1229_v17 = vld [vmem:[%s8040_s2 + $0x118] sm:$0xff] }
 0x106   : > { %1723 = vperm.xlu1 %5040, %v1307_v40   ;;  %v610_v40 = vmul.f32 %v5943_v20, %v5943_v20  ;;  %v849_v18 = vmul.f32 %v5972_v50, %v5919_v29  ;;  %v6003_v60 = vpop.eup %5077  ;;  %vm855_vm4 = vweird.f32 %v5972_v50  ;;  %v1129_v29 = vld [vmem:[%s8039_s1 + $0x58] sm:$0xff] }
 0x107   : > { %v670_v19 = vmax.f32 %v632_v7, 0.0  ;;  %vm856_vm6 = vmor %vm854_vm5, %vm855_vm4  ;;  %vm1065_vm7 = vweird.f32 %v6003_v60 }
 0x108   : > { %v5928_v9 = vpop.xlane.xlu2 %260  ;;  %v5934_v31 = vpop.xlane.xlu1 %257  ;;  %v850_v11 = vmul.f32 %v5972_v50, %v849_v18  ;;  %vm6121_vm9 = vmor %vm1064_vm8, %vm1065_vm7 }
 0x109   : > { %v5932_v58 = vpop.xlane.xlu0 %466  ;;  %v5982_v34 = vadd.f32 1e-05, %v670_v19 }
 0x10a   : > { %1598 = vperm.xlu0 %5042, %v1282_v48   ;;  %v851_v19 = vmul.f32 0.5, %v850_v11 }
 0x10b   : > { %5079 = vrsqrt.f32 %v5982_v34  ;;  %vm824_vm11 = vweird.f32 %v5982_v34 }
 0x10d   : > { %1375 = vperm.xlu2 %5041, %v1169_v46   ;;  %v1222_v46 = vld [vmem:[%s8040_s2 + $0xe0] sm:$0xff] }
 0x10e   : > { %1450 = vperm.xlu1 %5040, %v5539_v55   ;;  %v572_v55 = vmul.f32 0.020408163, %v5797_v52  ;;  %v649_v52 = vsub.f32 %v573_v13, %v611_v4  ;;  %v1013_v4 = vmul.f32 %v5915_v26, %v1012_v63  ;;  %v6018_v13 = vmul.f32 0.020408163, %v5789_v54 }
 0x10f   : > { %v1298_v39 = vsub.f32 %v1222_v46, %v5560_v53  ;;  %v593_v54 = vmul.f32 %v6008_v16, %v6008_v16 }
 0x110   : > { %v5967_v14 = vpop.xlane.xlu2 %409  ;;  %v648_v23 = vsub.f32 %v572_v55, %v610_v40  ;;  %v5984_v48 = vpop.xlane.xlu1 %308  ;;  %v687_v7 = vmax.f32 %v649_v52, 0.0  ;;  %v1059_v55 = vmul.f32 %v6003_v60, %v5956_v37  ;;  %v1017_v8 = vsel %vm6028_vm3, %v5915_v26, %v1013_v4  ;;  %v1145_v52 = vld [vmem:[%s8039_s1 + $0xd8] sm:$0xff] }
 0x111   : > { %v5974_v30 = vpop.xlane.xlu0 %305  ;;  %v6041_v18 = vpop.eup %5079  ;;  %v592_v53 = vmul.f32 %v6018_v13, %v6018_v13  ;;  %v852_v26 = vsub.f32 1.5, %v851_v19  ;;  %v631_v32 = vsub.f32 %v555_v47, %v593_v54  ;;  %v1305_v4 = vsub.f32 %v1229_v17, %v5582_v22 }
 0x112   : > { %1683 = vperm.xlu0 %5042, %v1299_v15   ;;  %v686_v36 = vmax.f32 %v648_v23, 0.0  ;;  %v6021_v40 = vadd.f32 1e-05, %v687_v7  ;;  %v554_v23 = vmul.f32 0.020408163, %v5896_v25  ;;  %v1060_v43 = vmul.f32 %v6003_v60, %v1059_v55  ;;  %v1228_v25 = vld [vmem:[%s8040_s2 + $0x110] sm:$0xff] }
 0x113   : > { %v1183_v7 = vmul.f32 %v1145_v52, %v1017_v8  ;;  %v819_v11 = vmul.f32 %v6041_v18, %v5982_v34  ;;  %v1304_v46 = vsub.f32 %v1228_v25, %v1266_v24  ;;  %v853_v19 = vmul.f32 %v5972_v50, %v852_v26 }
 0x114   : > { %v6025_v15 = vadd.f32 1e-05, %v686_v36  ;;  %5081 = vrsqrt.f32 %v6021_v40  ;;  %v630_v36 = vsub.f32 %v554_v23, %v592_v53  ;;  %vm825_vm10 = vweird.f32 %v6041_v18 }
 0x115   : > { %1480 = vperm.xlu2 %5041, %v1190_v3   ;;  %v6063_v3 = vmul.f32 0.020408163, %v5849_v12  ;;  %v820_v12 = vmul.f32 %v6041_v18, %v819_v11  ;;  %v857_v23 = vsel %vm856_vm6, %v5972_v50, %v853_v19  ;;  %v1259_v50 = vmul.f32 %v1183_v7, %v5745_v57  ;;  %vm6155_vm12 = vmor %vm824_vm11, %vm825_vm10 }
 0x116   : > { %1485 = vperm.xlu1 %5040, %v5575_v56   ;;  %v595_v56 = vmul.f32 %v5987_v6, %v5987_v6  ;;  %5083 = vrsqrt.f32 %v6025_v15  ;;  %v1167_v17 = vmul.f32 %v1129_v29, %v857_v23  ;;  %v6117_v57 = vmul.f32 0.020408163, %v5847_v5 }
 0x117   : > { %v609_v22 = vmul.f32 %v6063_v3, %v6063_v3  ;;  %v6151_v29 = vmul.f32 0.020408163, %v5974_v30  ;;  %v1126_v30 = vld [vmem:[%s8039_s1 + $0x40] sm:$0xff]  ;;  %vm994_vm15 = vweird.f32 %v6021_v40  ;;  %vm984_vm1 = vweird.f32 %v6025_v15 }
 0x118   : > { %v5998_v1 = vpop.xlane.xlu2 %460  ;;  %v633_v2 = vsub.f32 %v557_v45, %v595_v56  ;;  %v6046_v63 = vpop.xlane.xlu1 %457 }
 0x119   : > { %v6010_v41 = vpop.xlane.xlu0 %412  ;;  %v606_v19 = vmul.f32 %v6151_v29, %v6151_v29 }
 0x11a   : > { %1360 = vperm.xlu0 %5042, %v1166_v59   ;;  %v671_v35 = vmax.f32 %v633_v2, 0.0  ;;  %v1061_v2 = vmul.f32 0.5, %v1060_v43  ;;  %v6073_v55 = vpop.eup %5081 }
 0x11b   : > { %vm995_vm13 = vweird.f32 %v6073_v55 }
 0x11c   : > { %v6067_v56 = vadd.f32 1e-05, %v671_v35  ;;  %v6079_v54 = vpop.eup %5083  ;;  %v1062_v47 = vsub.f32 1.5, %v1061_v2  ;;  %v821_v35 = vmul.f32 0.5, %v820_v12  ;;  %vm6200_vm2 = vmor %vm994_vm15, %vm995_vm13 }
 0x11d   : > { %1603 = vperm.xlu2 %5041, %v1283_v44   ;;  %v1242_v44 = vmul.f32 %v1166_v59, %v5695_v38  ;;  %v668_v38 = vmax.f32 %v630_v36, 0.0  ;;  %v571_v59 = vmul.f32 0.020408163, %v5932_v58  ;;  %v989_v58 = vmul.f32 %v6073_v55, %v6021_v40 }
 0x11e   : > { %1678 = vperm.xlu1 %5040, %v1298_v39   ;;  %v669_v39 = vmax.f32 %v631_v32, 0.0  ;;  %5085 = vrsqrt.f32 %v6067_v56  ;;  %v979_v24 = vmul.f32 %v6079_v54, %v6025_v15  ;;  %v1063_v32 = vmul.f32 %v6003_v60, %v1062_v47 }
 0x11f   : > { %v1280_v53 = vsub.f32 %v1204_v51, %v1242_v44  ;;  %v6100_v43 = vadd.f32 1e-05, %v668_v38  ;;  %v647_v25 = vsub.f32 %v571_v59, %v609_v22  ;;  %v1221_v44 = vld [vmem:[%s8040_s2 + $0xd8] sm:$0xff]  ;;  %vm985_vm14 = vweird.f32 %v6079_v54 }
 0x120   : > { %v6052_v45 = vpop.xlane.xlu2 %299  ;;  %v6086_v8 = vpop.xlane.xlu1 %254  ;;  %v6098_v26 = vadd.f32 1e-05, %v669_v39  ;;  %v980_v2 = vmul.f32 %v6079_v54, %v979_v24  ;;  %v570_v39 = vmul.f32 0.020408163, %v5888_v49  ;;  %v1297_v37 = vsub.f32 %v1221_v44, %v1259_v50  ;;  %vm6206_vm3 = vmor %vm984_vm1, %vm985_vm14 }
 0x121   : > { %v6065_v0 = vpop.xlane.xlu0 %251  ;;  %v1067_v5 = vsel %vm6121_vm9, %v6003_v60, %v1063_v32  ;;  %v608_v49 = vmul.f32 %v6117_v57, %v6117_v57  ;;  %v1243_v44 = vmul.f32 %v1167_v17, %v5856_v27  ;;  %vm834_vm5 = vweird.f32 %v6067_v56 }
 0x122   : > { %1445 = vperm.xlu0 %5042, %v1183_v7   ;;  %5087 = vrsqrt.f32 %v6098_v26  ;;  %v685_v7 = vmax.f32 %v647_v25, 0.0  ;;  %v981_v38 = vmul.f32 0.5, %v980_v2  ;;  %vm814_vm9 = vweird.f32 %v6098_v26 }
 0x123   : > { %5089 = vrsqrt.f32 %v6100_v43  ;;  %v646_v24 = vsub.f32 %v570_v39, %v608_v49  ;;  %vm804_vm10 = vweird.f32 %v6100_v43 }
 0x124   : > { %v6107_v36 = vpop.eup %5085  ;;  %v6140_v47 = vadd.f32 1e-05, %v685_v7  ;;  %v982_v32 = vsub.f32 1.5, %v981_v38 }
 0x125   : > { %1708 = vperm.xlu2 %5041, %v1304_v46   ;;  %v822_v46 = vsub.f32 1.5, %v821_v35  ;;  %v829_v12 = vmul.f32 %v6107_v36, %v6067_v56  ;;  %v684_v39 = vmax.f32 %v646_v24, 0.0  ;;  %vm835_vm4 = vweird.f32 %v6107_v36 }
 0x126   : > { %1713 = vperm.xlu1 %5040, %v1305_v4   ;;  %v990_v4 = vmul.f32 %v6073_v55, %v989_v58  ;;  %5091 = vrsqrt.f32 %v6140_v47  ;;  %v6261_v24 = vmul.f32 0.020408163, %v6065_v0  ;;  %vm6266_vm6 = vmor %vm834_vm5, %vm835_vm4  ;;  %vm974_vm14 = vweird.f32 %v6140_v47 }
 0x127   : > { %v823_v59 = vmul.f32 %v6041_v18, %v822_v46  ;;  %v6210_v40 = vadd.f32 1e-05, %v684_v39 }
 0x128   : > { %v6088_v52 = vpop.xlane.xlu2 %406  ;;  %v991_v22 = vmul.f32 0.5, %v990_v4  ;;  %v6145_v23 = vpop.xlane.xlu1 %403  ;;  %v553_v4 = vmul.f32 0.020408163, %v6010_v41  ;;  %v1205_v41 = vld [vmem:[%s8040_s2 + $0x58] sm:$0xff] }
 0x129   : > { %v6102_v11 = vpop.xlane.xlu0 %302  ;;  %v6147_v60 = vpop.eup %5087  ;;  %v827_v34 = vsel %vm6155_vm12, %v6041_v18, %v823_v59  ;;  %5093 = vrsqrt.f32 %v6210_v40 }
 0x12a   : > { %1588 = vperm.xlu0 %5042, %v1280_v53   ;;  %v6143_v53 = vmul.f32 0.020408163, %v5928_v9  ;;  %v6153_v58 = vpop.eup %5089  ;;  %v830_v9 = vmul.f32 %v6107_v36, %v829_v12  ;;  %v992_v50 = vsub.f32 1.5, %v991_v22  ;;  %v809_v18 = vmul.f32 %v6147_v60, %v6098_v26 }
 0x12b   : > { %v799_v7 = vmul.f32 %v6153_v58, %v6100_v43  ;;  %v568_v12 = vmul.f32 0.020408163, %v6046_v63  ;;  %v1220_v63 = vld [vmem:[%s8040_s2 + $0xd0] sm:$0xff]  ;;  %v1281_v22 = vsub.f32 %v1205_v41, %v1243_v44  ;;  %vm815_vm7 = vweird.f32 %v6147_v60 }
 0x12c   : > { %v591_v46 = vmul.f32 %v6143_v53, %v6143_v53  ;;  %v831_v27 = vmul.f32 0.5, %v830_v9  ;;  %v810_v38 = vmul.f32 %v6147_v60, %v809_v18  ;;  %v6204_v25 = vpop.eup %5091  ;;  %vm805_vm8 = vweird.f32 %v6153_v58  ;;  %vm6304_vm11 = vmor %vm814_vm9, %vm815_vm7 }
 0x12d   : > { %1365 = vperm.xlu2 %5041, %v1167_v17   ;;  %v983_v17 = vmul.f32 %v6079_v54, %v982_v32  ;;  %v800_v59 = vmul.f32 %v6153_v58, %v799_v7  ;;  %v644_v49 = vsub.f32 %v568_v12, %v606_v19  ;;  %v1296_v32 = vsub.f32 %v1220_v63, %v5842_v21  ;;  %vm6310_vm12 = vmor %vm804_vm10, %vm805_vm8 }
 0x12e   : > { %1440 = vperm.xlu1 %5040, %v5815_v62   ;;  %v1150_v62 = vld [vmem:[%s8039_s1 + $0x100] sm:$0xff]  ;;  %v552_v21 = vmul.f32 0.020408163, %v5967_v14  ;;  %v811_v7 = vmul.f32 0.5, %v810_v38  ;;  %v969_v19 = vmul.f32 %v6204_v25, %v6140_v47  ;;  %vm975_vm13 = vweird.f32 %v6204_v25 }
 0x12f   : > { %v1188_v35 = vmul.f32 %v1150_v62, %v1067_v5  ;;  %v993_v5 = vmul.f32 %v6073_v55, %v992_v50  ;;  %v629_v62 = vsub.f32 %v553_v4, %v591_v46  ;;  %v6213_v50 = vmul.f32 0.020408163, %v5934_v31  ;;  %v1143_v46 = vld [vmem:[%s8039_s1 + $0xc8] sm:$0xff]  ;;  %v1142_v31 = vld [vmem:[%s8039_s1 + $0xc0] sm:$0xff]  ;;  %v6277_v0 = vpop.eup %5093  ;;  %vm6377_vm15 = vmor %vm974_vm14, %vm975_vm13 }
 0x130   : > { %v6128_v51 = vpop.xlane.xlu2 %245  ;;  %v6215_v15 = vpop.xlane.xlu1 %454  ;;  %v987_v4 = vsel %vm6206_vm3, %v6079_v54, %v983_v17  ;;  %v682_v12 = vmax.f32 %v644_v49, 0.0  ;;  %v1226_v54 = vld [vmem:[%s8040_s2 + $0x100] sm:$0xff]  ;;  %vm965_vm1 = vweird.f32 %v6277_v0 }
 0x131   : > { %v6170_v2 = vpop.xlane.xlu0 %451  ;;  %v667_v44 = vmax.f32 %v629_v62, 0.0  ;;  %v1264_v18 = vmul.f32 %v1188_v35, %v5892_v42  ;;  %v590_v41 = vmul.f32 %v6213_v50, %v6213_v50 }
 0x132   : > { %1673 = vperm.xlu0 %5042, %v1297_v37   ;;  %v6258_v49 = vadd.f32 1e-05, %v682_v12 }
 0x133   : > { %v628_v63 = vsub.f32 %v552_v21, %v590_v41  ;;  %v1302_v62 = vsub.f32 %v1226_v54, %v1264_v18 }
 0x134   : > { %vm944_vm8 = vweird.f32 %v6258_v49 }
 0x135   : > { %1470 = vperm.xlu2 %5041, %v1188_v35   ;;  %v6246_v35 = vmul.f32 %v1142_v31, %v987_v4  ;;  %v1127_v4 = vld [vmem:[%s8039_s1 + $0x48] sm:$0xff] }
 0x136   : > { %1475 = vperm.xlu1 %5040, %v5832_v33   ;;  %v6186_v33 = vmul.f32 %v1126_v30, %v827_v34  ;;  %v832_v34 = vsub.f32 1.5, %v831_v27  ;;  %v997_v30 = vsel %vm6200_vm2, %v6073_v55, %v993_v5  ;;  %v801_v55 = vmul.f32 0.5, %v800_v59  ;;  %v1227_v27 = vld [vmem:[%s8040_s2 + $0x108] sm:$0xff] }
 0x137   : > { %v6244_v42 = vmul.f32 %v1143_v46, %v997_v30  ;;  %v6254_v5 = vadd.f32 1e-05, %v667_v44  ;;  %v970_v59 = vmul.f32 %v6204_v25, %v969_v19  ;;  %v1303_v9 = vsub.f32 %v1227_v27, %v5853_v28 }
 0x138   : > { %v6184_v37 = vpop.xlane.xlu2 %296  ;;  %v833_v17 = vmul.f32 %v6107_v36, %v832_v34  ;;  %v802_v38 = vsub.f32 1.5, %v801_v55  ;;  %v1256_v56 = vmul.f32 %v6246_v35, %v5943_v20  ;;  %v1218_v34 = vld [vmem:[%s8040_s2 + $0xc0] sm:$0xff]  ;;  %v666_v28 = vmax.f32 %v628_v63, 0.0  ;;  %v6284_v46 = vpop.xlane.xlu1 %293  ;;  %v1125_v63 = vld [vmem:[%s8039_s1 + $0x38] sm:$0xff] }
 0x139   : > { %v6240_v14 = vpop.xlane.xlu0 %248  ;;  %v6281_v20 = vmul.f32 0.020408163, %v5984_v48  ;;  %5095 = vrsqrt.f32 %v6254_v5  ;;  %v971_v31 = vmul.f32 0.5, %v970_v59  ;;  %v588_v48 = vmul.f32 %v6261_v24, %v6261_v24 }
 0x13a   : > { %1350 = vperm.xlu0 %5042, %v6186_v33   ;;  %v837_v30 = vsel %vm6266_vm6, %v6107_v36, %v833_v17  ;;  %v803_v36 = vmul.f32 %v6153_v58, %v802_v38  ;;  %5097 = vrsqrt.f32 %v6258_v49  ;;  %v550_v44 = vmul.f32 0.020408163, %v6145_v23 }
 0x13b   : > { %v959_v55 = vmul.f32 %v6277_v0, %v6210_v40  ;;  %v569_v19 = vmul.f32 0.020408163, %v5998_v1  ;;  %v1165_v12 = vmul.f32 %v1127_v4, %v837_v30  ;;  %v6314_v54 = vadd.f32 1e-05, %v666_v28 }
 0x13c   : > { %v607_v43 = vmul.f32 %v6281_v20, %v6281_v20  ;;  %v972_v1 = vsub.f32 1.5, %v971_v31  ;;  %v6321_v27 = vmul.f32 0.020408163, %v6052_v45  ;;  %v626_v45 = vsub.f32 %v550_v44, %v588_v48 }
 0x13d   : > { %1593 = vperm.xlu2 %5041, %v1281_v22   ;;  %v812_v22 = vsub.f32 1.5, %v811_v7  ;;  %v1294_v7 = vsub.f32 %v1218_v34, %v1256_v56  ;;  %v6338_v59 = vmul.f32 0.020408163, %v6102_v11  ;;  %5099 = vrsqrt.f32 %v6314_v54 }
 0x13e   : > { %1668 = vperm.xlu1 %5040, %v1296_v32   ;;  %v645_v56 = vsub.f32 %v569_v19, %v607_v43  ;;  %v1240_v32 = vmul.f32 %v6186_v33, %v5905_v10  ;;  %v973_v30 = vmul.f32 %v6204_v25, %v972_v1  ;;  %v604_v10 = vmul.f32 %v6321_v27, %v6321_v27  ;;  %v1202_v33 = vld [vmem:[%s8040_s2 + $0x40] sm:$0xff]  ;;  %v1141_v43 = vld [vmem:[%s8039_s1 + $0xb8] sm:$0xff] }
 0x13f   : > { %v813_v21 = vmul.f32 %v6147_v60, %v812_v22  ;;  %v1124_v22 = vld [vmem:[%s8039_s1 + $0x30] sm:$0xff]  ;;  %v6335_v38 = vpop.eup %5095  ;;  %v605_v31 = vmul.f32 %v6338_v59, %v6338_v59  ;;  %vm964_vm2 = vweird.f32 %v6210_v40  ;;  %v6440_v40 = vmul.f32 0.020408163, %v6128_v51 }
 0x140   : > { %v6242_v39 = vpop.xlane.xlu2 %445  ;;  %v789_v28 = vmul.f32 %v6335_v38, %v6254_v5  ;;  %v6370_v48 = vpop.xlane.xlu1 %400  ;;  %v1278_v19 = vsub.f32 %v1202_v33, %v1240_v32  ;;  %v977_v47 = vsel %vm6377_vm15, %v6204_v25, %v973_v30  ;;  %vm6444_vm3 = vmor %vm964_vm2, %vm965_vm1  ;;  %vm795_vm4 = vweird.f32 %v6335_v38 }
 0x141   : > { %v6318_v41 = vpop.xlane.xlu0 %397  ;;  %v817_v17 = vsel %vm6304_vm11, %v6147_v60, %v813_v21  ;;  %v960_v60 = vmul.f32 %v6277_v0, %v959_v55  ;;  %v567_v21 = vmul.f32 0.020408163, %v6215_v15  ;;  %v6407_v32 = vmul.f32 %v1141_v43, %v977_v47 }
 0x142   : > { %1435 = vperm.xlu0 %5042, %v6244_v42   ;;  %v6349_v34 = vmul.f32 %v1125_v63, %v817_v17  ;;  %v790_v15 = vmul.f32 %v6335_v38, %v789_v28  ;;  %v6395_v63 = vmul.f32 0.020408163, %v6086_v8  ;;  %v1257_v28 = vmul.f32 %v6244_v42, %v5939_v61 }
 0x143   : > { %v961_v44 = vmul.f32 0.5, %v960_v60  ;;  %vm794_vm6 = vweird.f32 %v6254_v5  ;;  %vm784_vm11 = vweird.f32 %v6314_v54 }
 0x144   : > { %v791_v8 = vmul.f32 0.5, %v790_v15  ;;  %vm6479_vm7 = vmor %vm794_vm6, %vm795_vm4 }
 0x145   : > { %1698 = vperm.xlu2 %5041, %v1302_v62   ;;  %v807_v62 = vsel %vm6310_vm12, %v6153_v58, %v803_v36  ;;  %v1241_v58 = vmul.f32 %v1165_v12, %v5987_v6  ;;  %v566_v6 = vmul.f32 0.020408163, %v6170_v2  ;;  %v664_v36 = vmax.f32 %v626_v45, 0.0 }
 0x146   : > { %1703 = vperm.xlu1 %5040, %v1303_v9   ;;  %v6340_v9 = vpop.eup %5097  ;;  %v6351_v11 = vmul.f32 %v1124_v22, %v807_v62  ;;  %v643_v22 = vsub.f32 %v567_v21, %v605_v31  ;;  %v962_v25 = vsub.f32 1.5, %v961_v44  ;;  %v1255_v31 = vmul.f32 %v6407_v32, %v6063_v3 }
 0x147   : > { %v939_v4 = vmul.f32 %v6340_v9, %v6258_v49  ;;  %v642_v26 = vsub.f32 %v566_v6, %v604_v10  ;;  %v6391_v1 = vpop.eup %5099  ;;  %v6397_v62 = vadd.f32 1e-05, %v664_v36  ;;  %v589_v6 = vmul.f32 %v6395_v63, %v6395_v63 }
 0x148   : > { %v6296_v18 = vpop.permute.xlu2 %1385  ;;  %v1238_v23 = vmul.f32 %v6351_v11, %v6018_v13  ;;  %v1200_v13 = vld [vmem:[%s8040_s2 + $0x30] sm:$0xff]  ;;  %v681_v33 = vmax.f32 %v643_v22, 0.0  ;;  %v779_v36 = vmul.f32 %v6391_v1, %v6314_v54  ;;  %v963_v61 = vmul.f32 %v6277_v0, %v962_v25  ;;  %v5121_v54 = vld [vmem:[%s8038_s0 + $0xf8] sm:$0xff] }
 0x149   : > { %v940_v17 = vmul.f32 %v6340_v9, %v939_v4  ;;  %v6399_v45 = vpop.xlane.xlu0 %448  ;;  %5101 = vrsqrt.f32 %v6397_v62  ;;  %v792_v21 = vsub.f32 1.5, %v791_v8  ;;  %vm945_vm5 = vweird.f32 %v6340_v9 }
 0x14a   : > { %1658 = vperm.xlu0 %5042, %v1294_v7   ;;  %v683_v7 = vmax.f32 %v645_v56, 0.0  ;;  %v551_v56 = vmul.f32 0.020408163, %v6088_v52  ;;  %v1276_v30 = vsub.f32 %v1200_v13, %v1238_v23  ;;  %v1219_v52 = vld [vmem:[%s8040_s2 + $0xc8] sm:$0xff]  ;;  %v6437_v15 = vadd.f32 1e-05, %v681_v33  ;;  %vm6490_vm9 = vmor %vm944_vm8, %vm945_vm5 }
 0x14b   : > { %v941_v10 = vmul.f32 0.5, %v940_v17  ;;  %v1295_v55 = vsub.f32 %v1219_v52, %v1257_v28  ;;  %v967_v23 = vsel %vm6444_vm3, %v6277_v0, %v963_v61  ;;  %v1140_v17 = vld [vmem:[%s8039_s1 + $0xb0] sm:$0xff]  ;;  %v793_v13 = vmul.f32 %v6335_v38, %v792_v21  ;;  %v1123_v61 = vld [vmem:[%s8039_s1 + $0x28] sm:$0xff] }
 0x14c   : > { %v6404_v60 = vadd.f32 1e-05, %v683_v7  ;;  %v627_v42 = vsub.f32 %v551_v56, %v589_v6  ;;  %v6432_v7 = vmul.f32 0.020408163, %v6240_v14  ;;  %v780_v14 = vmul.f32 %v6391_v1, %v779_v36 }
 0x14d   : > { %1355 = vperm.xlu2 %5041, %v1165_v12   ;;  %v549_v25 = vmul.f32 0.020408163, %v6370_v48  ;;  %v548_v56 = vmul.f32 0.020408163, %v6318_v41  ;;  %v797_v36 = vsel %vm6479_vm7, %v6335_v38, %v793_v13  ;;  %v6501_v49 = vmul.f32 0.020408163, %v6184_v37 }
 0x14e   : > { %1430 = vperm.xlu1 %5040, %v6246_v35   ;;  %v1203_v35 = vld [vmem:[%s8040_s2 + $0x48] sm:$0xff]  ;;  %5103 = vrsqrt.f32 %v6404_v60  ;;  %v665_v43 = vmax.f32 %v627_v42, 0.0  ;;  %v587_v0 = vmul.f32 %v6432_v7, %v6432_v7  ;;  %v781_v6 = vmul.f32 0.5, %v780_v14 }
 0x14f   : > { %v1279_v12 = vsub.f32 %v1203_v35, %v1241_v58  ;;  %v680_v58 = vmax.f32 %v642_v26, 0.0  ;;  %v6452_v47 = vpop.eup %5101  ;;  %v1239_v37 = vmul.f32 %v6349_v34, %v6008_v16  ;;  %v603_v13 = vmul.f32 %v6501_v49, %v6501_v49 }
 0x150   : > { %v6372_v2 = vpop.permute.xlu2 %1465  ;;  %v759_v28 = vmul.f32 %v6452_v47, %v6397_v62  ;;  %v6486_v33 = vadd.f32 1e-05, %v665_v43  ;;  %v625_v5 = vsub.f32 %v549_v25, %v587_v0  ;;  %v782_v14 = vsub.f32 1.5, %v781_v6  ;;  %v1216_v6 = vld [vmem:[%s8040_s2 + $0xb0] sm:$0xff] }
 0x151   : > { %v6429_v44 = vadd.f32 1e-05, %v680_v58  ;;  %v565_v25 = vmul.f32 0.020408163, %v6399_v45  ;;  %vm785_vm10 = vweird.f32 %v6391_v1  ;;  %vm765_vm13 = vweird.f32 %v6452_v47 }
 0x152   : > { %1345 = vperm.xlu0 %5042, %v6349_v34   ;;  %v760_v38 = vmul.f32 %v6452_v47, %v759_v28  ;;  %v663_v43 = vmax.f32 %v625_v5, 0.0  ;;  %vm6572_vm12 = vmor %vm784_vm11, %vm785_vm10  ;;  %vm764_vm15 = vweird.f32 %v6397_v62  ;;  %vm954_vm1 = vweird.f32 %v6404_v60 }
 0x153   : > { %5105 = vrsqrt.f32 %v6429_v44  ;;  %vm6615_vm2 = vmor %vm764_vm15, %vm765_vm13  ;;  %vm924_vm6 = vweird.f32 %v6429_v44  ;;  %vm934_vm7 = vweird.f32 %v6437_v15  ;;  %vm774_vm11 = vweird.f32 %v6486_v33 }
 0x154   : > { %v6460_v22 = vpop.eup %5103  ;;  %5107 = vrsqrt.f32 %v6437_v15  ;;  %v6555_v5 = vadd.f32 1e-05, %v663_v43 }
 0x155   : > { %1578 = vperm.xlu2 %5041, %v1278_v19   ;;  %v1217_v19 = vld [vmem:[%s8040_s2 + $0xb8] sm:$0xff]  ;;  %v949_v41 = vmul.f32 %v6460_v22, %v6404_v60  ;;  %5109 = vrsqrt.f32 %v6486_v33  ;;  %vm955_vm14 = vweird.f32 %v6460_v22 }
 0x156   : > { %1583 = vperm.xlu1 %5040, %v1279_v12   ;;  %v942_v12 = vsub.f32 1.5, %v941_v10  ;;  %v1293_v51 = vsub.f32 %v1217_v19, %v1255_v31  ;;  %v1178_v10 = vmul.f32 %v1140_v17, %v967_v23  ;;  %5111 = vrsqrt.f32 %v6555_v5  ;;  %vm6632_vm3 = vmor %vm954_vm1, %vm955_vm14 }
 0x157   : > { %v950_v23 = vmul.f32 %v6460_v22, %v949_v41  ;;  %v783_v41 = vmul.f32 %v6391_v1, %v782_v14  ;;  %vm754_vm15 = vweird.f32 %v6555_v5 }
 0x158   : > { %v6414_v35 = vpop.permute.xlu1 %1380  ;;  %v6416_v4 = vpop.permute.xlu2 %1495 }
 0x159   : > { %v6511_v19 = vpop.eup %5105  ;;  %v951_v48 = vmul.f32 0.5, %v950_v23 }
 0x15a   : > { %1568 = vperm.xlu0 %5042, %v1276_v30   ;;  %v943_v30 = vmul.f32 %v6340_v9, %v942_v12  ;;  %v1254_v12 = vmul.f32 %v1178_v10, %v6117_v57  ;;  %v6517_v3 = vpop.eup %5107  ;;  %v5120_v57 = vld [vmem:[%s8038_s0 + $0x70] sm:$0xff]  ;;  %vm925_vm4 = vweird.f32 %v6511_v19 }
 0x15b   : > { %v1512_v34 = vmul.f32 %v5120_v57, %v6414_v35  ;;  %v929_v35 = vmul.f32 %v6517_v3, %v6437_v15  ;;  %v952_v43 = vsub.f32 1.5, %v951_v48  ;;  %v1529_v57 = vmul.f32 %v5121_v54, %v6372_v2  ;;  %vm6677_vm8 = vmor %vm924_vm6, %vm925_vm4 }
 0x15c   : > { %v6442_v26 = vpop.permute.xlu0 %1460  ;;  %v947_v21 = vsel %vm6490_vm9, %v6340_v9, %v943_v30  ;;  %v6522_v9 = vmul.f32 %v1123_v61, %v797_v36  ;;  %v761_v30 = vmul.f32 0.5, %v760_v38  ;;  %v1199_v36 = vld [vmem:[%s8040_s2 + $0x28] sm:$0xff]  ;;  %v6560_v61 = vpop.eup %5109  ;;  %v1292_v38 = vsub.f32 %v1216_v6, %v1254_v12 }
 0x15d   : > { %1663 = vperm.xlu2 %5041, %v1295_v55   ;;  %v1138_v55 = vld [vmem:[%s8039_s1 + $0xa0] sm:$0xff]  ;;  %v930_v23 = vmul.f32 %v6517_v3, %v929_v35  ;;  %v787_v12 = vsel %vm6572_vm12, %v6391_v1, %v783_v41  ;;  %vm935_vm5 = vweird.f32 %v6517_v3  ;;  %vm775_vm10 = vweird.f32 %v6560_v61 }
 0x15e   : > { %1340 = vperm.xlu1 %5040, %v6351_v11   ;;  %v586_v11 = vmul.f32 %v6440_v40, %v6440_v40  ;;  %v6532_v17 = vmul.f32 %v1138_v55, %v947_v21  ;;  %v1237_v45 = vmul.f32 %v6522_v9, %v6143_v53  ;;  %v641_v53 = vsub.f32 %v565_v25, %v603_v13  ;;  %v1122_v1 = vld [vmem:[%s8039_s1 + $0x20] sm:$0xff]  ;;  %vm6686_vm9 = vmor %vm934_vm7, %vm935_vm5 }
 0x15f   : > { %v762_v14 = vsub.f32 1.5, %v761_v30  ;;  %v931_v2 = vmul.f32 0.5, %v930_v23  ;;  %v1160_v35 = vmul.f32 %v1122_v1, %v787_v12  ;;  %v5123_v23 = vld [vmem:[%s8038_s0 + $0x128] sm:$0xff]  ;;  %vm776_vm12 = vmor %vm774_vm11, %vm775_vm10  ;;  %vm2866_vm10 = vcmask 392192  }
 0x160   : > { %v6471_v8 = vpop.permute.xlu1 %1490  ;;  %v1614_v58 = vpop.permute.xlu2 %1613  ;;  %v624_v42 = vsub.f32 %v548_v56, %v586_v11  ;;  %v679_v13 = vmax.f32 %v641_v53, 0.0  ;;  %v1252_v41 = vmul.f32 %v6532_v17, %v6151_v29 }
 0x161   : > { %v763_v30 = vmul.f32 %v6452_v47, %v762_v14  ;;  %v932_v62 = vsub.f32 1.5, %v931_v2 }
 0x162   : > { %1653 = vperm.xlu0 %5042, %v1293_v51   ;;  %v5119_v51 = vld [vmem:[%s8038_s0 + $0x78] sm:$0xff]  ;;  %v662_v0 = vmax.f32 %v624_v42, 0.0  ;;  %v6609_v48 = vadd.f32 1e-05, %v679_v13 }
 0x163   : > { %v1513_v16 = vmul.f32 %v5119_v51, %v6296_v18  ;;  %v1201_v18 = vld [vmem:[%s8040_s2 + $0x38] sm:$0xff]  ;;  %v1275_v51 = vsub.f32 %v1199_v36, %v1237_v45  ;;  %v767_v60 = vsel %vm6615_vm2, %v6452_v47, %v763_v30  ;;  %v933_v1 = vmul.f32 %v6517_v3, %v932_v62 }
 0x164   : > { %v6503_v31 = vpop.permute.xlu0 %1693  ;;  %v6563_v21 = vadd.f32 1e-05, %v662_v0  ;;  %vm914_vm5 = vweird.f32 %v6609_v48 }
 0x165   : > { %1420 = vperm.xlu2 %5041, %v1178_v10   ;;  %v1741_v28 = vadd.f32 %v1614_v58, %v1513_v16  ;;  %v1277_v58 = vsub.f32 %v1201_v18, %v1239_v37  ;;  %v6580_v16 = vmul.f32 0.020408163, %v6284_v46  ;;  %v1535_v37 = vmul.f32 %v5123_v23, %v6416_v4  ;;  %v1139_v4 = vld [vmem:[%s8039_s1 + $0xa8] sm:$0xff] }
 0x166   : > { %1425 = vperm.xlu1 %5040, %v6407_v32   ;;  %v919_v32 = vmul.f32 %v6511_v19, %v6429_v44  ;;  %5113 = vrsqrt.f32 %v6563_v21  ;;  %vm744_vm1 = vweird.f32 %v6563_v21 }
 0x167   : > { %5115 = vrsqrt.f32 %v6609_v48 }
 0x168   : > { %v1609_v11 = vpop.permute.xlu1 %1608  ;;  %v6539_v56 = vpop.permute.xlu2 %1718  ;;  %v920_v42 = vmul.f32 %v6511_v19, %v919_v32 }
 0x169   : > { %v1740_v10 = vadd.f32 %v1609_v11, %v1512_v34  ;;  %v5122_v34 = vld [vmem:[%s8038_s0 + $0xf0] sm:$0xff]  ;;  %v1757_v11 = vadd.f32 %v6503_v31, %v1529_v57 }
 0x16a   : > { %1410 = vperm.xlu0 %5042, %v6532_v17   ;;  %v1528_v32 = vmul.f32 %v5122_v34, %v6442_v26  ;;  %v921_v46 = vmul.f32 0.5, %v920_v42  ;;  %v769_v26 = vmul.f32 %v6560_v61, %v6486_v33 }
 0x16b   : > { %v1771_v52 = vpack.c.bf16 %v1741_v28, %v1740_v10  ;;  %v953_v28 = vmul.f32 %v6460_v22, %v952_v43  ;;  %v564_v10 = vmul.f32 0.020408163, %v6242_v39  ;;  %v602_v39 = vmul.f32 %v6580_v16, %v6580_v16  ;;  %v5124_v43 = vld [vmem:[%s8038_s0 + $0x120] sm:$0xff] }
 0x16c   : > { %v6565_v55 = vpop.permute.xlu0 %1370  ;;  %v922_v31 = vsub.f32 1.5, %v921_v46  ;;  %v770_v53 = vmul.f32 %v6560_v61, %v769_v26  ;;  %v937_v26 = vsel %vm6686_vm9, %v6517_v3, %v933_v1  ;;  %v5125_v3 = vld [vmem:[%s8038_s0 + $0x60] sm:$0xff] }
 0x16d   : > { %1573 = vperm.xlu2 %5041, %v1277_v58   ;;  %3038 = vmatpush.bf16.msra.mxu0 %v1771_v52  ;;  %v6619_v58 = vpop.eup %5111  ;;  %v957_v47 = vsel %vm6632_vm3, %v6460_v22, %v953_v28  ;;  %v640_v14 = vsub.f32 %v564_v10, %v602_v39  ;;  %v1136_v10 = vld [vmem:[%s8039_s1 + $0x90] sm:$0xff]  ;;  %v1510_v39 = vmul.f32 %v5125_v3, %v6565_v55 }
 0x16e   : > { %5011 = vmatpush.bf16.msra.mxu3 %v1771_v52  ;;  %1648 = vperm.xlu1 %5040, %v1292_v38   ;;  %v1120_v52 = vld [vmem:[%s8039_s1 + $0x10] sm:$0xff]  ;;  %v6636_v42 = vpop.eup %5113  ;;  %v1236_v38 = vmul.f32 %v1160_v35, %v6213_v50  ;;  %v749_v50 = vmul.f32 %v6619_v58, %v6555_v5  ;;  %v1177_v13 = vmul.f32 %v1139_v4, %v957_v47  ;;  %v771_v2 = vmul.f32 0.5, %v770_v53 }
 0x16f   : > { %v6660_v54 = vmul.f32 %v1120_v52, %v767_v60  ;;  %vm755_vm13 = vweird.f32 %v6619_v58  ;;  %vm745_vm14 = vweird.f32 %v6636_v42 }
 0x170   : > { %v1689_v0 = vpop.permute.xlu1 %1688  ;;  %v6595_v25 = vpop.permute.xlu2 %1375  ;;  %v1253_v52 = vmul.f32 %v1177_v13, %v6281_v20  ;;  %v772_v36 = vsub.f32 1.5, %v771_v2  ;;  %v1215_v20 = vld [vmem:[%s8040_s2 + $0xa8] sm:$0xff]  ;;  %vm6753_vm2 = vmor %vm754_vm15, %vm755_vm13 }
 0x171   : > { %v1756_v18 = vadd.f32 %v1689_v0, %v1528_v32  ;;  %v1198_v32 = vld [vmem:[%s8040_s2 + $0x20] sm:$0xff]  ;;  %vm6757_vm3 = vmor %vm744_vm1, %vm745_vm14 }
 0x172   : > { %1563 = vperm.xlu0 %5042, %v1275_v51   ;;  %v1534_v51 = vmul.f32 %v5124_v43, %v6471_v8  ;;  %v739_v8 = vmul.f32 %v6636_v42, %v6563_v21  ;;  %v1274_v30 = vsub.f32 %v1198_v32, %v1236_v38  ;;  %v1214_v38 = vld [vmem:[%s8040_s2 + $0xa0] sm:$0xff]  ;;  %v773_v4 = vmul.f32 %v6560_v61, %v772_v36  ;;  %v1212_v32 = vld [vmem:[%s8040_s2 + $0x90] sm:$0xff]  ;;  %v1119_v21 = vld [vmem:[%s8039_s1 + $0x8] sm:$0xff] }
 0x173   : > { %v6606_v6 = vpack.c.bf16 %v1757_v11, %v1756_v18  ;;  %v750_v11 = vmul.f32 %v6619_v58, %v749_v50  ;;  %v1291_v50 = vsub.f32 %v1215_v20, %v1253_v52 }
 0x174   : > { %v6611_v45 = vpop.permute.xlu0 %1455  ;;  %v1762_v57 = vadd.f32 %v6539_v56, %v1534_v51  ;;  %v678_v56 = vmax.f32 %v640_v14, 0.0  ;;  %v740_v15 = vmul.f32 %v6636_v42, %v739_v8 }
 0x175   : > { %1330 = vperm.xlu2 %5041, %v1160_v35   ;;  %3332 = vmatpush.bf16.msra.mxu1 %v6606_v6  ;;  %v1137_v35 = vld [vmem:[%s8039_s1 + $0x98] sm:$0xff]  ;;  %v751_v53 = vmul.f32 0.5, %v750_v11 }
 0x176   : > { %1335 = vperm.xlu1 %5040, %v6522_v9   ;;  %v923_v9 = vmul.f32 %v6511_v19, %v922_v31  ;;  %v6704_v31 = vpop.eup %5115  ;;  %v6708_v62 = vadd.f32 1e-05, %v678_v56  ;;  %v6719_v17 = vmul.f32 %v1137_v35, %v937_v26  ;;  %v741_v55 = vmul.f32 0.5, %v740_v15 }
 0x177   : > { %v909_v23 = vmul.f32 %v6704_v31, %v6609_v48  ;;  %v752_v8 = vsub.f32 1.5, %v751_v53  ;;  %v777_v56 = vsel %vm776_vm12, %v6560_v61, %v773_v4  ;;  %v1196_v53 = vld [vmem:[%s8040_s2 + $0x10] sm:$0xff]  ;;  %vm915_vm4 = vweird.f32 %v6704_v31  ;;  %v1194_v48 = vld [vmem:[%s8040_s2] sm:$0xff] }
 0x178   : > { %v1724_v22 = vpop.permute.xlu1 %1723  ;;  %v6658_v12 = vpop.permute.xlu2 %1480  ;;  %v927_v28 = vsel %vm6677_vm8, %v6511_v19, %v923_v9  ;;  %v5126_v19 = vld [vmem:[%s8038_s0 + $0x68] sm:$0xff]  ;;  %5117 = vrsqrt.f32 %v6708_v62  ;;  %vm6802_vm6 = vmor %vm914_vm5, %vm915_vm4  ;;  %vm904_vm8 = vweird.f32 %v6708_v62 }
 0x179   : > { %v1763_v34 = vadd.f32 %v1724_v22, %v1535_v37  ;;  %v1511_v60 = vmul.f32 %v5126_v19, %v6595_v25  ;;  %v1174_v14 = vmul.f32 %v1136_v10, %v927_v28  ;;  %v1290_v25 = vsub.f32 %v1214_v38, %v1252_v41  ;;  %v1118_v10 = vld [vmem:[%s8039_s1] sm:$0xff]  ;;  %v5127_v41 = vld [vmem:[%s8038_s0 + $0xe8] sm:$0xff] }
 0x17a   : > { %1320 = vperm.xlu0 %5042, %v6660_v54   ;;  %v1527_v3 = vmul.f32 %v5127_v41, %v6611_v45  ;;  %v1234_v19 = vmul.f32 %v6660_v54, %v6261_v24  ;;  %v1197_v24 = vld [vmem:[%s8040_s2 + $0x18] sm:$0xff] }
 0x17b   : > { %v6681_v0 = vpack.c.bf16 %v1763_v34, %v1762_v57  ;;  %v1250_v22 = vmul.f32 %v1174_v14, %v6321_v27  ;;  %v742_v57 = vsub.f32 1.5, %v741_v55  ;;  %v910_v34 = vmul.f32 %v6704_v31, %v909_v23 }
 0x17c   : > { %v1599_v18 = vpop.permute.xlu0 %1598  ;;  %v1272_v54 = vsub.f32 %v1196_v53, %v1234_v19  ;;  %v1210_v19 = vld [vmem:[%s8040_s2 + $0x80] sm:$0xff] }
 0x17d   : > { %1415 = vperm.xlu2 %5041, %v1177_v13   ;;  %3631 = vmatpush.bf16.msra.mxu2 %v6681_v0  ;;  %v1738_v37 = vadd.f32 %v1599_v18, %v1510_v39  ;;  %v1288_v46 = vsub.f32 %v1212_v32, %v1250_v22  ;;  %v1121_v13 = vld [vmem:[%s8039_s1 + $0x18] sm:$0xff]  ;;  %v743_v11 = vmul.f32 %v6636_v42, %v742_v57  ;;  %v911_v33 = vmul.f32 0.5, %v910_v34 }
 0x17e   : > { %1558 = vperm.xlu1 %5040, %v1274_v30   ;;  %v6746_v2 = vpop.eup %5117  ;;  %v753_v18 = vmul.f32 %v6619_v58, %v752_v8  ;;  %v1159_v61 = vmul.f32 %v1121_v13, %v777_v56  ;;  %v1251_v22 = vmul.f32 %v6719_v17, %v6338_v59  ;;  %v1213_v32 = vld [vmem:[%s8040_s2 + $0x98] sm:$0xff] }
 0x17f   : > { %v899_v15 = vmul.f32 %v6746_v2, %v6708_v62  ;;  %v912_v35 = vsub.f32 1.5, %v911_v33  ;;  %v747_v28 = vsel %vm6757_vm3, %v6636_v42, %v743_v11  ;;  %vm905_vm7 = vweird.f32 %v6746_v2  ;;  %v1211_v33 = vld [vmem:[%s8040_s2 + $0x88] sm:$0xff]  ;;  %v1134_v62 = vld [vmem:[%s8039_s1 + $0x80] sm:$0xff] }
 0x180   : > { %v1451_v47 = vpop.permute.xlu1 %1450  ;;  %v1604_v29 = vpop.permute.xlu2 %1603  ;;  %v757_v5 = vsel %vm6753_vm2, %v6619_v58, %v753_v18  ;;  %v5128_v58 = vld [vmem:[%s8038_s0 + $0xe0] sm:$0xff]  ;;  %v1235_v45 = vmul.f32 %v1159_v61, %v6395_v63  ;;  %v1289_v13 = vsub.f32 %v1213_v32, %v1251_v22  ;;  %vm906_vm9 = vmor %vm904_vm8, %vm905_vm7  ;;  %v5136_v63 = vld [vmem:[%s8038_s0 + $0x108] sm:$0xff] }
 0x181   : > { %v1739_v43 = vadd.f32 %v1604_v29, %v1511_v60  ;;  %v1526_v39 = vmul.f32 %v5128_v58, %v1451_v47  ;;  %v900_v42 = vmul.f32 %v6746_v2, %v899_v15  ;;  %v6787_v36 = vmul.f32 %v1119_v21, %v757_v5  ;;  %v1195_v58 = vld [vmem:[%s8040_s2 + $0x8] sm:$0xff] }
 0x182   : > { %1405 = vperm.xlu0 %5042, %v6719_v17   ;;  %v1156_v29 = vmul.f32 %v1118_v10, %v747_v28  ;;  %v913_v38 = vmul.f32 %v6704_v31, %v912_v35 }
 0x183   : > { %v1770_v51 = vpack.c.bf16 %v1739_v43, %v1738_v37  ;;  %v901_v23 = vmul.f32 0.5, %v900_v42  ;;  %v1273_v43 = vsub.f32 %v1197_v24, %v1235_v45  ;;  %v1233_v41 = vmul.f32 %v6787_v36, %v6432_v7  ;;  %v5133_v7 = vld [vmem:[%s8038_s0 + $0xd8] sm:$0xff] }
 0x184   : > { %v1684_v9 = vpop.permute.xlu0 %1683  ;;  %v1232_v20 = vmul.f32 %v1156_v29, %v6440_v40  ;;  %v5129_v40 = vld [vmem:[%s8038_s0 + $0x110] sm:$0xff] }
 0x185   : > { %1638 = vperm.xlu2 %5041, %v1290_v25   ;;  %3039 = vmatpush.bf16.msra.mxu0 %v1770_v51  ;;  %v1755_v47 = vadd.f32 %v1684_v9, %v1527_v3  ;;  %v917_v25 = vsel %vm6802_vm6, %v6704_v31, %v913_v38  ;;  %v1532_v9 = vmul.f32 %v5129_v40, %v6658_v12  ;;  %v5130_v31 = vld [vmem:[%s8038_s0 + $0x118] sm:$0xff]  ;;  %v902_v4 = vsub.f32 1.5, %v901_v23  ;;  %v4842_v40 = vld [vmem:[%s6882_s14 + $0x10] sm:$0xf0] }
 0x186   : > { %5012 = vmatpush.bf16.msra.mxu3 %v1770_v51  ;;  %1643 = vperm.xlu1 %5040, %v1291_v50   ;;  %v1135_v51 = vld [vmem:[%s8039_s1 + $0x88] sm:$0xff]  ;;  %v1270_v34 = vsub.f32 %v1194_v48, %v1232_v20  ;;  %v1271_v42 = vsub.f32 %v1195_v58, %v1233_v41 }
 0x188   : > { %v1486_v27 = vpop.permute.xlu1 %1485  ;;  %v6739_v1 = vpop.permute.xlu2 %1708 }
 0x189   : > { %v1533_v50 = vmul.f32 %v5130_v31, %v1486_v27  ;;  %v1760_v12 = vadd.f32 %v6739_v1, %v1532_v9  ;;  %v903_v27 = vmul.f32 %v6746_v2, %v902_v4  ;;  %v5131_v1 = vld [vmem:[%s8038_s0 + $0x50] sm:$0xff] }
 0x18a   : > { %1628 = vperm.xlu0 %5042, %v1288_v46   ;;  %v1173_v46 = vmul.f32 %v1135_v51, %v917_v25  ;;  %v4107_v51 = vld [vmem:[%s6882_s14 + $0x8] sm:$0xf] }
 0x18b   : > { %v907_v35 = vsel %vm906_vm9, %v6746_v2, %v903_v27  ;;  %v5140_v27 = vld [vmem:[%s8038_s0 + $0x48] sm:$0xff] }
 0x18c   : > { %v6763_v26 = vpop.permute.xlu0 %1360  ;;  %v1249_v17 = vmul.f32 %v1173_v46, %v6501_v49  ;;  %v5132_v49 = vld [vmem:[%s8038_s0 + $0x58] sm:$0xff]  ;;  %v1172_v28 = vmul.f32 %v1134_v62, %v907_v35 }
 0x18d   : > { %1325 = vperm.xlu2 %5041, %v1159_v61   ;;  %v1508_v18 = vmul.f32 %v5131_v1, %v6763_v26 }
 0x18e   : > { %1400 = vperm.xlu1 %5040, %v1174_v14   ;;  %v1287_v15 = vsub.f32 %v1211_v33, %v1249_v17 }
 0x190   : > { %v1679_v60 = vpop.permute.xlu1 %1678  ;;  %v1366_v52 = vpop.permute.xlu2 %1365 }
 0x191   : > { %v1754_v14 = vadd.f32 %v1679_v60, %v1526_v39  ;;  %v1509_v61 = vmul.f32 %v5132_v49, %v1366_v52  ;;  %v1248_v39 = vmul.f32 %v1172_v28, %v6580_v16  ;;  %v5134_v16 = vld [vmem:[%s8038_s0 + $0xd0] sm:$0xff] }
 0x192   : > { %1315 = vperm.xlu0 %5042, %v6787_v36  }
 0x193   : > { %v6800_v55 = vpack.c.bf16 %v1755_v47, %v1754_v14  ;;  %v1286_v52 = vsub.f32 %v1210_v19, %v1248_v39 }
 0x194   : > { %v6806_v37 = vpop.permute.xlu0 %1445 }
 0x195   : > { %1548 = vperm.xlu2 %5041, %v1272_v54   ;;  %3333 = vmatpush.bf16.msra.mxu1 %v6800_v55  ;;  %v1525_v36 = vmul.f32 %v5133_v7, %v6806_v37  ;;  %v5135_v54 = vld [vmem:[%s8038_s0 + $0x100] sm:$0xff] }
 0x196   : > { %1553 = vperm.xlu1 %5040, %v1273_v43  }
 0x198   : > { %v1714_v8 = vpop.permute.xlu1 %1713  ;;  %v6828_v57 = vpop.permute.xlu2 %1470 }
 0x199   : > { %v1761_v56 = vadd.f32 %v1714_v8, %v1533_v50  ;;  %v1530_v23 = vmul.f32 %v5135_v54, %v6828_v57  ;;  %v4108_v50 = vor.u32 %v4842_v40, %v4107_v51  ;;  %v5137_v8 = vld [vmem:[%s8038_s0 + $0xc8] sm:$0xff] }
 0x19a   : > { %1538 = vperm.xlu0 %5042, %v1270_v34   ;;  %v5138_v34 = vld [vmem:[%s8038_s0 + $0xc0] sm:$0xff]  ;;  %v5145_v40 = vld [vmem:[%s8038_s0 + $0x28] sm:$0xff] }
 0x19b   : > { %v6834_v11 = vpack.c.bf16 %v1761_v56, %v1760_v12 }
 0x19c   : > { %v1589_v59 = vpop.permute.xlu0 %1588 }
 0x19d   : > { %1633 = vperm.xlu2 %5041, %v1289_v13   ;;  %3632 = vmatpush.bf16.msra.mxu2 %v6834_v11  ;;  %v1736_v5 = vadd.f32 %v1589_v59, %v1508_v18  ;;  %v5139_v59 = vld [vmem:[%s8038_s0 + $0x40] sm:$0xff] }
 0x19e   : > { %1310 = vperm.xlu1 %5040, %v1156_v29  }
 0x1a0   : > { %v1441_v30 = vpop.permute.xlu1 %1440  ;;  %v1594_v44 = vpop.permute.xlu2 %1593 }
 0x1a1   : > { %v1737_v21 = vadd.f32 %v1594_v44, %v1509_v61  ;;  %v1524_v53 = vmul.f32 %v5134_v16, %v1441_v30  ;;  %v4119_v30 = vld [vmem:[%s6882_s14 + $0x20] sm:$0xf]  ;;  %v4845_v44 = vld [vmem:[%s6882_s14 + $0x28] sm:$0xf0]  ;;  %v5143_v16 = vld [vmem:[%s8038_s0 + $0xb8] sm:$0xff] }
 0x1a2   : > { %1623 = vperm.xlu0 %5042, %v1287_v15   ;;  %v4120_v62 = vor.u32 %v4845_v44, %v4119_v30 }
 0x1a3   : > { %v1769_v26 = vpack.c.bf16 %v1737_v21, %v1736_v5 }
 0x1a4   : > { %v1674_v10 = vpop.permute.xlu0 %1673 }
 0x1a5   : > { %1390 = vperm.xlu2 %5041, %v1172_v28   ;;  %3040 = vmatpush.bf16.msra.mxu0 %v1769_v26  ;;  %v1753_v38 = vadd.f32 %v1674_v10, %v1525_v36  ;;  %v5141_v28 = vld [vmem:[%s8038_s0 + $0x38] sm:$0xff]  ;;  %v5142_v10 = vld [vmem:[%s8038_s0 + $0x30] sm:$0xff] }
 0x1a6   : > { %5013 = vmatpush.bf16.msra.mxu3 %v1769_v26  ;;  %1395 = vperm.xlu1 %5040, %v1173_v46  }
 0x1a8   : > { %v1476_v2 = vpop.permute.xlu1 %1475  ;;  %v1699_v3 = vpop.permute.xlu2 %1698 }
 0x1a9   : > { %v1531_v37 = vmul.f32 %v5136_v63, %v1476_v2  ;;  %v1758_v25 = vadd.f32 %v1699_v3, %v1530_v23 }
 0x1ac   : > { %v1351_v60 = vpop.permute.xlu0 %1350 }
 0x1ad   : > { %1543 = vperm.xlu2 %5041, %v1271_v42   ;;  %v1506_v17 = vmul.f32 %v5139_v59, %v1351_v60  ;;  %v4131_v60 = vld [vmem:[%s6882_s14 + $0x38] sm:$0xf]  ;;  %v5148_v59 = vld [vmem:[%s8038_s0 + $0xa8] sm:$0xff] }
 0x1ae   : > { %1618 = vperm.xlu1 %5040, %v1286_v52   ;;  %v4848_v52 = vld [vmem:[%s6882_s14 + $0x40] sm:$0xf0] }
 0x1af   : > { %v4132_v36 = vor.u32 %v4848_v52, %v4131_v60 }
 0x1b0   : > { %v1669_v45 = vpop.permute.xlu1 %1668  ;;  %v1356_v29 = vpop.permute.xlu2 %1355 }
 0x1b1   : > { %v1752_v47 = vadd.f32 %v1669_v45, %v1524_v53  ;;  %v1507_v33 = vmul.f32 %v5140_v27, %v1356_v29  ;;  %v5144_v45 = vld [vmem:[%s8038_s0 + $0xb0] sm:$0xff] }
 0x1b3   : > { %v6876_v14 = vpack.c.bf16 %v1753_v38, %v1752_v47 }
 0x1b4   : > { %v1436_v24 = vpop.permute.xlu0 %1435 }
 0x1b5   : > { %3334 = vmatpush.bf16.msra.mxu1 %v6876_v14  ;;  %v1523_v57 = vmul.f32 %v5137_v8, %v1436_v24 }
 0x1b8   : > { %v1704_v43 = vpop.permute.xlu1 %1703  ;;  %v1579_v20 = vpop.permute.xlu2 %1578 }
 0x1b9   : > { %v1759_v48 = vadd.f32 %v1704_v43, %v1531_v37  ;;  %v1734_v49 = vadd.f32 %v1579_v20, %v1506_v17  ;;  %v4143_v20 = vld [vmem:[%s6882_s14 + $0x50] sm:$0xf] }
 0x1bb   : > { %v6893_v9 = vpack.c.bf16 %v1759_v48, %v1758_v25  ;;  %v4851_v25 = vld [vmem:[%s6882_s14 + $0x58] sm:$0xf0] }
 0x1bc   : > { %v1659_v31 = vpop.permute.xlu0 %1658  ;;  %v4144_v51 = vor.u32 %v4851_v25, %v4143_v20  ;;  %v4615_v20 = vld [vmem:[%s6882_s14 + $0x408] sm:$0xf] }
 0x1bd   : > { %3633 = vmatpush.bf16.msra.mxu2 %v6893_v9 }
 0x1c0   : > { %v1431_v22 = vpop.permute.xlu1 %1430  ;;  %v1664_v4 = vpop.permute.xlu2 %1663  ;;  %4781 = vmatmul.msk.bf16.vlgmr.msra.gmra.mxu2 %vm2866_vm10, %v4108_v50  ;;  %v5146_v50 = vld [vmem:[%s8038_s0 + $0x20] sm:$0xff] }
 0x1c1   : > { %v1522_v32 = vmul.f32 %v5138_v34, %v1431_v22  ;;  %v1751_v12 = vadd.f32 %v1664_v4, %v1523_v57 }
 0x1c3   : > { %v1750_v46 = vadd.f32 %v1659_v31, %v1522_v32 }
 0x1c4   : > { %v1346_v56 = vpop.permute.xlu0 %1345 }
 0x1c5   : > { %v6903_v13 = vpack.c.bf16 %v1751_v12, %v1750_v46  ;;  %v1505_v26 = vmul.f32 %v5141_v28, %v1346_v56  ;;  %v5147_v12 = vld [vmem:[%s8038_s0 + $0xa0] sm:$0xff]  ;;  %v5150_v28 = vld [vmem:[%s8038_s0 + $0x90] sm:$0xff] }
 0x1c7   : > { %3335 = vmatpush.bf16.msra.mxu1 %v6903_v13 }
 0x1c8   : > { %v1584_v1 = vpop.permute.xlu1 %1583  ;;  %v1421_v18 = vpop.permute.xlu2 %1420 }
 0x1c9   : > { %v1735_v61 = vadd.f32 %v1584_v1, %v1507_v33  ;;  %v1520_v29 = vmul.f32 %v5144_v45, %v1421_v18 }
 0x1cb   : > { %v1768_v15 = vpack.c.bf16 %v1735_v61, %v1734_v49  ;;  %v4155_v49 = vld [vmem:[%s6882_s14 + $0x68] sm:$0xf]  ;;  %v4854_v61 = vld [vmem:[%s6882_s14 + $0x70] sm:$0xf0] }
 0x1cc   : > { %v1569_v35 = vpop.permute.xlu0 %1568  ;;  %v4156_v44 = vor.u32 %v4854_v61, %v4155_v49  ;;  %v4973_v61 = vld [vmem:[%s6882_s14 + $0x428] sm:$0xf0] }
 0x1cd   : > { %3041 = vmatpush.bf16.msra.mxu0 %v1768_v15  ;;  %5014 = vmatpush.bf16.msra.mxu3 %v1768_v15 }
 0x1d0   : > { %v1341_v5 = vpop.permute.xlu1 %1340  ;;  %v1574_v21 = vpop.permute.xlu2 %1573  ;;  %4782 = vmatmul.msk.bf16.gmra.mxu2 %vm2866_vm10, %v4120_v62 }
 0x1d1   : > { %v1504_v41 = vmul.f32 %v5142_v10, %v1341_v5  ;;  %v1733_v3 = vadd.f32 %v1574_v21, %v1505_v26  ;;  %v5149_v5 = vld [vmem:[%s8038_s0 + $0x98] sm:$0xff] }
 0x1d3   : > { %v1732_v2 = vadd.f32 %v1569_v35, %v1504_v41 }
 0x1d4   : > { %v1654_v58 = vpop.permute.xlu0 %1653 }
 0x1d5   : > { %v1767_v39 = vpack.c.bf16 %v1733_v3, %v1732_v2  ;;  %v5151_v3 = vld [vmem:[%s8038_s0 + $0x10] sm:$0xff] }
 0x1d7   : > { %3042 = vmatpush.bf16.msra.mxu0 %v1767_v39  ;;  %5015 = vmatpush.bf16.msra.mxu3 %v1767_v39  ;;  %v5152_v39 = vld [vmem:[%s8038_s0 + $0x18] sm:$0xff] }
 0x1d8   : > { %v1426_v19 = vpop.permute.xlu1 %1425  ;;  %v1331_v42 = vpop.permute.xlu2 %1330 }
 0x1d9   : > { %v1521_v53 = vmul.f32 %v5143_v16, %v1426_v19  ;;  %v1502_v22 = vmul.f32 %v5146_v50, %v1331_v42  ;;  %v4167_v16 = vld [vmem:[%s6882_s14 + $0x80] sm:$0xf] }
 0x1db   : > { %v1749_v24 = vadd.f32 %v1654_v58, %v1521_v53  ;;  %v4857_v53 = vld [vmem:[%s6882_s14 + $0x88] sm:$0xf0] }
 0x1dc   : > { %v1411_v7 = vpop.permute.xlu0 %1410 }
 0x1dd   : > { %v1518_v56 = vmul.f32 %v5147_v12, %v1411_v7 }
 0x1e0   : > { %v1649_v38 = vpop.permute.xlu1 %1648  ;;  %v1416_v47 = vpop.permute.xlu2 %1415  ;;  %4783 = vmatmul.msk.bf16.gmra.mxu2 %vm2866_vm10, %v4132_v36 }
 0x1e1   : > { %v1748_v54 = vadd.f32 %v1649_v38, %v1520_v29  ;;  %v1519_v17 = vmul.f32 %v5148_v59, %v1416_v47  ;;  %v4168_v29 = vor.u32 %v4857_v53, %v4167_v16  ;;  %v4850_v16 = vld [vmem:[%s6882_s14 + $0x50] sm:$0xf0] }
 0x1e3   : > { %v6930_v23 = vpack.c.bf16 %v1749_v24, %v1748_v54  ;;  %v5153_v24 = vld [vmem:[%s8038_s0 + $0x8] sm:$0xff] }
 0x1e4   : > { %v1564_v63 = vpop.permute.xlu0 %1563 }
 0x1e5   : > { %3336 = vmatpush.bf16.msra.mxu1 %v6930_v23 }
 0x1e8   : > { %v1336_v37 = vpop.permute.xlu1 %1335  ;;  %v1639_v43 = vpop.permute.xlu2 %1638 }
 0x1e9   : > { %v1503_v31 = vmul.f32 %v5145_v40, %v1336_v37  ;;  %v1746_v1 = vadd.f32 %v1639_v43, %v1518_v56  ;;  %v4099_v40 = vld [vmem:[%s6882_s14] sm:$0xf] }
 0x1eb   : > { %v1731_v57 = vadd.f32 %v1564_v63, %v1503_v31  ;;  %v5154_v63 = vld [vmem:[%s8038_s0] sm:$0xff]  ;;  %v4841_v31 = vld [vmem:[%s6882_s14 + $0x8] sm:$0xf0] }
 0x1ec   : > { %v1321_v48 = vpop.permute.xlu0 %1320 }
 0x1ed   : > { %v1500_v58 = vmul.f32 %v5151_v3, %v1321_v48  ;;  %v4123_v3 = vld [vmem:[%s6882_s14 + $0x30] sm:$0xf] }
 0x1f0   : > { %v1559_v4 = vpop.permute.xlu1 %1558  ;;  %v1326_v8 = vpop.permute.xlu2 %1325  ;;  %4784 = vmatmul.msk.bf16.gmra.mxu2 %vm2866_vm10, %v4144_v51  ;;  %v4970_v51 = vld [vmem:[%s6882_s14 + $0x410] sm:$0xf0] }
 0x1f1   : > { %v1730_v34 = vadd.f32 %v1559_v4, %v1502_v22  ;;  %v1501_v19 = vmul.f32 %v5152_v39, %v1326_v8  ;;  %v4616_v22 = vor.u32 %v4970_v51, %v4615_v20  ;;  %v4100_v4 = vor.u32 %v4841_v31, %v4099_v40  ;;  %v4203_v39 = vld [vmem:[%s6882_s14 + $0xc8] sm:$0xf]  ;;  %v4982_v20 = vld [vmem:[%s6882_s14 + $0x470] sm:$0xf0] }
 0x1f3   : > { %v1766_v32 = vpack.c.bf16 %v1731_v57, %v1730_v34  ;;  %v4179_v57 = vld [vmem:[%s6882_s14 + $0x98] sm:$0xf]  ;;  %v4860_v34 = vld [vmem:[%s6882_s14 + $0xa0] sm:$0xf0] }
 0x1f4   : > { %v1406_v46 = vpop.permute.xlu0 %1405 }
 0x1f5   : > { %3043 = vmatpush.bf16.msra.mxu0 %v1766_v32  ;;  %5016 = vmatpush.bf16.msra.mxu3 %v1766_v32  ;;  %v1517_v21 = vmul.f32 %v5149_v5, %v1406_v46  ;;  %v4180_v32 = vor.u32 %v4860_v34, %v4179_v57  ;;  %v5155_v46 = vld [vmem:[%s8038_s0 + $0x88] sm:$0xff]  ;;  %v4191_v5 = vld [vmem:[%s6882_s14 + $0xb0] sm:$0xf]  ;;  %v4852_v57 = vld [vmem:[%s6882_s14 + $0x64] sm:$0xf] }
 0x1f6   : > { %v4149_v34 = vld [vmem:[%s6882_s14 + $0x6c] sm:$0xf0] }
 0x1f8   : > { %v1644_v27 = vpop.permute.xlu1 %1643  ;;  %v1549_v33 = vpop.permute.xlu2 %1548 }
 0x1f9   : > { %v1747_v18 = vadd.f32 %v1644_v27, %v1519_v17  ;;  %v1728_v7 = vadd.f32 %v1549_v33, %v1500_v58  ;;  %v4840_v33 = vld [vmem:[%s6882_s14 + $0x4] sm:$0xf] }
 0x1fb   : > { %v6950_v30 = vpack.c.bf16 %v1747_v18, %v1746_v1  ;;  %v4101_v1 = vld [vmem:[%s6882_s14 + $0xc] sm:$0xf0]  ;;  %v4627_v18 = vld [vmem:[%s6882_s14 + $0x420] sm:$0xf] }
 0x1fc   : > { %v1629_v15 = vpop.permute.xlu0 %1628 }
 0x1fd   : > { %3337 = vmatpush.bf16.msra.mxu1 %v6950_v30 }
 0x200   : > { %v1401_v35 = vpop.permute.xlu1 %1400  ;;  %v1634_v62 = vpop.permute.xlu2 %1633  ;;  %4785 = vmatmul.msk.bf16.gmra.mxu2 %vm2866_vm10, %v4156_v44  ;;  %v4111_v44 = vld [vmem:[%s6882_s14 + $0x18] sm:$0xf] }
 0x201   : > { %v1516_v26 = vmul.f32 %v5150_v28, %v1401_v35  ;;  %v1745_v41 = vadd.f32 %v1634_v62, %v1517_v21  ;;  %v4104_v35 = vor.u32 %v4840_v33, %v4101_v1  ;;  %v4863_v21 = vld [vmem:[%s6882_s14 + $0xb8] sm:$0xf0] }
 0x202   : > { %v4192_v28 = vor.u32 %v4863_v21, %v4191_v5  ;;  %v4875_v33 = vld [vmem:[%s6882_s14 + $0x118] sm:$0xf0] }
 0x203   : > { %v1744_v10 = vadd.f32 %v1629_v15, %v1516_v26  ;;  %v4844_v15 = vld [vmem:[%s6882_s14 + $0x20] sm:$0xf0]  ;;  %v4113_v26 = vld [vmem:[%s6882_s14 + $0x24] sm:$0xf0] }
 0x204   : > { %v1316_v42 = vpop.permute.xlu0 %1315  ;;  %v4112_v62 = vor.u32 %v4844_v15, %v4111_v44  ;;  %v4687_v44 = vld [vmem:[%s6882_s14 + $0x498] sm:$0xf] }
 0x205   : > { %v6960_v2 = vpack.c.bf16 %v1745_v41, %v1744_v10  ;;  %v1499_v54 = vmul.f32 %v5153_v24, %v1316_v42  ;;  %v4639_v10 = vld [vmem:[%s6882_s14 + $0x438] sm:$0xf]  ;;  %v4976_v41 = vld [vmem:[%s6882_s14 + $0x440] sm:$0xf0] }
 0x207   : > { %3338 = vmatpush.bf16.msra.mxu1 %v6960_v2 }
 0x208   : > { %v1554_v60 = vpop.permute.xlu1 %1553  ;;  %v1391_v52 = vpop.permute.xlu2 %1390 }
 0x209   : > { %v1729_v36 = vadd.f32 %v1554_v60, %v1501_v19  ;;  %v4866_v19 = vld [vmem:[%s6882_s14 + $0xd0] sm:$0xf0]  ;;  %v4125_v60 = vld [vmem:[%s6882_s14 + $0x3c] sm:$0xf0] }
 0x20a   : > { %v4204_v42 = vor.u32 %v4866_v19, %v4203_v39  ;;  %v4183_v39 = vld [vmem:[%s6882_s14 + $0xa8] sm:$0xf]  ;;  %v4862_v19 = vld [vmem:[%s6882_s14 + $0xb0] sm:$0xf0] }
 0x20b   : > { %v1765_v45 = vpack.c.bf16 %v1729_v36, %v1728_v7  ;;  %v4979_v36 = vld [vmem:[%s6882_s14 + $0x458] sm:$0xf0] }
 0x20c   : > { %v1539_v43 = vpop.permute.xlu0 %1538 }
 0x20d   : > { %3044 = vmatpush.bf16.msra.mxu0 %v1765_v45  ;;  %5017 = vmatpush.bf16.msra.mxu3 %v1765_v45 }
 0x210   : > { %v1311_v38 = vpop.permute.xlu1 %1310  ;;  %v1544_v47 = vpop.permute.xlu2 %1543  ;;  %4786 = vmatmul.msk.bf16.gmra.mxu2 %vm2866_vm10, %v4168_v29 }
 0x211   : > { %v1498_v37 = vmul.f32 %v5154_v63, %v1311_v38  ;;  %v1727_v48 = vadd.f32 %v1544_v47, %v1499_v54  ;;  %v4869_v38 = vld [vmem:[%s6882_s14 + $0xe8] sm:$0xf0]  ;;  %v4137_v63 = vld [vmem:[%s6882_s14 + $0x54] sm:$0xf0] }
 0x212   : > { %v4849_v54 = vld [vmem:[%s6882_s14 + $0x4c] sm:$0xf] }
 0x213   : > { %v1726_v25 = vadd.f32 %v1539_v43, %v1498_v37  ;;  %v4663_v37 = vld [vmem:[%s6882_s14 + $0x468] sm:$0xf]  ;;  %v4140_v51 = vor.u32 %v4849_v54, %v4137_v63  ;;  %v4865_v54 = vld [vmem:[%s6882_s14 + $0xc8] sm:$0xf0] }
 0x214   : > { %v1624_v59 = vpop.permute.xlu0 %1623  ;;  %v4664_v40 = vor.u32 %v4982_v20, %v4663_v37 }
 0x215   : > { %v1764_v50 = vpack.c.bf16 %v1727_v48, %v1726_v25  ;;  %v4147_v25 = vld [vmem:[%s6882_s14 + $0x60] sm:$0xf]  ;;  %v4853_v48 = vld [vmem:[%s6882_s14 + $0x68] sm:$0xf0] }
 0x216   : > { %v4148_v31 = vor.u32 %v4853_v48, %v4147_v25  ;;  %v4275_v48 = vld [vmem:[%s6882_s14 + $0x158] sm:$0xf] }
 0x217   : > { %3045 = vmatpush.bf16.msra.mxu0 %v1764_v50  ;;  %5018 = vmatpush.bf16.msra.mxu3 %v1764_v50  ;;  %v4227_v50 = vld [vmem:[%s6882_s14 + $0xf8] sm:$0xf] }
 0x218   : > { %v1396_v8 = vpop.permute.xlu1 %1395 }
 0x219   : > { %v1515_v12 = vmul.f32 %v5155_v46, %v1396_v8 }
 0x21a   : > { %3261 = vmatmul.bf16.vlgmr.msra.gmra.mxu3 %v4616_v22  ;;  %3046 = vmatmul.bf16.vlgmr.msra.gmra.mxu0 %v4100_v4  ;;  %v4872_v22 = vld [vmem:[%s6882_s14 + $0x100] sm:$0xf0] }
 0x21b   : > { %5019 = vmatpush.bf16.msrb.mxu3 %v6606_v6  ;;  %v5156_v6 = vld [vmem:[%s8038_s0 + $0x80] sm:$0xff]  ;;  %v4228_v8 = vor.u32 %v4872_v22, %v4227_v50 }
 0x21c   : > { %v1514_v56 = vmul.f32 %v5156_v6, %v1391_v52  ;;  %v4651_v52 = vld [vmem:[%s6882_s14 + $0x450] sm:$0xf]  ;;  %v4159_v6 = vld [vmem:[%s6882_s14 + $0x78] sm:$0xf] }
 0x21d   : > { %v4652_v45 = vor.u32 %v4979_v36, %v4651_v52  ;;  %v4263_v52 = vld [vmem:[%s6882_s14 + $0x140] sm:$0xf]  ;;  %v4881_v36 = vld [vmem:[%s6882_s14 + $0x148] sm:$0xf0] }
 0x21f   : > { %5020 = vmatpush.bf16.msrb.mxu3 %v6800_v55  ;;  %v1743_v55 = vadd.f32 %v1624_v59, %v1515_v12  ;;  %v4985_v12 = vld [vmem:[%s6882_s14 + $0x488] sm:$0xf0]  ;;  %v4152_v59 = vor.u32 %v4852_v57, %v4149_v34  ;;  %v4197_v57 = vld [vmem:[%s6882_s14 + $0xcc] sm:$0xf0]  ;;  %v4723_v34 = vld [vmem:[%s6882_s14 + $0x4e0] sm:$0xf] }
 0x220   : > { %v1619_v17 = vpop.permute.xlu1 %1618  ;;  %4787 = vmatmul.msk.bf16.gmra.mxu2 %vm2866_vm10, %v4180_v32  ;;  %v4675_v32 = vld [vmem:[%s6882_s14 + $0x480] sm:$0xf] }
 0x221   : > { %v1742_v27 = vadd.f32 %v1619_v17, %v1514_v56  ;;  %v4856_v56 = vld [vmem:[%s6882_s14 + $0x80] sm:$0xf0]  ;;  %v4676_v17 = vor.u32 %v4985_v12, %v4675_v32  ;;  %v4997_v12 = vld [vmem:[%s6882_s14 + $0x4e8] sm:$0xf0] }
 0x223   : > { %5021 = vmatpush.bf16.msrb.mxu3 %v6876_v14  ;;  %v1772_v49 = vpack.c.bf16 %v1743_v55, %v1742_v27  ;;  %v4628_v14 = vor.u32 %v4973_v61, %v4627_v18  ;;  %v4160_v55 = vor.u32 %v4856_v56, %v4159_v6  ;;  %v4239_v27 = vld [vmem:[%s6882_s14 + $0x110] sm:$0xf]  ;;  %v4161_v61 = vld [vmem:[%s6882_s14 + $0x84] sm:$0xf0]  ;;  %v4207_v6 = vld [vmem:[%s6882_s14 + $0xd8] sm:$0xf] }
 0x224   : > { %v4240_v18 = vor.u32 %v4875_v33, %v4239_v27  ;;  %v4868_v56 = vld [vmem:[%s6882_s14 + $0xe0] sm:$0xf0]  ;;  %v4724_v33 = vor.u32 %v4997_v12, %v4723_v34 }
 0x225   : > { %3339 = vmatpush.bf16.msra.mxu1 %v1772_v49 }
 0x227   : > { %5022 = vmatpush.bf16.msrb.mxu3 %v6903_v13  ;;  %v4843_v13 = vld [vmem:[%s6882_s14 + $0x1c] sm:$0xf] }
 0x228   : > { %3340 = vmatmul.bf16.vlgmr.msra.gmra.mxu1 %v4104_v35  ;;  %v4116_v58 = vor.u32 %v4843_v13, %v4113_v26  ;;  %v4988_v35 = vld [vmem:[%s6882_s14 + $0x4a0] sm:$0xf0]  ;;  %v4251_v13 = vld [vmem:[%s6882_s14 + $0x128] sm:$0xf]  ;;  %v4878_v26 = vld [vmem:[%s6882_s14 + $0x130] sm:$0xf0] }
 0x229   : > { %v4688_v21 = vor.u32 %v4988_v35, %v4687_v44  ;;  %v4287_v44 = vld [vmem:[%s6882_s14 + $0x170] sm:$0xf]  ;;  %v4887_v35 = vld [vmem:[%s6882_s14 + $0x178] sm:$0xf0] }
 0x22a   : > { %3266 = vmatmul.bf16.gmra.mxu3 %v4628_v14  ;;  %3051 = vmatmul.bf16.gmra.mxu0 %v4112_v62  ;;  %v4171_v14 = vld [vmem:[%s6882_s14 + $0x90] sm:$0xf]  ;;  %v4859_v62 = vld [vmem:[%s6882_s14 + $0x98] sm:$0xf0] }
 0x22b   : > { %5023 = vmatpush.bf16.msrb.mxu3 %v6930_v23  ;;  %v4847_v23 = vld [vmem:[%s6882_s14 + $0x38] sm:$0xf0] }
 0x22f   : > { %5024 = vmatpush.bf16.msrb.mxu3 %v6950_v30  ;;  %v4640_v30 = vor.u32 %v4976_v41, %v4639_v10  ;;  %v4252_v41 = vor.u32 %v4878_v26, %v4251_v13  ;;  %v4867_v26 = vld [vmem:[%s6882_s14 + $0xdc] sm:$0xf] }
 0x230   : > { %4788 = vmatmul.msk.bf16.gmra.mxu2 %vm2866_vm10, %v4192_v28  ;;  %v4172_v28 = vor.u32 %v4859_v62, %v4171_v14  ;;  %v4288_v62 = vor.u32 %v4887_v35, %v4287_v44 }
 0x233   : > { %5025 = vmatpush.bf16.msrb.mxu3 %v6960_v2  ;;  %v4124_v2 = vor.u32 %v4847_v23, %v4123_v3  ;;  %v4858_v3 = vld [vmem:[%s6882_s14 + $0x94] sm:$0xf]  ;;  %v4173_v23 = vld [vmem:[%s6882_s14 + $0x9c] sm:$0xf0] }
 0x237   : > { %5026 = vmatpush.bf16.msrb.mxu3 %v1772_v49  ;;  %v4855_v49 = vld [vmem:[%s6882_s14 + $0x7c] sm:$0xf] }
 0x238   : > { %3345 = vmatmul.bf16.gmra.mxu1 %v4116_v58  ;;  %v4164_v5 = vor.u32 %v4855_v49, %v4161_v61  ;;  %v4699_v58 = vld [vmem:[%s6882_s14 + $0x4b0] sm:$0xf] }
 0x23a   : > { %3271 = vmatmul.bf16.gmra.mxu3 %v4640_v30  ;;  %3056 = vmatmul.bf16.gmra.mxu0 %v4124_v2  ;;  %v4991_v2 = vld [vmem:[%s6882_s14 + $0x4b8] sm:$0xf0] }
 0x23b   : > { %5027 = vmatpush.bf16.msra.mxu3 %v6681_v0  ;;  %v4846_v0 = vld [vmem:[%s6882_s14 + $0x34] sm:$0xf] }
 0x23c   : > { %v4128_v53 = vor.u32 %v4846_v0, %v4125_v60  ;;  %v4700_v0 = vor.u32 %v4991_v2, %v4699_v58  ;;  %v4184_v60 = vor.u32 %v4862_v19, %v4183_v39  ;;  %v5000_v58 = vld [vmem:[%s6882_s14 + $0x500] sm:$0xf0]  ;;  %v4219_v2 = vld [vmem:[%s6882_s14 + $0xf0] sm:$0xf]  ;;  %v4871_v39 = vld [vmem:[%s6882_s14 + $0xf8] sm:$0xf0] }
 0x23f   : > { %5028 = vmatpush.bf16.msra.mxu3 %v6834_v11  ;;  %v4135_v11 = vld [vmem:[%s6882_s14 + $0x48] sm:$0xf] }
 0x240   : > { %4789 = vmatmul.msk.bf16.gmra.mxu2 %vm2866_vm10, %v4204_v42  ;;  %v4136_v29 = vor.u32 %v4850_v16, %v4135_v11  ;;  %v4176_v42 = vor.u32 %v4858_v3, %v4173_v23  ;;  %v4264_v16 = vor.u32 %v4881_v36, %v4263_v52  ;;  %v4735_v3 = vld [vmem:[%s6882_s14 + $0x4f8] sm:$0xf]  ;;  %v4220_v52 = vor.u32 %v4871_v39, %v4219_v2 }
 0x243   : > { %5029 = vmatpush.bf16.msra.mxu3 %v6893_v9  ;;  %v7022_v7 = vpop.f32.mrf.mxu2  ;;  %v4215_v9 = vld [vmem:[%s6882_s14 + $0xe0] sm:$0xf] }
 0x244   : > { %v4216_v24 = vor.u32 %v4869_v38, %v4215_v9  ;;  %v4994_v38 = vld [vmem:[%s6882_s14 + $0x4d0] sm:$0xf0] }
 0x248   : > { %3350 = vmatmul.bf16.gmra.mxu1 %v4128_v53  ;;  %v4861_v53 = vld [vmem:[%s6882_s14 + $0xac] sm:$0xf] }
 0x24a   : > { %3276 = vmatmul.bf16.gmra.mxu3 %v4652_v45  ;;  %3061 = vmatmul.bf16.gmra.mxu0 %v4136_v29  ;;  %v4185_v45 = vld [vmem:[%s6882_s14 + $0xb4] sm:$0xf0]  ;;  %v4711_v29 = vld [vmem:[%s6882_s14 + $0x4c8] sm:$0xf] }
 0x24b   : > { %v7029_v47 = vpop.f32.mrf.mxu2  ;;  %v4188_v63 = vor.u32 %v4861_v53, %v4185_v45  ;;  %v4712_v37 = vor.u32 %v4994_v38, %v4711_v29  ;;  %v4299_v53 = vld [vmem:[%s6882_s14 + $0x188] sm:$0xf]  ;;  %v4890_v45 = vld [vmem:[%s6882_s14 + $0x190] sm:$0xf0] }
 0x24c   : > { %v4300_v38 = vor.u32 %v4890_v45, %v4299_v53 }
 0x250   : > { %4790 = vmatmul.msk.bf16.gmra.mxu2 %vm2866_vm10, %v4216_v24  ;;  %v4195_v24 = vld [vmem:[%s6882_s14 + $0xc0] sm:$0xf] }
 0x251   : > { %v4196_v20 = vor.u32 %v4865_v54, %v4195_v24 }
 0x253   : > { %v7035_v43 = vpop.f32.mrf.mxu2 }
 0x258   : > { %3355 = vmatmul.bf16.gmra.mxu1 %v4140_v51  ;;  %v4884_v51 = vld [vmem:[%s6882_s14 + $0x160] sm:$0xf0] }
 0x25a   : > { %3281 = vmatmul.bf16.gmra.mxu3 %v4664_v40  ;;  %3066 = vmatmul.bf16.gmra.mxu0 %v4148_v31  ;;  %v4276_v31 = vor.u32 %v4884_v51, %v4275_v48  ;;  %v4747_v48 = vld [vmem:[%s6882_s14 + $0x510] sm:$0xf] }
 0x25b   : > { %v7042_v4 = vpop.f32.mrf.mxu2 }
 0x260   : > { %4791 = vmatmul.msk.bf16.gmra.mxu2 %vm2866_vm10, %v4228_v8  ;;  %v4864_v8 = vld [vmem:[%s6882_s14 + $0xc4] sm:$0xf] }
 0x263   : > { %v7048_v46 = vpop.f32.mrf.mxu2 }
 0x268   : > { %3360 = vmatmul.bf16.gmra.mxu1 %v4152_v59  ;;  %v4200_v59 = vor.u32 %v4864_v8, %v4197_v57  ;;  %v4874_v8 = vld [vmem:[%s6882_s14 + $0x110] sm:$0xf0] }
 0x26a   : > { %3286 = vmatmul.bf16.gmra.mxu3 %v4676_v17  ;;  %3071 = vmatmul.bf16.gmra.mxu0 %v4160_v55 }
 0x26b   : > { %v7055_v1 = vpop.f32.mrf.mxu2 }
 0x270   : > { %4792 = vmatmul.msk.bf16.gmra.mxu2 %vm2866_vm10, %v4240_v18  ;;  %v4208_v18 = vor.u32 %v4868_v56, %v4207_v6 }
 0x273   : > { %v7061_v15 = vpop.f32.mrf.mxu2 }
 0x278   : > { %3365 = vmatmul.bf16.gmra.mxu1 %v4164_v5 }
 0x27a   : > { %3291 = vmatmul.bf16.gmra.mxu3 %v4688_v21  ;;  %3076 = vmatmul.bf16.gmra.mxu0 %v4172_v28 }
 0x27b   : > { %v7068_v10 = vpop.f32.mrf.mxu2 }
 0x280   : > { %4793 = vmatmul.msk.bf16.gmra.mxu2 %vm2866_vm10, %v4252_v41  ;;  %v4209_v41 = vld [vmem:[%s6882_s14 + $0xe4] sm:$0xf0] }
 0x281   : > { %v4212_v19 = vor.u32 %v4867_v26, %v4209_v41  ;;  %v5006_v26 = vld [vmem:[%s6882_s14 + $0x530] sm:$0xf0]  ;;  %v4243_v41 = vld [vmem:[%s6882_s14 + $0x120] sm:$0xf] }
 0x283   : > { %v7074_v30 = vpop.f32.mrf.mxu2 }
 0x288   : > { %3370 = vmatmul.bf16.gmra.mxu1 %v4176_v42 }
 0x28a   : > { %3296 = vmatmul.bf16.gmra.mxu3 %v4700_v0  ;;  %3081 = vmatmul.bf16.gmra.mxu0 %v4184_v60  ;;  %v4736_v60 = vor.u32 %v5000_v58, %v4735_v3  ;;  %v4877_v3 = vld [vmem:[%s6882_s14 + $0x128] sm:$0xf0] }
 0x28b   : > { %v7081_v11 = vpop.f32.mrf.mxu2 }
 0x290   : > { %4794 = vmatmul.msk.bf16.gmra.mxu2 %vm2866_vm10, %v4264_v16 }
 0x293   : > { %v7087_v9 = vpop.f32.mrf.mxu2 }
 0x297   : > { %v3047_v25 = vpop.f32.mrf.mxu0 }
 0x298   : > { %3375 = vmatmul.bf16.gmra.mxu1 %v4188_v63 }
 0x29a   : > { %3301 = vmatmul.bf16.gmra.mxu3 %v4712_v37  ;;  %3086 = vmatmul.bf16.gmra.mxu0 %v4196_v20  ;;  %v4870_v20 = vld [vmem:[%s6882_s14 + $0xf4] sm:$0xf] }
 0x29b   : > { %v7094_v40 = vpop.f32.mrf.mxu2 }
 0x29d   : > { %v7096_v50 = vpop.f32.mrf.mxu3 }
 0x29e   : > { %8101 = vst [vmem:[#allocation2_spill] sm:$0xff] %v7096_v50 }
 0x29f   : > { %v3049_v22 = vpop.f32.mrf.mxu0 }
 0x2a0   : > { %4795 = vmatmul.msk.bf16.gmra.mxu2 %vm2866_vm10, %v4276_v31  ;;  %v5003_v31 = vld [vmem:[%s6882_s14 + $0x518] sm:$0xf0] }
 0x2a1   : > { %v4748_v6 = vor.u32 %v5003_v31, %v4747_v48  ;;  %v5009_v48 = vld [vmem:[%s6882_s14 + $0x548] sm:$0xf0]  ;;  %v4255_v31 = vld [vmem:[%s6882_s14 + $0x138] sm:$0xf] }
 0x2a3   : > { %v7102_v32 = vpop.f32.mrf.mxu2 }
 0x2a5   : > { %v7108_v17 = vpop.f32.mrf.mxu3  ;;  %v3341_v55 = vpop.f32.mrf.mxu1 }
 0x2a6   : > { %8102 = vst [vmem:[#allocation3_spill] sm:$0xff] %v7108_v17  ;;  %v3342_v27 = vadd.f32 %v3341_v55, %v3047_v25  ;;  %v4221_v25 = vld [vmem:[%s6882_s14 + $0xfc] sm:$0xf0]  ;;  %v4947_v17 = vld [vmem:[%s6882_s14 + $0x358] sm:$0xf0] }
 0x2a7   : > { %v3052_v49 = vpop.f32.mrf.mxu0  ;;  %v4224_v57 = vor.u32 %v4870_v20, %v4221_v25  ;;  %v4771_v20 = vld [vmem:[%s6882_s14 + $0x540] sm:$0xf] }
 0x2a8   : > { %v3636_v61 = vadd.f32 %v7022_v7, %v3342_v27  ;;  %3380 = vmatmul.bf16.gmra.mxu1 %v4200_v59  ;;  %v4311_v27 = vld [vmem:[%s6882_s14 + $0x1a0] sm:$0xf] }
 0x2aa   : > { %3920 = vst.msk [vmem:[%s7113_s18] sm:$0xff] %vm243_vm0, %v3636_v61  ;;  %3306 = vmatmul.bf16.gmra.mxu3 %v4724_v33  ;;  %3091 = vmatmul.bf16.gmra.mxu0 %v4208_v18  ;;  %v4893_v33 = vld [vmem:[%s6882_s14 + $0x1a8] sm:$0xf0] }
 0x2ab   : > { %v7120_v14 = vpop.f32.mrf.mxu2 }
 0x2ad   : > { %v7122_v5 = vpop.f32.mrf.mxu3  ;;  %v3343_v21 = vpop.f32.mrf.mxu1 }
 0x2ae   : > { %v3344_v7 = vadd.f32 %v3343_v21, %v3049_v22  ;;  %v4231_v22 = vld [vmem:[%s6882_s14 + $0x108] sm:$0xf]  ;;  %v4873_v21 = vld [vmem:[%s6882_s14 + $0x10c] sm:$0xf] }
 0x2af   : > { %v3054_v28 = vpop.f32.mrf.mxu0  ;;  %v4232_v56 = vor.u32 %v4874_v8, %v4231_v22  ;;  %v4880_v22 = vld [vmem:[%s6882_s14 + $0x140] sm:$0xf0] }
 0x2b0   : > { %v3638_v13 = vadd.f32 %v7029_v47, %v3344_v7  ;;  %4796 = vmatmul.msk.bf16.gmra.mxu2 %vm2866_vm10, %v4288_v62  ;;  %v4233_v7 = vld [vmem:[%s6882_s14 + $0x114] sm:$0xf0] }
 0x2b1   : > { %v4236_v58 = vor.u32 %v4873_v21, %v4233_v7  ;;  %v4879_v21 = vld [vmem:[%s6882_s14 + $0x13c] sm:$0xf]  ;;  %v4257_v7 = vld [vmem:[%s6882_s14 + $0x144] sm:$0xf0] }
 0x2b2   : > { %3921 = vst.msk [vmem:[%s7113_s18 + $0x8] sm:$0xff] %vm243_vm0, %v3638_v13 }
 0x2b3   : > { %v7131_v23 = vpop.f32.mrf.mxu2 }
 0x2b5   : > { %v7136_v42 = vpop.f32.mrf.mxu3  ;;  %v3346_v0 = vpop.f32.mrf.mxu1 }
 0x2b6   : > { %v3347_v47 = vadd.f32 %v3346_v0, %v3052_v49  ;;  %v4312_v49 = vor.u32 %v4893_v33, %v4311_v27  ;;  %v4244_v0 = vor.u32 %v4877_v3, %v4243_v41  ;;  %v4899_v27 = vld [vmem:[%s6882_s14 + $0x1d8] sm:$0xf0]  ;;  %v4617_v41 = vld [vmem:[%s6882_s14 + $0x414] sm:$0xf0]  ;;  %v4267_v3 = vld [vmem:[%s6882_s14 + $0x150] sm:$0xf] }
 0x2b7   : > { %v3057_v36 = vpop.f32.mrf.mxu0 }
 0x2b8   : > { %v3641_v16 = vadd.f32 %v7035_v43, %v3347_v47  ;;  %3385 = vmatmul.bf16.gmra.mxu1 %v4212_v19 }
 0x2ba   : > { %3922 = vst.msk [vmem:[%s7113_s18 + $0x10] sm:$0xff] %vm243_vm0, %v3641_v16  ;;  %3311 = vmatmul.bf16.gmra.mxu3 %v4736_v60  ;;  %3096 = vmatmul.bf16.gmra.mxu0 %v4220_v52  ;;  %v4323_v52 = vld [vmem:[%s6882_s14 + $0x1b8] sm:$0xf] }
 0x2bb   : > { %v7143_v29 = vpop.f32.mrf.mxu2 }
 0x2bd   : > { %v7145_v24 = vpop.f32.mrf.mxu3  ;;  %v3348_v54 = vpop.f32.mrf.mxu1 }
 0x2be   : > { %v3349_v43 = vadd.f32 %v3348_v54, %v3054_v28  ;;  %v4759_v28 = vld [vmem:[%s6882_s14 + $0x528] sm:$0xf] }
 0x2bf   : > { %v3059_v63 = vpop.f32.mrf.mxu0  ;;  %v4760_v19 = vor.u32 %v5006_v26, %v4759_v28  ;;  %v4969_v28 = vld [vmem:[%s6882_s14 + $0x40c] sm:$0xf] }
 0x2c0   : > { %v3643_v37 = vadd.f32 %v7042_v4, %v3349_v43  ;;  %4797 = vmatmul.msk.bf16.gmra.mxu2 %vm2866_vm10, %v4300_v38 }
 0x2c2   : > { %3923 = vst.msk [vmem:[%s7113_s18 + $0x18] sm:$0xff] %vm243_vm0, %v3643_v37  ;;  %v4245_v37 = vld [vmem:[%s6882_s14 + $0x12c] sm:$0xf0] }
 0x2c3   : > { %v7154_v51 = vpop.f32.mrf.mxu2 }
 0x2c5   : > { %v7159_v34 = vpop.f32.mrf.mxu3  ;;  %v3351_v12 = vpop.f32.mrf.mxu1 }
 0x2c6   : > { %v3352_v4 = vadd.f32 %v3351_v12, %v3057_v36  ;;  %v4896_v36 = vld [vmem:[%s6882_s14 + $0x1c0] sm:$0xf0] }
 0x2c7   : > { %v3062_v59 = vpop.f32.mrf.mxu0  ;;  %v4324_v53 = vor.u32 %v4896_v36, %v4323_v52  ;;  %v4347_v36 = vld [vmem:[%s6882_s14 + $0x1e8] sm:$0xf] }
 0x2c8   : > { %v3646_v55 = vadd.f32 %v7048_v46, %v3352_v4  ;;  %3390 = vmatmul.bf16.gmra.mxu1 %v4224_v57  ;;  %v4772_v4 = vor.u32 %v5009_v48, %v4771_v20  ;;  %v4882_v20 = vld [vmem:[%s6882_s14 + $0x154] sm:$0xf]  ;;  %v4269_v48 = vld [vmem:[%s6882_s14 + $0x15c] sm:$0xf0] }
 0x2ca   : > { %3924 = vst.msk [vmem:[%s7113_s18 + $0x20] sm:$0xff] %vm243_vm0, %v3646_v55  ;;  %3316 = vmatmul.bf16.gmra.mxu3 %v4748_v6  ;;  %3101 = vmatmul.bf16.gmra.mxu0 %v4232_v56  ;;  %v4256_v6 = vor.u32 %v4880_v22, %v4255_v31  ;;  %v4335_v55 = vld [vmem:[%s6882_s14 + $0x1d0] sm:$0xf]  ;;  %v4972_v31 = vld [vmem:[%s6882_s14 + $0x424] sm:$0xf] }
 0x2cb   : > { %v7166_v18 = vpop.f32.mrf.mxu2 }
 0x2cd   : > { %v7168_v61 = vpop.f32.mrf.mxu3  ;;  %v3353_v44 = vpop.f32.mrf.mxu1 }
 0x2ce   : > { %v3354_v46 = vadd.f32 %v3353_v44, %v3059_v63  ;;  %v4876_v63 = vld [vmem:[%s6882_s14 + $0x124] sm:$0xf] }
 0x2cf   : > { %v3064_v35 = vpop.f32.mrf.mxu0  ;;  %v4248_v8 = vor.u32 %v4876_v63, %v4245_v37 }
 0x2d0   : > { %v3648_v62 = vadd.f32 %v7055_v1, %v3354_v46  ;;  %4798 = vmatmul.msk.bf16.gmra.mxu2 %vm2866_vm10, %v4312_v49  ;;  %v4336_v49 = vor.u32 %v4899_v27, %v4335_v55 }
 0x2d2   : > { %3925 = vst.msk [vmem:[%s7113_s18 + $0x28] sm:$0xff] %vm243_vm0, %v3648_v62 }
 0x2d3   : > { %v7177_v13 = vpop.f32.mrf.mxu2 }
 0x2d5   : > { %v7182_v2 = vpop.f32.mrf.mxu3  ;;  %v3356_v39 = vpop.f32.mrf.mxu1 }
 0x2d6   : > { %v3357_v1 = vadd.f32 %v3356_v39, %v3062_v59  ;;  %v4260_v39 = vor.u32 %v4879_v21, %v4257_v7 }
 0x2d7   : > { %v3067_v47 = vpop.f32.mrf.mxu0 }
 0x2d8   : > { %v3651_v60 = vadd.f32 %v7061_v15, %v3357_v1  ;;  %3395 = vmatmul.bf16.gmra.mxu1 %v4236_v58  ;;  %v4883_v58 = vld [vmem:[%s6882_s14 + $0x158] sm:$0xf0] }
 0x2da   : > { %3926 = vst.msk [vmem:[%s7113_s18 + $0x30] sm:$0xff] %vm243_vm0, %v3651_v60  ;;  %3321 = vmatmul.bf16.gmra.mxu3 %v4760_v19  ;;  %3106 = vmatmul.bf16.gmra.mxu0 %v4244_v0  ;;  %v4620_v0 = vor.u32 %v4969_v28, %v4617_v41 }
 0x2db   : > { %v7189_v16 = vpop.f32.mrf.mxu2 }
 0x2dd   : > { %v7191_v45 = vpop.f32.mrf.mxu3  ;;  %v3358_v38 = vpop.f32.mrf.mxu1 }
 0x2de   : > { %v3359_v15 = vadd.f32 %v3358_v38, %v3064_v35 }
 0x2df   : > { %v3069_v54 = vpop.f32.mrf.mxu0 }
 0x2e0   : > { %v3653_v43 = vadd.f32 %v7068_v10, %v3359_v15  ;;  %4799 = vmatmul.msk.bf16.gmra.mxu2 %vm2866_vm10, %v4324_v53  ;;  %v4902_v53 = vld [vmem:[%s6882_s14 + $0x1f0] sm:$0xf0] }
 0x2e1   : > { %v4348_v15 = vor.u32 %v4902_v53, %v4347_v36 }
 0x2e2   : > { %3927 = vst.msk [vmem:[%s7113_s18 + $0x38] sm:$0xff] %vm243_vm0, %v3653_v43 }
 0x2e3   : > { %v7200_v25 = vpop.f32.mrf.mxu2 }
 0x2e5   : > { %v7205_v57 = vpop.f32.mrf.mxu3  ;;  %v3361_v12 = vpop.f32.mrf.mxu1 }
 0x2e6   : > { %v3362_v10 = vadd.f32 %v3361_v12, %v3067_v47  ;;  %v4268_v47 = vor.u32 %v4883_v58, %v4267_v3  ;;  %v4279_v12 = vld [vmem:[%s6882_s14 + $0x168] sm:$0xf]  ;;  %v4885_v3 = vld [vmem:[%s6882_s14 + $0x16c] sm:$0xf]  ;;  %v4281_v58 = vld [vmem:[%s6882_s14 + $0x174] sm:$0xf0] }
 0x2e7   : > { %v3072_v56 = vpop.f32.mrf.mxu0 }
 0x2e8   : > { %v3656_v59 = vadd.f32 %v7074_v30, %v3362_v10  ;;  %3400 = vmatmul.bf16.gmra.mxu1 %v4248_v8  ;;  %v4629_v8 = vld [vmem:[%s6882_s14 + $0x42c] sm:$0xf0]  ;;  %v4886_v10 = vld [vmem:[%s6882_s14 + $0x170] sm:$0xf0] }
 0x2e9   : > { %v4280_v55 = vor.u32 %v4886_v10, %v4279_v12 }
 0x2ea   : > { %3928 = vst.msk [vmem:[%s7113_s18 + $0x40] sm:$0xff] %vm243_vm0, %v3656_v59  ;;  %3326 = vmatmul.bf16.gmra.mxu3 %v4772_v4  ;;  %3111 = vmatmul.bf16.gmra.mxu0 %v4256_v6  ;;  %v4272_v4 = vor.u32 %v4882_v20, %v4269_v48  ;;  %v4632_v59 = vor.u32 %v4972_v31, %v4629_v8 }
 0x2eb   : > { %v7212_v33 = vpop.f32.mrf.mxu2 }
 0x2ed   : > { %v7214_v44 = vpop.f32.mrf.mxu3  ;;  %v3363_v46 = vpop.f32.mrf.mxu1 }
 0x2ee   : > { %v3364_v30 = vadd.f32 %v3363_v46, %v3069_v54  ;;  %v4359_v46 = vld [vmem:[%s6882_s14 + $0x200] sm:$0xf] }
 0x2ef   : > { %v3074_v35 = vpop.f32.mrf.mxu0 }
 0x2f0   : > { %v3658_v62 = vadd.f32 %v7081_v11, %v3364_v30  ;;  %4800 = vmatmul.msk.bf16.gmra.mxu2 %vm2866_vm10, %v4336_v49  ;;  %v4905_v30 = vld [vmem:[%s6882_s14 + $0x208] sm:$0xf0] }
 0x2f2   : > { %3929 = vst.msk [vmem:[%s7113_s18 + $0x48] sm:$0xff] %vm243_vm0, %v3658_v62  ;;  %v4360_v62 = vor.u32 %v4905_v30, %v4359_v46 }
 0x2f3   : > { %v7223_v26 = vpop.f32.mrf.mxu2 }
 0x2f5   : > { %v7228_v1 = vpop.f32.mrf.mxu3  ;;  %v3366_v19 = vpop.f32.mrf.mxu1 }
 0x2f6   : > { %v3367_v11 = vadd.f32 %v3366_v19, %v3072_v56 }
 0x2f7   : > { %v3077_v60 = vpop.f32.mrf.mxu0 }
 0x2f8   : > { %v3661_v52 = vadd.f32 %v7087_v9, %v3367_v11  ;;  %3405 = vmatmul.bf16.gmra.mxu1 %v4260_v39  ;;  %v4975_v39 = vld [vmem:[%s6882_s14 + $0x43c] sm:$0xf]  ;;  %v4641_v11 = vld [vmem:[%s6882_s14 + $0x444] sm:$0xf0] }
 0x2f9   : > { %v4644_v53 = vor.u32 %v4975_v39, %v4641_v11 }
 0x2fa   : > { %3930 = vst.msk [vmem:[%s7113_s18 + $0x50] sm:$0xff] %vm243_vm0, %v3661_v52  ;;  %3555 = vmatmul.bf16.vlgmr.msrb.gmra.mxu3 %v4620_v0  ;;  %3116 = vmatmul.bf16.gmra.mxu0 %v4268_v47  ;;  %v4291_v0 = vld [vmem:[%s6882_s14 + $0x180] sm:$0xf]  ;;  %v4889_v47 = vld [vmem:[%s6882_s14 + $0x188] sm:$0xf0] }
 0x2fb   : > { %v7235_v38 = vpop.f32.mrf.mxu2 }
 0x2fd   : > { %v7237_v54 = vpop.f32.mrf.mxu3  ;;  %v3368_v43 = vpop.f32.mrf.mxu1 }
 0x2fe   : > { %v3369_v9 = vadd.f32 %v3368_v43, %v3074_v35 }
 0x2ff   : > { %v3079_v63 = vpop.f32.mrf.mxu0 }
 0x300   : > { %v3663_v37 = vadd.f32 %v7094_v40, %v3369_v9  ;;  %4801 = vmatmul.msk.bf16.gmra.mxu2 %vm2866_vm10, %v4348_v15  ;;  %v4292_v15 = vor.u32 %v4889_v47, %v4291_v0 }
 0x302   : > { %3931 = vst.msk [vmem:[%s7113_s18 + $0x58] sm:$0xff] %vm243_vm0, %v3663_v37  ;;  %v4908_v37 = vld [vmem:[%s6882_s14 + $0x220] sm:$0xf0] }
 0x303   : > { %v7246_v22 = vpop.f32.mrf.mxu2 }
 0x305   : > { %v7251_v6 = vpop.f32.mrf.mxu3  ;;  %v3371_v56 = vpop.f32.mrf.mxu1 }
 0x306   : > { %v3372_v40 = vadd.f32 %v3371_v56, %v3077_v60  ;;  %v4284_v60 = vor.u32 %v4885_v3, %v4281_v58  ;;  %v4293_v56 = vld [vmem:[%s6882_s14 + $0x18c] sm:$0xf0]  ;;  %v4911_v58 = vld [vmem:[%s6882_s14 + $0x238] sm:$0xf0] }
 0x307   : > { %v3082_v27 = vpop.f32.mrf.mxu0  ;;  %v4383_v3 = vld [vmem:[%s6882_s14 + $0x230] sm:$0xf] }
 0x308   : > { %v3666_v49 = vadd.f32 %v7102_v32, %v3372_v40  ;;  %3410 = vmatmul.bf16.gmra.mxu1 %v4272_v4  ;;  %v4888_v4 = vld [vmem:[%s6882_s14 + $0x184] sm:$0xf]  ;;  %v4978_v40 = vld [vmem:[%s6882_s14 + $0x454] sm:$0xf]  ;;  %v4384_v11 = vor.u32 %v4911_v58, %v4383_v3  ;;  %v4677_v58 = vld [vmem:[%s6882_s14 + $0x48c] sm:$0xf0] }
 0x309   : > { %v4296_v46 = vor.u32 %v4888_v4, %v4293_v56 }
 0x30a   : > { %3932 = vst.msk [vmem:[%s7113_s18 + $0x60] sm:$0xff] %vm243_vm0, %v3666_v49  ;;  %3560 = vmatmul.bf16.gmra.mxu3 %v4632_v59  ;;  %3121 = vmatmul.bf16.gmra.mxu0 %v4280_v55  ;;  %v4653_v55 = vld [vmem:[%s6882_s14 + $0x45c] sm:$0xf0]  ;;  %v4892_v49 = vld [vmem:[%s6882_s14 + $0x1a0] sm:$0xf0] }
 0x30b   : > { %v7258_v35 = vpop.f32.mrf.mxu2 }
 0x30d   : > { %v7260_v21 = vpop.f32.mrf.mxu3  ;;  %v3373_v7 = vpop.f32.mrf.mxu1 }
 0x30e   : > { %v3374_v32 = vadd.f32 %v3373_v7, %v3079_v63  ;;  %v4371_v63 = vld [vmem:[%s6882_s14 + $0x218] sm:$0xf]  ;;  %v4656_v7 = vor.u32 %v4978_v40, %v4653_v55  ;;  %v4395_v40 = vld [vmem:[%s6882_s14 + $0x248] sm:$0xf]  ;;  %v4914_v55 = vld [vmem:[%s6882_s14 + $0x250] sm:$0xf0] }
 0x30f   : > { %v3084_v28 = vpop.f32.mrf.mxu0  ;;  %v4372_v48 = vor.u32 %v4908_v37, %v4371_v63  ;;  %v4315_v63 = vld [vmem:[%s6882_s14 + $0x1b0] sm:$0xf]  ;;  %v4895_v37 = vld [vmem:[%s6882_s14 + $0x1b8] sm:$0xf0] }
 0x310   : > { %v3668_v41 = vadd.f32 %v7120_v14, %v3374_v32  ;;  %4802 = vmatmul.msk.bf16.gmra.mxu2 %vm2866_vm10, %v4360_v62 }
 0x312   : > { %3933 = vst.msk [vmem:[%s7113_s18 + $0x68] sm:$0xff] %vm243_vm0, %v3668_v41 }
 0x313   : > { %v7269_v19 = vpop.f32.mrf.mxu2 }
 0x315   : > { %v7274_v52 = vpop.f32.mrf.mxu3  ;;  %v3376_v36 = vpop.f32.mrf.mxu1 }
 0x316   : > { %v3377_v14 = vadd.f32 %v3376_v36, %v3082_v27  ;;  %v4303_v27 = vld [vmem:[%s6882_s14 + $0x198] sm:$0xf] }
 0x317   : > { %v3087_v43 = vpop.f32.mrf.mxu0  ;;  %v4304_v32 = vor.u32 %v4892_v49, %v4303_v27  ;;  %v4396_v49 = vor.u32 %v4914_v55, %v4395_v40  ;;  %v4329_v40 = vld [vmem:[%s6882_s14 + $0x1d4] sm:$0xf0]  ;;  %v4987_v55 = vld [vmem:[%s6882_s14 + $0x49c] sm:$0xf] }
 0x318   : > { %v3671_v9 = vadd.f32 %v7131_v23, %v3377_v14  ;;  %3415 = vmatmul.bf16.gmra.mxu1 %v4284_v60  ;;  %v4891_v14 = vld [vmem:[%s6882_s14 + $0x19c] sm:$0xf] }
 0x31a   : > { %3934 = vst.msk [vmem:[%s7113_s18 + $0x70] sm:$0xff] %vm243_vm0, %v3671_v9  ;;  %3565 = vmatmul.bf16.gmra.mxu3 %v4644_v53  ;;  %3126 = vmatmul.bf16.gmra.mxu0 %v4292_v15  ;;  %v4305_v53 = vld [vmem:[%s6882_s14 + $0x1a4] sm:$0xf0]  ;;  %v4981_v15 = vld [vmem:[%s6882_s14 + $0x46c] sm:$0xf] }
 0x31b   : > { %v7281_v20 = vpop.f32.mrf.mxu2  ;;  %v4665_v9 = vld [vmem:[%s6882_s14 + $0x474] sm:$0xf0] }
 0x31d   : > { %v7283_v31 = vpop.f32.mrf.mxu3  ;;  %v3378_v8 = vpop.f32.mrf.mxu1 }
 0x31e   : > { %v3379_v23 = vadd.f32 %v3378_v8, %v3084_v28 }
 0x31f   : > { %v3089_v12 = vpop.f32.mrf.mxu0 }
 0x320   : > { %v3673_v10 = vadd.f32 %v7143_v29, %v3379_v23  ;;  %4803 = vmatmul.msk.bf16.gmra.mxu2 %vm2866_vm10, %v4372_v48  ;;  %v4308_v48 = vor.u32 %v4891_v14, %v4305_v53 }
 0x322   : > { %3935 = vst.msk [vmem:[%s7113_s18 + $0x78] sm:$0xff] %vm243_vm0, %v3673_v10  ;;  %v4316_v10 = vor.u32 %v4895_v37, %v4315_v63  ;;  %v4407_v63 = vld [vmem:[%s6882_s14 + $0x260] sm:$0xf]  ;;  %v4917_v37 = vld [vmem:[%s6882_s14 + $0x268] sm:$0xf0] }
 0x323   : > { %v7292_v59 = vpop.f32.mrf.mxu2 }
 0x325   : > { %v7297_v30 = vpop.f32.mrf.mxu3  ;;  %v3381_v62 = vpop.f32.mrf.mxu1 }
 0x326   : > { %v3382_v29 = vadd.f32 %v3381_v62, %v3087_v43 }
 0x327   : > { %v3092_v28 = vpop.f32.mrf.mxu0 }
 0x328   : > { %v3676_v41 = vadd.f32 %v7154_v51, %v3382_v29  ;;  %3420 = vmatmul.bf16.gmra.mxu1 %v4296_v46 }
 0x32a   : > { %3936 = vst.msk [vmem:[%s7113_s18 + $0x80] sm:$0xff] %vm243_vm0, %v3676_v41  ;;  %3570 = vmatmul.bf16.gmra.mxu3 %v4656_v7  ;;  %3131 = vmatmul.bf16.gmra.mxu0 %v4304_v32  ;;  %v4894_v32 = vld [vmem:[%s6882_s14 + $0x1b4] sm:$0xf]  ;;  %v4984_v41 = vld [vmem:[%s6882_s14 + $0x484] sm:$0xf] }
 0x32b   : > { %v7304_v39 = vpop.f32.mrf.mxu2  ;;  %v4680_v14 = vor.u32 %v4984_v41, %v4677_v58 }
 0x32d   : > { %v7306_v0 = vpop.f32.mrf.mxu3  ;;  %v3383_v47 = vpop.f32.mrf.mxu1 }
 0x32e   : > { %v3384_v51 = vadd.f32 %v3383_v47, %v3089_v12  ;;  %v4668_v12 = vor.u32 %v4981_v15, %v4665_v9  ;;  %v4898_v47 = vld [vmem:[%s6882_s14 + $0x1d0] sm:$0xf0] }
 0x32f   : > { %v3094_v60 = vpop.f32.mrf.mxu0 }
 0x330   : > { %v3678_v36 = vadd.f32 %v7166_v18, %v3384_v51  ;;  %4804 = vmatmul.msk.bf16.gmra.mxu2 %vm2866_vm10, %v4384_v11  ;;  %v4327_v11 = vld [vmem:[%s6882_s14 + $0x1c8] sm:$0xf] }
 0x331   : > { %v4328_v53 = vor.u32 %v4898_v47, %v4327_v11 }
 0x332   : > { %3937 = vst.msk [vmem:[%s7113_s18 + $0x88] sm:$0xff] %vm243_vm0, %v3678_v36 }
 0x333   : > { %v7315_v43 = vpop.f32.mrf.mxu2 }
 0x335   : > { %v7320_v8 = vpop.f32.mrf.mxu3  ;;  %v3386_v23 = vpop.f32.mrf.mxu1 }
 0x336   : > { %8103 = vst [vmem:[#allocation4_spill] sm:$0xff] %v7320_v8  ;;  %v3387_v18 = vadd.f32 %v3386_v23, %v3092_v28  ;;  %v4317_v28 = vld [vmem:[%s6882_s14 + $0x1bc] sm:$0xf0]  ;;  %v4408_v23 = vor.u32 %v4917_v37, %v4407_v63  ;;  %v4900_v37 = vld [vmem:[%s6882_s14 + $0x1e4] sm:$0xf] }
 0x337   : > { %v3097_v4 = vpop.f32.mrf.mxu0  ;;  %v4320_v51 = vor.u32 %v4894_v32, %v4317_v28 }
 0x338   : > { %v3681_v56 = vadd.f32 %v7177_v13, %v3387_v18  ;;  %3425 = vmatmul.bf16.gmra.mxu1 %v4308_v48 }
 0x33a   : > { %3938 = vst.msk [vmem:[%s7113_s18 + $0x90] sm:$0xff] %vm243_vm0, %v3681_v56  ;;  %3575 = vmatmul.bf16.gmra.mxu3 %v4668_v12  ;;  %3136 = vmatmul.bf16.gmra.mxu0 %v4316_v10  ;;  %v4897_v56 = vld [vmem:[%s6882_s14 + $0x1cc] sm:$0xf] }
 0x33b   : > { %v7327_v27 = vpop.f32.mrf.mxu2  ;;  %v4332_v32 = vor.u32 %v4897_v56, %v4329_v40  ;;  %v4351_v56 = vld [vmem:[%s6882_s14 + $0x1f8] sm:$0xf]  ;;  %v4904_v40 = vld [vmem:[%s6882_s14 + $0x200] sm:$0xf0] }
 0x33d   : > { %v7329_v46 = vpop.f32.mrf.mxu3  ;;  %v3388_v62 = vpop.f32.mrf.mxu1 }
 0x33e   : > { %8104 = vst [vmem:[#allocation5_spill] sm:$0xff] %v7329_v46  ;;  %v3389_v13 = vadd.f32 %v3388_v62, %v3094_v60  ;;  %v4689_v62 = vld [vmem:[%s6882_s14 + $0x4a4] sm:$0xf0]  ;;  %v4953_v46 = vld [vmem:[%s6882_s14 + $0x388] sm:$0xf0] }
 0x33f   : > { %v3099_v29 = vpop.f32.mrf.mxu0  ;;  %v4692_v41 = vor.u32 %v4987_v55, %v4689_v62 }
 0x340   : > { %v3683_v7 = vadd.f32 %v7189_v16, %v3389_v13  ;;  %4805 = vmatmul.msk.bf16.gmra.mxu2 %vm2866_vm10, %v4396_v49  ;;  %v4339_v13 = vld [vmem:[%s6882_s14 + $0x1e0] sm:$0xf] }
 0x342   : > { %3939 = vst.msk [vmem:[%s7113_s18 + $0x98] sm:$0xff] %vm243_vm0, %v3683_v7  ;;  %v4901_v7 = vld [vmem:[%s6882_s14 + $0x1e8] sm:$0xf0] }
 0x343   : > { %v7338_v3 = vpop.f32.mrf.mxu2  ;;  %v4340_v58 = vor.u32 %v4901_v7, %v4339_v13  ;;  %v4352_v7 = vor.u32 %v4904_v40, %v4351_v56 }
 0x345   : > { %v7343_v60 = vpop.f32.mrf.mxu3  ;;  %v3391_v36 = vpop.f32.mrf.mxu1 }
 0x346   : > { %8105 = vst [vmem:[#allocation6_spill] sm:$0xff] %v7343_v60  ;;  %v3392_v16 = vadd.f32 %v3391_v36, %v3097_v4  ;;  %v4920_v36 = vld [vmem:[%s6882_s14 + $0x280] sm:$0xf0] }
 0x347   : > { %v3102_v15 = vpop.f32.mrf.mxu0 }
 0x348   : > { %v3686_v9 = vadd.f32 %v7200_v25, %v3392_v16  ;;  %3430 = vmatmul.bf16.gmra.mxu1 %v4320_v51  ;;  %v4419_v51 = vld [vmem:[%s6882_s14 + $0x278] sm:$0xf] }
 0x34a   : > { %3940 = vst.msk [vmem:[%s7113_s18 + $0xa0] sm:$0xff] %vm243_vm0, %v3686_v9  ;;  %3580 = vmatmul.bf16.gmra.mxu3 %v4680_v14  ;;  %3141 = vmatmul.bf16.gmra.mxu0 %v4328_v53  ;;  %v4420_v14 = vor.u32 %v4920_v36, %v4419_v51 }
 0x34b   : > { %v7350_v48 = vpop.f32.mrf.mxu2 }
 0x34d   : > { %v7352_v18 = vpop.f32.mrf.mxu3  ;;  %v3393_v12 = vpop.f32.mrf.mxu1 }
 0x34e   : > { %8106 = vst [vmem:[#allocation7_spill] sm:$0xff] %v7352_v18  ;;  %v3394_v25 = vadd.f32 %v3393_v12, %v3099_v29  ;;  %v4990_v12 = vld [vmem:[%s6882_s14 + $0x4b4] sm:$0xf]  ;;  %v4944_v18 = vld [vmem:[%s6882_s14 + $0x340] sm:$0xf0] }
 0x34f   : > { %v3104_v10 = vpop.f32.mrf.mxu0 }
 0x350   : > { %v3688_v4 = vadd.f32 %v7212_v33, %v3394_v25  ;;  %4806 = vmatmul.msk.bf16.gmra.mxu2 %vm2866_vm10, %v4408_v23  ;;  %v4341_v23 = vld [vmem:[%s6882_s14 + $0x1ec] sm:$0xf0] }
 0x351   : > { %v4344_v55 = vor.u32 %v4900_v37, %v4341_v23  ;;  %v4713_v23 = vld [vmem:[%s6882_s14 + $0x4d4] sm:$0xf0] }
 0x352   : > { %3941 = vst.msk [vmem:[%s7113_s18 + $0xa8] sm:$0xff] %vm243_vm0, %v3688_v4  ;;  %v4701_v4 = vld [vmem:[%s6882_s14 + $0x4bc] sm:$0xf0] }
 0x353   : > { %v7361_v49 = vpop.f32.mrf.mxu2  ;;  %v4704_v13 = vor.u32 %v4990_v12, %v4701_v4  ;;  %v4363_v12 = vld [vmem:[%s6882_s14 + $0x210] sm:$0xf]  ;;  %v4907_v4 = vld [vmem:[%s6882_s14 + $0x218] sm:$0xf0] }
 0x355   : > { %v7366_v29 = vpop.f32.mrf.mxu3  ;;  %v3396_v28 = vpop.f32.mrf.mxu1 }
 0x356   : > { %8107 = vst [vmem:[#allocation8_spill] sm:$0xff] %v7366_v29  ;;  %v3397_v33 = vadd.f32 %v3396_v28, %v3102_v15 }
 0x357   : > { %v3107_v11 = vpop.f32.mrf.mxu0 }
 0x358   : > { %v3691_v47 = vadd.f32 %v7223_v26, %v3397_v33  ;;  %3435 = vmatmul.bf16.gmra.mxu1 %v4332_v32  ;;  %v4431_v33 = vld [vmem:[%s6882_s14 + $0x290] sm:$0xf] }
 0x35a   : > { %3942 = vst.msk [vmem:[%s7113_s18 + $0xb0] sm:$0xff] %vm243_vm0, %v3691_v47  ;;  %3585 = vmatmul.bf16.gmra.mxu3 %v4692_v41  ;;  %3146 = vmatmul.bf16.gmra.mxu0 %v4340_v58  ;;  %v4923_v41 = vld [vmem:[%s6882_s14 + $0x298] sm:$0xf0] }
 0x35b   : > { %v7373_v16 = vpop.f32.mrf.mxu2 }
 0x35d   : > { %v7375_v53 = vpop.f32.mrf.mxu3  ;;  %v3398_v15 = vpop.f32.mrf.mxu1 }
 0x35e   : > { %8108 = vst [vmem:[#allocation9_spill] sm:$0xff] %v7375_v53  ;;  %v3399_v26 = vadd.f32 %v3398_v15, %v3104_v10  ;;  %v4903_v15 = vld [vmem:[%s6882_s14 + $0x1fc] sm:$0xf]  ;;  %v4941_v53 = vld [vmem:[%s6882_s14 + $0x328] sm:$0xf0] }
 0x35f   : > { %v3109_v9 = vpop.f32.mrf.mxu0 }
 0x360   : > { %v3693_v63 = vadd.f32 %v7235_v38, %v3399_v26  ;;  %4807 = vmatmul.msk.bf16.gmra.mxu2 %vm2866_vm10, %v4420_v14  ;;  %v4353_v26 = vld [vmem:[%s6882_s14 + $0x204] sm:$0xf0] }
 0x361   : > { %v4356_v56 = vor.u32 %v4903_v15, %v4353_v26  ;;  %v4365_v15 = vld [vmem:[%s6882_s14 + $0x21c] sm:$0xf0]  ;;  %v4996_v26 = vld [vmem:[%s6882_s14 + $0x4e4] sm:$0xf] }
 0x362   : > { %3943 = vst.msk [vmem:[%s7113_s18 + $0xb8] sm:$0xff] %vm243_vm0, %v3693_v63  ;;  %v4993_v63 = vld [vmem:[%s6882_s14 + $0x4cc] sm:$0xf] }
 0x363   : > { %v7384_v25 = vpop.f32.mrf.mxu2 }
 0x365   : > { %v7389_v10 = vpop.f32.mrf.mxu3  ;;  %v3401_v62 = vpop.f32.mrf.mxu1 }
 0x366   : > { %8109 = vst [vmem:[#allocation10_spill] sm:$0xff] %v7389_v10  ;;  %v3402_v38 = vadd.f32 %v3401_v62, %v3107_v11  ;;  %v4432_v11 = vor.u32 %v4923_v41, %v4431_v33  ;;  %v4364_v62 = vor.u32 %v4907_v4, %v4363_v12  ;;  %v4375_v12 = vld [vmem:[%s6882_s14 + $0x228] sm:$0xf]  ;;  %v4910_v4 = vld [vmem:[%s6882_s14 + $0x230] sm:$0xf0] }
 0x367   : > { %v3112_v32 = vpop.f32.mrf.mxu0 }
 0x368   : > { %v3696_v28 = vadd.f32 %v7246_v22, %v3402_v38  ;;  %3440 = vmatmul.bf16.gmra.mxu1 %v4344_v55  ;;  %v4716_v55 = vor.u32 %v4993_v63, %v4713_v23  ;;  %v4725_v23 = vld [vmem:[%s6882_s14 + $0x4ec] sm:$0xf0] }
 0x36a   : > { %3944 = vst.msk [vmem:[%s7113_s18 + $0xc0] sm:$0xff] %vm243_vm0, %v3696_v28  ;;  %3590 = vmatmul.bf16.gmra.mxu3 %v4704_v13  ;;  %3151 = vmatmul.bf16.gmra.mxu0 %v4352_v7  ;;  %v4443_v7 = vld [vmem:[%s6882_s14 + $0x2a8] sm:$0xf]  ;;  %v4926_v28 = vld [vmem:[%s6882_s14 + $0x2b0] sm:$0xf0] }
 0x36b   : > { %v7396_v58 = vpop.f32.mrf.mxu2  ;;  %v4444_v33 = vor.u32 %v4926_v28, %v4443_v7  ;;  %v4455_v7 = vld [vmem:[%s6882_s14 + $0x2c0] sm:$0xf]  ;;  %v4929_v28 = vld [vmem:[%s6882_s14 + $0x2c8] sm:$0xf0] }
 0x36d   : > { %v7398_v47 = vpop.f32.mrf.mxu3  ;;  %v3403_v51 = vpop.f32.mrf.mxu1 }
 0x36e   : > { %8110 = vst [vmem:[#allocation11_spill] sm:$0xff] %v7398_v47  ;;  %v3404_v22 = vadd.f32 %v3403_v51, %v3109_v9  ;;  %v4938_v47 = vld [vmem:[%s6882_s14 + $0x310] sm:$0xf0] }
 0x36f   : > { %v3114_v36 = vpop.f32.mrf.mxu0 }
 0x370   : > { %v3698_v14 = vadd.f32 %v7258_v35, %v3404_v22  ;;  %4808 = vmatmul.msk.bf16.gmra.mxu2 %vm2866_vm10, %v4432_v11 }
 0x372   : > { %3945 = vst.msk [vmem:[%s7113_s18 + $0xc8] sm:$0xff] %vm243_vm0, %v3698_v14  ;;  %v4906_v14 = vld [vmem:[%s6882_s14 + $0x214] sm:$0xf] }
 0x373   : > { %v7407_v37 = vpop.f32.mrf.mxu2 }
 0x375   : > { %v7412_v9 = vpop.f32.mrf.mxu3  ;;  %v3406_v40 = vpop.f32.mrf.mxu1 }
 0x376   : > { %8111 = vst [vmem:[#allocation12_spill] sm:$0xff] %v7412_v9  ;;  %v3407_v35 = vadd.f32 %v3406_v40, %v3112_v32 }
 0x377   : > { %v3117_v38 = vpop.f32.mrf.mxu0 }
 0x378   : > { %v3701_v13 = vadd.f32 %v7269_v19, %v3407_v35  ;;  %3445 = vmatmul.bf16.gmra.mxu1 %v4356_v56  ;;  %v4368_v56 = vor.u32 %v4906_v14, %v4365_v15  ;;  %v4728_v35 = vor.u32 %v4996_v26, %v4725_v23  ;;  %v4909_v15 = vld [vmem:[%s6882_s14 + $0x22c] sm:$0xf]  ;;  %v4377_v26 = vld [vmem:[%s6882_s14 + $0x234] sm:$0xf0]  ;;  %v4999_v23 = vld [vmem:[%s6882_s14 + $0x4fc] sm:$0xf] }
 0x37a   : > { %3946 = vst.msk [vmem:[%s7113_s18 + $0xd0] sm:$0xff] %vm243_vm0, %v3701_v13  ;;  %3595 = vmatmul.bf16.gmra.mxu3 %v4716_v55  ;;  %3156 = vmatmul.bf16.gmra.mxu0 %v4364_v62  ;;  %v4376_v55 = vor.u32 %v4910_v4, %v4375_v12  ;;  %v4737_v4 = vld [vmem:[%s6882_s14 + $0x504] sm:$0xf0] }
 0x37b   : > { %v7419_v32 = vpop.f32.mrf.mxu2 }
 0x37d   : > { %v3408_v41 = vpop.f32.mrf.mxu1  ;;  %v7421_v11 = vpop.f32.mrf.mxu3 }
 0x37e   : > { %8112 = vst [vmem:[#allocation13_spill] sm:$0xff] %v7421_v11  ;;  %v3409_v19 = vadd.f32 %v3408_v41, %v3114_v36  ;;  %v4950_v11 = vld [vmem:[%s6882_s14 + $0x370] sm:$0xf0] }
 0x37f   : > { %v3119_v51 = vpop.f32.mrf.mxu0 }
 0x380   : > { %v3703_v22 = vadd.f32 %v7281_v20, %v3409_v19  ;;  %4809 = vmatmul.msk.bf16.gmra.mxu2 %vm2866_vm10, %v4444_v33  ;;  %v4456_v33 = vor.u32 %v4929_v28, %v4455_v7 }
 0x382   : > { %3947 = vst.msk [vmem:[%s7113_s18 + $0xd8] sm:$0xff] %vm243_vm0, %v3703_v22 }
 0x383   : > { %v7430_v63 = vpop.f32.mrf.mxu2 }
 0x385   : > { %v3411_v36 = vpop.f32.mrf.mxu1  ;;  %v7435_v40 = vpop.f32.mrf.mxu3 }
 0x386   : > { %8113 = vst [vmem:[#allocation14_spill] sm:$0xff] %v7435_v40  ;;  %v3412_v20 = vadd.f32 %v3411_v36, %v3117_v38  ;;  %v4913_v36 = vld [vmem:[%s6882_s14 + $0x248] sm:$0xf0] }
 0x387   : > { %v3122_v62 = vpop.f32.mrf.mxu0 }
 0x388   : > { %v3706_v13 = vadd.f32 %v7292_v59, %v3412_v20  ;;  %3450 = vmatmul.bf16.gmra.mxu1 %v4368_v56  ;;  %v4387_v56 = vld [vmem:[%s6882_s14 + $0x240] sm:$0xf]  ;;  %v4380_v20 = vor.u32 %v4909_v15, %v4377_v26 }
 0x38a   : > { %3948 = vst.msk [vmem:[%s7113_s18 + $0xe0] sm:$0xff] %vm243_vm0, %v3706_v13  ;;  %3600 = vmatmul.bf16.gmra.mxu3 %v4728_v35  ;;  %3161 = vmatmul.bf16.gmra.mxu0 %v4376_v55  ;;  %v4740_v55 = vor.u32 %v4999_v23, %v4737_v4  ;;  %v4388_v13 = vor.u32 %v4913_v36, %v4387_v56  ;;  %v4912_v4 = vld [vmem:[%s6882_s14 + $0x244] sm:$0xf]  ;;  %v4389_v56 = vld [vmem:[%s6882_s14 + $0x24c] sm:$0xf0] }
 0x38b   : > { %v7442_v38 = vpop.f32.mrf.mxu2  ;;  %v5002_v36 = vld [vmem:[%s6882_s14 + $0x514] sm:$0xf] }
 0x38d   : > { %v3413_v41 = vpop.f32.mrf.mxu1  ;;  %v7444_v19 = vpop.f32.mrf.mxu3 }
 0x38e   : > { %v3414_v59 = vadd.f32 %v3413_v41, %v3119_v51  ;;  %v4932_v41 = vld [vmem:[%s6882_s14 + $0x2e0] sm:$0xf0] }
 0x38f   : > { %v3124_v22 = vpop.f32.mrf.mxu0 }
 0x390   : > { %v3708_v14 = vadd.f32 %v7304_v39, %v3414_v59  ;;  %4810 = vmatmul.msk.bf16.gmra.mxu2 %vm2866_vm10, %v4456_v33  ;;  %v4467_v33 = vld [vmem:[%s6882_s14 + $0x2d8] sm:$0xf] }
 0x391   : > { %v4468_v59 = vor.u32 %v4932_v41, %v4467_v33 }
 0x392   : > { %3949 = vst.msk [vmem:[%s7113_s18 + $0xe8] sm:$0xff] %vm243_vm0, %v3708_v14 }
 0x393   : > { %v7453_v12 = vpop.f32.mrf.mxu2 }
 0x395   : > { %v3416_v51 = vpop.f32.mrf.mxu1  ;;  %v7458_v35 = vpop.f32.mrf.mxu3 }
 0x396   : > { %v3417_v39 = vadd.f32 %v3416_v51, %v3122_v62  ;;  %v4749_v51 = vld [vmem:[%s6882_s14 + $0x51c] sm:$0xf0] }
 0x397   : > { %v3127_v7 = vpop.f32.mrf.mxu0  ;;  %v4752_v33 = vor.u32 %v5002_v36, %v4749_v51 }
 0x398   : > { %v3711_v28 = vadd.f32 %v7315_v43, %v3417_v39  ;;  %3455 = vmatmul.bf16.gmra.mxu1 %v4380_v20  ;;  %v4399_v39 = vld [vmem:[%s6882_s14 + $0x258] sm:$0xf] }
 0x39a   : > { %3950 = vst.msk [vmem:[%s7113_s18 + $0xf0] sm:$0xff] %vm243_vm0, %v3711_v28  ;;  %3605 = vmatmul.bf16.gmra.mxu3 %v4740_v55  ;;  %3166 = vmatmul.bf16.gmra.mxu0 %v4388_v13  ;;  %v4916_v55 = vld [vmem:[%s6882_s14 + $0x260] sm:$0xf0]  ;;  %v4392_v13 = vor.u32 %v4912_v4, %v4389_v56 }
 0x39b   : > { %v7465_v62 = vpop.f32.mrf.mxu2  ;;  %v4400_v41 = vor.u32 %v4916_v55, %v4399_v39  ;;  %v4915_v55 = vld [vmem:[%s6882_s14 + $0x25c] sm:$0xf] }
 0x39d   : > { %v3418_v14 = vpop.f32.mrf.mxu1  ;;  %v7467_v15 = vpop.f32.mrf.mxu3 }
 0x39e   : > { %v3419_v43 = vadd.f32 %v3418_v14, %v3124_v22 }
 0x39f   : > { %v3129_v26 = vpop.f32.mrf.mxu0 }
 0x3a0   : > { %v3713_v23 = vadd.f32 %v7327_v27, %v3419_v43  ;;  %4811 = vmatmul.msk.bf16.gmra.mxu2 %vm2866_vm10, %v4468_v59  ;;  %v4479_v43 = vld [vmem:[%s6882_s14 + $0x2f0] sm:$0xf] }
 0x3a2   : > { %3951 = vst.msk [vmem:[%s7113_s18 + $0xf8] sm:$0xff] %vm243_vm0, %v3713_v23  ;;  %v4935_v23 = vld [vmem:[%s6882_s14 + $0x2f8] sm:$0xf0] }
 0x3a3   : > { %v7476_v20 = vpop.f32.mrf.mxu2  ;;  %v4480_v4 = vor.u32 %v4935_v23, %v4479_v43 }
 0x3a5   : > { %v3421_v22 = vpop.f32.mrf.mxu1  ;;  %v7481_v28 = vpop.f32.mrf.mxu3 }
 0x3a6   : > { %v3422_v27 = vadd.f32 %v3421_v22, %v3127_v7  ;;  %v5005_v22 = vld [vmem:[%s6882_s14 + $0x52c] sm:$0xf] }
 0x3a7   : > { %v3132_v59 = vpop.f32.mrf.mxu0 }
 0x3a8   : > { %v3716_v14 = vadd.f32 %v7338_v3, %v3422_v27  ;;  %3460 = vmatmul.bf16.gmra.mxu1 %v4392_v13  ;;  %v4401_v13 = vld [vmem:[%s6882_s14 + $0x264] sm:$0xf0] }
 0x3a9   : > { %v4404_v43 = vor.u32 %v4915_v55, %v4401_v13 }
 0x3aa   : > { %3952 = vst.msk [vmem:[%s7113_s18 + $0x100] sm:$0xff] %vm243_vm0, %v3716_v14  ;;  %3610 = vmatmul.bf16.gmra.mxu3 %v4752_v33  ;;  %3171 = vmatmul.bf16.gmra.mxu0 %v4400_v41  ;;  %v4761_v33 = vld [vmem:[%s6882_s14 + $0x534] sm:$0xf0]  ;;  %v4411_v41 = vld [vmem:[%s6882_s14 + $0x270] sm:$0xf] }
 0x3ab   : > { %v7488_v7 = vpop.f32.mrf.mxu2  ;;  %v4919_v14 = vld [vmem:[%s6882_s14 + $0x278] sm:$0xf0] }
 0x3ad   : > { %v3423_v56 = vpop.f32.mrf.mxu1  ;;  %v7490_v36 = vpop.f32.mrf.mxu3 }
 0x3ae   : > { %v3424_v3 = vadd.f32 %v3423_v56, %v3129_v26  ;;  %v4764_v56 = vor.u32 %v5005_v22, %v4761_v33 }
 0x3af   : > { %v3134_v51 = vpop.f32.mrf.mxu0 }
 0x3b0   : > { %v3718_v39 = vadd.f32 %v7350_v48, %v3424_v3  ;;  %4812 = vmatmul.msk.bf16.gmra.mxu2 %vm2866_vm10, %v4480_v4  ;;  %v4412_v4 = vor.u32 %v4919_v14, %v4411_v41  ;;  %v4918_v14 = vld [vmem:[%s6882_s14 + $0x274] sm:$0xf] }
 0x3b2   : > { %3953 = vst.msk [vmem:[%s7113_s18 + $0x108] sm:$0xff] %vm243_vm0, %v3718_v39  ;;  %v4491_v39 = vld [vmem:[%s6882_s14 + $0x308] sm:$0xf] }
 0x3b3   : > { %v7499_v27 = vpop.f32.mrf.mxu2  ;;  %v4492_v55 = vor.u32 %v4938_v47, %v4491_v39  ;;  %v4773_v47 = vld [vmem:[%s6882_s14 + $0x54c] sm:$0xf0] }
 0x3b5   : > { %v3426_v26 = vpop.f32.mrf.mxu1  ;;  %v7504_v23 = vpop.f32.mrf.mxu3 }
 0x3b6   : > { %v3427_v48 = vadd.f32 %v3426_v26, %v3132_v59 }
 0x3b7   : > { %v3137_v3 = vpop.f32.mrf.mxu0 }
 0x3b8   : > { %v3721_v9 = vadd.f32 %v7361_v49, %v3427_v48  ;;  %3465 = vmatmul.bf16.gmra.mxu1 %v4404_v43  ;;  %v4413_v43 = vld [vmem:[%s6882_s14 + $0x27c] sm:$0xf0]  ;;  %v4423_v48 = vld [vmem:[%s6882_s14 + $0x288] sm:$0xf] }
 0x3ba   : > { %3954 = vst.msk [vmem:[%s7113_s18 + $0x110] sm:$0xff] %vm243_vm0, %v3721_v9  ;;  %3615 = vmatmul.bf16.gmra.mxu3 %v4764_v56  ;;  %3176 = vmatmul.bf16.gmra.mxu0 %v4412_v4  ;;  %v5008_v9 = vld [vmem:[%s6882_s14 + $0x544] sm:$0xf]  ;;  %v4922_v56 = vld [vmem:[%s6882_s14 + $0x290] sm:$0xf0]  ;;  %v4416_v4 = vor.u32 %v4918_v14, %v4413_v43 }
 0x3bb   : > { %v7511_v59 = vpop.f32.mrf.mxu2 }
 0x3bd   : > { %v3428_v13 = vpop.f32.mrf.mxu1  ;;  %v7513_v22 = vpop.f32.mrf.mxu3 }
 0x3be   : > { %v3429_v49 = vadd.f32 %v3428_v13, %v3134_v51  ;;  %v4776_v13 = vor.u32 %v5008_v9, %v4773_v47 }
 0x3bf   : > { %v3139_v33 = vpop.f32.mrf.mxu0 }
 0x3c0   : > { %v3723_v41 = vadd.f32 %v7373_v16, %v3429_v49  ;;  %4813 = vmatmul.msk.bf16.gmra.mxu2 %vm2866_vm10, %v4492_v55  ;;  %v4424_v55 = vor.u32 %v4922_v56, %v4423_v48  ;;  %v4921_v56 = vld [vmem:[%s6882_s14 + $0x28c] sm:$0xf] }
 0x3c2   : > { %3955 = vst.msk [vmem:[%s7113_s18 + $0x118] sm:$0xff] %vm243_vm0, %v3723_v41  ;;  %v4503_v41 = vld [vmem:[%s6882_s14 + $0x320] sm:$0xf] }
 0x3c3   : > { %v7522_v26 = vpop.f32.mrf.mxu2  ;;  %v4504_v14 = vor.u32 %v4941_v53, %v4503_v41  ;;  %v4974_v53 = vld [vmem:[%s6882_s14 + $0x430] sm:$0xf0] }
 0x3c5   : > { %v3431_v51 = vpop.f32.mrf.mxu1  ;;  %v7527_v39 = vpop.f32.mrf.mxu3 }
 0x3c6   : > { %v3432_v16 = vadd.f32 %v3431_v51, %v3137_v3 }
 0x3c7   : > { %v3142_v49 = vpop.f32.mrf.mxu0 }
 0x3c8   : > { %v3726_v10 = vadd.f32 %v7384_v25, %v3432_v16  ;;  %3470 = vmatmul.bf16.gmra.mxu1 %v4416_v4  ;;  %v4425_v4 = vld [vmem:[%s6882_s14 + $0x294] sm:$0xf0]  ;;  %v4435_v16 = vld [vmem:[%s6882_s14 + $0x2a0] sm:$0xf] }
 0x3ca   : > { %3956 = vst.msk [vmem:[%s7113_s18 + $0x120] sm:$0xff] %vm243_vm0, %v3726_v10  ;;  %3620 = vmatmul.bf16.gmra.mxu3 %v4776_v13  ;;  %3181 = vmatmul.bf16.gmra.mxu0 %v4424_v55  ;;  %v4635_v10 = vld [vmem:[%s6882_s14 + $0x428] sm:$0xf]  ;;  %v4925_v13 = vld [vmem:[%s6882_s14 + $0x2a8] sm:$0xf0]  ;;  %v4428_v55 = vor.u32 %v4921_v56, %v4425_v4 }
 0x3cb   : > { %v7534_v3 = vpop.f32.mrf.mxu2 }
 0x3cd   : > { %v3433_v43 = vpop.f32.mrf.mxu1  ;;  %v7536_v9 = vpop.f32.mrf.mxu3 }
 0x3ce   : > { %v3434_v25 = vadd.f32 %v3433_v43, %v3139_v33  ;;  %v4636_v43 = vor.u32 %v4974_v53, %v4635_v10 }
 0x3cf   : > { %v3144_v47 = vpop.f32.mrf.mxu0 }
 0x3d0   : > { %v3728_v48 = vadd.f32 %v7396_v58, %v3434_v25  ;;  %4814 = vmatmul.msk.bf16.gmra.mxu2 %vm2866_vm10, %v4504_v14  ;;  %v4436_v14 = vor.u32 %v4925_v13, %v4435_v16  ;;  %v4924_v13 = vld [vmem:[%s6882_s14 + $0x2a4] sm:$0xf] }
 0x3d2   : > { %3957 = vst.msk [vmem:[%s7113_s18 + $0x128] sm:$0xff] %vm243_vm0, %v3728_v48  ;;  %v4515_v48 = vld [vmem:[%s6882_s14 + $0x338] sm:$0xf] }
 0x3d3   : > { %v7545_v51 = vpop.f32.mrf.mxu2  ;;  %v4516_v56 = vor.u32 %v4944_v18, %v4515_v48  ;;  %v4977_v18 = vld [vmem:[%s6882_s14 + $0x448] sm:$0xf0] }
 0x3d5   : > { %v3436_v33 = vpop.f32.mrf.mxu1  ;;  %v7550_v41 = vpop.f32.mrf.mxu3 }
 0x3d6   : > { %v3437_v58 = vadd.f32 %v3436_v33, %v3142_v49 }
 0x3d7   : > { %v3147_v25 = vpop.f32.mrf.mxu0 }
 0x3d8   : > { %v3731_v29 = vadd.f32 %v7407_v37, %v3437_v58  ;;  %3475 = vmatmul.bf16.gmra.mxu1 %v4428_v55  ;;  %v4647_v55 = vld [vmem:[%s6882_s14 + $0x440] sm:$0xf]  ;;  %v4447_v58 = vld [vmem:[%s6882_s14 + $0x2b8] sm:$0xf] }
 0x3da   : > { %3958 = vst.msk [vmem:[%s7113_s18 + $0x130] sm:$0xff] %vm243_vm0, %v3731_v29  ;;  %4825 = vmatmul.msk.bf16.vlgmr.msra.gmra.mxu3 %vm2866_vm10, %v4636_v43  ;;  %3186 = vmatmul.bf16.gmra.mxu0 %v4436_v14  ;;  %v4437_v29 = vld [vmem:[%s6882_s14 + $0x2ac] sm:$0xf0]  ;;  %v4928_v43 = vld [vmem:[%s6882_s14 + $0x2c0] sm:$0xf0] }
 0x3db   : > { %v7558_v49 = vpop.f32.mrf.mxu2  ;;  %v4440_v14 = vor.u32 %v4924_v13, %v4437_v29 }
 0x3dd   : > { %v3438_v4 = vpop.f32.mrf.mxu1  ;;  %v7560_v10 = vpop.f32.mrf.mxu3 }
 0x3de   : > { %v3439_v37 = vadd.f32 %v3438_v4, %v3144_v47  ;;  %v4648_v4 = vor.u32 %v4977_v18, %v4647_v55 }
 0x3df   : > { %v3149_v53 = vpop.f32.mrf.mxu0 }
 0x3e0   : > { %v3733_v16 = vadd.f32 %v7419_v32, %v3439_v37  ;;  %4815 = vmatmul.msk.bf16.gmra.mxu2 %vm2866_vm10, %v4516_v56  ;;  %v4448_v56 = vor.u32 %v4928_v43, %v4447_v58  ;;  %v4927_v43 = vld [vmem:[%s6882_s14 + $0x2bc] sm:$0xf] }
 0x3e2   : > { %3959 = vst.msk [vmem:[%s7113_s18 + $0x138] sm:$0xff] %vm243_vm0, %v3733_v16  ;;  %v4527_v16 = vld [vmem:[%s6882_s14 + $0x350] sm:$0xf] }
 0x3e3   : > { %v7569_v33 = vpop.f32.mrf.mxu2  ;;  %v4528_v13 = vor.u32 %v4947_v17, %v4527_v16  ;;  %v4980_v17 = vld [vmem:[%s6882_s14 + $0x460] sm:$0xf0] }
 0x3e5   : > { %v3441_v47 = vpop.f32.mrf.mxu1  ;;  %v7574_v48 = vpop.f32.mrf.mxu3 }
 0x3e6   : > { %v3442_v32 = vadd.f32 %v3441_v47, %v3147_v25 }
 0x3e7   : > { %v3152_v37 = vpop.f32.mrf.mxu0 }
 0x3e8   : > { %v3736_v40 = vadd.f32 %v7430_v63, %v3442_v32  ;;  %3480 = vmatmul.bf16.gmra.mxu1 %v4440_v14  ;;  %v4659_v14 = vld [vmem:[%s6882_s14 + $0x458] sm:$0xf]  ;;  %v4459_v32 = vld [vmem:[%s6882_s14 + $0x2d0] sm:$0xf] }
 0x3ea   : > { %3960 = vst.msk [vmem:[%s7113_s18 + $0x140] sm:$0xff] %vm243_vm0, %v3736_v40  ;;  %4826 = vmatmul.msk.bf16.gmra.mxu3 %vm2866_vm10, %v4648_v4  ;;  %3191 = vmatmul.bf16.gmra.mxu0 %v4448_v56  ;;  %v4449_v40 = vld [vmem:[%s6882_s14 + $0x2c4] sm:$0xf0]  ;;  %v4931_v4 = vld [vmem:[%s6882_s14 + $0x2d8] sm:$0xf0] }
 0x3eb   : > { %v7582_v25 = vpop.f32.mrf.mxu2  ;;  %v4452_v56 = vor.u32 %v4927_v43, %v4449_v40 }
 0x3ed   : > { %v3443_v29 = vpop.f32.mrf.mxu1  ;;  %v7584_v55 = vpop.f32.mrf.mxu3 }
 0x3ee   : > { %v3444_v63 = vadd.f32 %v3443_v29, %v3149_v53  ;;  %v4660_v29 = vor.u32 %v4980_v17, %v4659_v14 }
 0x3ef   : > { %v3154_v18 = vpop.f32.mrf.mxu0 }
 0x3f0   : > { %v3738_v58 = vadd.f32 %v7442_v38, %v3444_v63  ;;  %4816 = vmatmul.msk.bf16.gmra.mxu2 %vm2866_vm10, %v4528_v13  ;;  %v4460_v13 = vor.u32 %v4931_v4, %v4459_v32  ;;  %v4930_v4 = vld [vmem:[%s6882_s14 + $0x2d4] sm:$0xf] }
 0x3f2   : > { %3961 = vst.msk [vmem:[%s7113_s18 + $0x148] sm:$0xff] %vm243_vm0, %v3738_v58  ;;  %v4539_v58 = vld [vmem:[%s6882_s14 + $0x368] sm:$0xf] }
 0x3f3   : > { %v7593_v47 = vpop.f32.mrf.mxu2  ;;  %v4540_v43 = vor.u32 %v4950_v11, %v4539_v58  ;;  %v4983_v11 = vld [vmem:[%s6882_s14 + $0x478] sm:$0xf0] }
 0x3f5   : > { %v3446_v53 = vpop.f32.mrf.mxu1  ;;  %v7598_v16 = vpop.f32.mrf.mxu3 }
 0x3f6   : > { %v3447_v38 = vadd.f32 %v3446_v53, %v3152_v37 }
 0x3f7   : > { %v3157_v63 = vpop.f32.mrf.mxu0 }
 0x3f8   : > { %v3741_v60 = vadd.f32 %v7453_v12, %v3447_v38  ;;  %3485 = vmatmul.bf16.gmra.mxu1 %v4452_v56  ;;  %v4671_v56 = vld [vmem:[%s6882_s14 + $0x470] sm:$0xf]  ;;  %v4471_v38 = vld [vmem:[%s6882_s14 + $0x2e8] sm:$0xf] }
 0x3fa   : > { %3962 = vst.msk [vmem:[%s7113_s18 + $0x150] sm:$0xff] %vm243_vm0, %v3741_v60  ;;  %4827 = vmatmul.msk.bf16.gmra.mxu3 %vm2866_vm10, %v4660_v29  ;;  %3196 = vmatmul.bf16.gmra.mxu0 %v4460_v13  ;;  %v4461_v60 = vld [vmem:[%s6882_s14 + $0x2dc] sm:$0xf0]  ;;  %v4934_v29 = vld [vmem:[%s6882_s14 + $0x2f0] sm:$0xf0] }
 0x3fb   : > { %v7606_v37 = vpop.f32.mrf.mxu2  ;;  %v4464_v13 = vor.u32 %v4930_v4, %v4461_v60 }
 0x3fd   : > { %v3448_v40 = vpop.f32.mrf.mxu1  ;;  %v7608_v14 = vpop.f32.mrf.mxu3 }
 0x3fe   : > { %v3449_v12 = vadd.f32 %v3448_v40, %v3154_v18  ;;  %v4672_v40 = vor.u32 %v4983_v11, %v4671_v56 }
 0x3ff   : > { %v3159_v17 = vpop.f32.mrf.mxu0 }
 0x400   : > { %v3743_v32 = vadd.f32 %v7465_v62, %v3449_v12  ;;  %4817 = vmatmul.msk.bf16.gmra.mxu2 %vm2866_vm10, %v4540_v43  ;;  %v4472_v43 = vor.u32 %v4934_v29, %v4471_v38  ;;  %v4933_v29 = vld [vmem:[%s6882_s14 + $0x2ec] sm:$0xf] }
 0x402   : > { %3963 = vst.msk [vmem:[%s7113_s18 + $0x158] sm:$0xff] %vm243_vm0, %v3743_v32  ;;  %v4551_v32 = vld [vmem:[%s6882_s14 + $0x380] sm:$0xf] }
 0x403   : > { %v7617_v53 = vpop.f32.mrf.mxu2  ;;  %v4552_v4 = vor.u32 %v4953_v46, %v4551_v32  ;;  %v4986_v46 = vld [vmem:[%s6882_s14 + $0x490] sm:$0xf0] }
 0x405   : > { %v3451_v18 = vpop.f32.mrf.mxu1  ;;  %v7622_v58 = vpop.f32.mrf.mxu3 }
 0x406   : > { %v3452_v62 = vadd.f32 %v3451_v18, %v3157_v63 }
 0x407   : > { %v3162_v12 = vpop.f32.mrf.mxu0 }
 0x408   : > { %v3746_v50 = vadd.f32 %v7476_v20, %v3452_v62  ;;  %3490 = vmatmul.bf16.gmra.mxu1 %v4464_v13  ;;  %v4683_v13 = vld [vmem:[%s6882_s14 + $0x488] sm:$0xf]  ;;  %v4483_v62 = vld [vmem:[%s6882_s14 + $0x300] sm:$0xf] }
 0x40a   : > { %3964 = vst.msk [vmem:[%s7113_s18 + $0x160] sm:$0xff] %vm243_vm0, %v3746_v50  ;;  %4828 = vmatmul.msk.bf16.gmra.mxu3 %vm2866_vm10, %v4672_v40  ;;  %3201 = vmatmul.bf16.gmra.mxu0 %v4472_v43  ;;  %v4473_v50 = vld [vmem:[%s6882_s14 + $0x2f4] sm:$0xf0]  ;;  %v4937_v40 = vld [vmem:[%s6882_s14 + $0x308] sm:$0xf0] }
 0x40b   : > { %v7630_v63 = vpop.f32.mrf.mxu2  ;;  %v4476_v43 = vor.u32 %v4933_v29, %v4473_v50 }
 0x40d   : > { %v3453_v60 = vpop.f32.mrf.mxu1  ;;  %v7632_v56 = vpop.f32.mrf.mxu3 }
 0x40e   : > { %8114 = vst [vmem:[#allocation15_spill] sm:$0xff] %v7632_v56  ;;  %v3454_v20 = vadd.f32 %v3453_v60, %v3159_v17  ;;  %v4684_v60 = vor.u32 %v4986_v46, %v4683_v13  ;;  %v4956_v56 = vld [vmem:[%s6882_s14 + $0x3a0] sm:$0xf0] }
 0x40f   : > { %v3164_v11 = vpop.f32.mrf.mxu0 }
 0x410   : > { %v3748_v38 = vadd.f32 %v7488_v7, %v3454_v20  ;;  %4818 = vmatmul.msk.bf16.gmra.mxu2 %vm2866_vm10, %v4552_v4  ;;  %v4484_v4 = vor.u32 %v4937_v40, %v4483_v62  ;;  %v4936_v40 = vld [vmem:[%s6882_s14 + $0x304] sm:$0xf] }
 0x412   : > { %3965 = vst.msk [vmem:[%s7113_s18 + $0x168] sm:$0xff] %vm243_vm0, %v3748_v38  ;;  %v4563_v38 = vld [vmem:[%s6882_s14 + $0x398] sm:$0xf] }
 0x413   : > { %v7641_v18 = vpop.f32.mrf.mxu2  ;;  %v4564_v29 = vor.u32 %v4956_v56, %v4563_v38  ;;  %v4989_v56 = vld [vmem:[%s6882_s14 + $0x4a8] sm:$0xf0] }
 0x415   : > { %v3456_v17 = vpop.f32.mrf.mxu1  ;;  %v7646_v32 = vpop.f32.mrf.mxu3 }
 0x416   : > { %8115 = vst [vmem:[#allocation16_spill] sm:$0xff] %v7646_v32  ;;  %v3457_v7 = vadd.f32 %v3456_v17, %v3162_v12  ;;  %v4959_v32 = vld [vmem:[%s6882_s14 + $0x3b8] sm:$0xf0] }
 0x417   : > { %v3167_v20 = vpop.f32.mrf.mxu0 }
 0x418   : > { %v3751_v8 = vadd.f32 %v7499_v27, %v3457_v7  ;;  %3495 = vmatmul.bf16.gmra.mxu1 %v4476_v43  ;;  %v4695_v43 = vld [vmem:[%s6882_s14 + $0x4a0] sm:$0xf]  ;;  %v4495_v7 = vld [vmem:[%s6882_s14 + $0x318] sm:$0xf] }
 0x41a   : > { %3966 = vst.msk [vmem:[%s7113_s18 + $0x170] sm:$0xff] %vm243_vm0, %v3751_v8  ;;  %4829 = vmatmul.msk.bf16.gmra.mxu3 %vm2866_vm10, %v4684_v60  ;;  %3206 = vmatmul.bf16.gmra.mxu0 %v4484_v4  ;;  %v4485_v8 = vld [vmem:[%s6882_s14 + $0x30c] sm:$0xf0]  ;;  %v4940_v60 = vld [vmem:[%s6882_s14 + $0x320] sm:$0xf0] }
 0x41b   : > { %v7654_v12 = vpop.f32.mrf.mxu2  ;;  %v4488_v4 = vor.u32 %v4936_v40, %v4485_v8 }
 0x41d   : > { %v3458_v50 = vpop.f32.mrf.mxu1  ;;  %v7656_v13 = vpop.f32.mrf.mxu3 }
 0x41e   : > { %8116 = vst [vmem:[#allocation17_spill] sm:$0xff] %v7656_v13  ;;  %v3459_v27 = vadd.f32 %v3458_v50, %v3164_v11  ;;  %v4696_v50 = vor.u32 %v4989_v56, %v4695_v43 }
 0x41f   : > { %v3169_v46 = vpop.f32.mrf.mxu0 }
 0x420   : > { %v3753_v62 = vadd.f32 %v7511_v59, %v3459_v27  ;;  %4819 = vmatmul.msk.bf16.gmra.mxu2 %vm2866_vm10, %v4564_v29  ;;  %v4496_v29 = vor.u32 %v4940_v60, %v4495_v7  ;;  %v4939_v60 = vld [vmem:[%s6882_s14 + $0x31c] sm:$0xf] }
 0x422   : > { %3967 = vst.msk [vmem:[%s7113_s18 + $0x178] sm:$0xff] %vm243_vm0, %v3753_v62  ;;  %v4575_v62 = vld [vmem:[%s6882_s14 + $0x3b0] sm:$0xf] }
 0x423   : > { %v7665_v17 = vpop.f32.mrf.mxu2  ;;  %v4576_v40 = vor.u32 %v4959_v32, %v4575_v62  ;;  %v4992_v32 = vld [vmem:[%s6882_s14 + $0x4c0] sm:$0xf0] }
 0x425   : > { %v3461_v11 = vpop.f32.mrf.mxu1  ;;  %v7670_v38 = vpop.f32.mrf.mxu3 }
 0x426   : > { %8117 = vst [vmem:[#allocation18_spill] sm:$0xff] %v7670_v38  ;;  %v3462_v59 = vadd.f32 %v3461_v11, %v3167_v20  ;;  %v4962_v38 = vld [vmem:[%s6882_s14 + $0x3d0] sm:$0xf0] }
 0x427   : > { %v3172_v27 = vpop.f32.mrf.mxu0 }
 0x428   : > { %v3756_v13 = vadd.f32 %v7522_v26, %v3462_v59  ;;  %3500 = vmatmul.bf16.gmra.mxu1 %v4488_v4  ;;  %v4707_v4 = vld [vmem:[%s6882_s14 + $0x4b8] sm:$0xf]  ;;  %v4507_v59 = vld [vmem:[%s6882_s14 + $0x330] sm:$0xf] }
 0x42a   : > { %3968 = vst.msk [vmem:[%s7113_s18 + $0x180] sm:$0xff] %vm243_vm0, %v3756_v13  ;;  %4830 = vmatmul.msk.bf16.gmra.mxu3 %vm2866_vm10, %v4696_v50  ;;  %3211 = vmatmul.bf16.gmra.mxu0 %v4496_v29  ;;  %v4497_v13 = vld [vmem:[%s6882_s14 + $0x324] sm:$0xf0]  ;;  %v4943_v50 = vld [vmem:[%s6882_s14 + $0x338] sm:$0xf0] }
 0x42b   : > { %v7678_v20 = vpop.f32.mrf.mxu2  ;;  %v4500_v29 = vor.u32 %v4939_v60, %v4497_v13 }
 0x42d   : > { %v3463_v8 = vpop.f32.mrf.mxu1  ;;  %v7680_v43 = vpop.f32.mrf.mxu3 }
 0x42e   : > { %8118 = vst [vmem:[#allocation19_spill] sm:$0xff] %v7680_v43  ;;  %v3464_v26 = vadd.f32 %v3463_v8, %v3169_v46  ;;  %v4708_v8 = vor.u32 %v4992_v32, %v4707_v4 }
 0x42f   : > { %v3174_v56 = vpop.f32.mrf.mxu0 }
 0x430   : > { %v3758_v7 = vadd.f32 %v7534_v3, %v3464_v26  ;;  %4820 = vmatmul.msk.bf16.gmra.mxu2 %vm2866_vm10, %v4576_v40  ;;  %v4508_v40 = vor.u32 %v4943_v50, %v4507_v59  ;;  %v4942_v50 = vld [vmem:[%s6882_s14 + $0x334] sm:$0xf] }
 0x432   : > { %3969 = vst.msk [vmem:[%s7113_s18 + $0x188] sm:$0xff] %vm243_vm0, %v3758_v7  ;;  %v4587_v7 = vld [vmem:[%s6882_s14 + $0x3c8] sm:$0xf] }
 0x433   : > { %v7689_v11 = vpop.f32.mrf.mxu2  ;;  %v4588_v60 = vor.u32 %v4962_v38, %v4587_v7  ;;  %v4995_v38 = vld [vmem:[%s6882_s14 + $0x4d8] sm:$0xf0] }
 0x435   : > { %v3466_v46 = vpop.f32.mrf.mxu1  ;;  %v7694_v62 = vpop.f32.mrf.mxu3 }
 0x436   : > { %8119 = vst [vmem:[#allocation20_spill] sm:$0xff] %v7694_v62  ;;  %v3467_v3 = vadd.f32 %v3466_v46, %v3172_v27  ;;  %v4965_v62 = vld [vmem:[%s6882_s14 + $0x3e8] sm:$0xf0] }
 0x437   : > { %v3177_v26 = vpop.f32.mrf.mxu0 }
 0x438   : > { %v3761_v43 = vadd.f32 %v7545_v51, %v3467_v3  ;;  %3505 = vmatmul.bf16.gmra.mxu1 %v4500_v29  ;;  %v4719_v29 = vld [vmem:[%s6882_s14 + $0x4d0] sm:$0xf]  ;;  %v4519_v3 = vld [vmem:[%s6882_s14 + $0x348] sm:$0xf] }
 0x43a   : > { %3970 = vst.msk [vmem:[%s7113_s18 + $0x190] sm:$0xff] %vm243_vm0, %v3761_v43  ;;  %4831 = vmatmul.msk.bf16.gmra.mxu3 %vm2866_vm10, %v4708_v8  ;;  %3216 = vmatmul.bf16.gmra.mxu0 %v4508_v40  ;;  %v4509_v43 = vld [vmem:[%s6882_s14 + $0x33c] sm:$0xf0]  ;;  %v4946_v8 = vld [vmem:[%s6882_s14 + $0x350] sm:$0xf0] }
 0x43b   : > { %v7702_v27 = vpop.f32.mrf.mxu2  ;;  %v4512_v40 = vor.u32 %v4942_v50, %v4509_v43 }
 0x43d   : > { %v3468_v13 = vpop.f32.mrf.mxu1  ;;  %v7704_v4 = vpop.f32.mrf.mxu3 }
 0x43e   : > { %8120 = vst [vmem:[#allocation21_spill] sm:$0xff] %v7704_v4  ;;  %v3469_v51 = vadd.f32 %v3468_v13, %v3174_v56  ;;  %v4720_v13 = vor.u32 %v4995_v38, %v4719_v29 }
 0x43f   : > { %v3179_v32 = vpop.f32.mrf.mxu0 }
 0x440   : > { %v3763_v59 = vadd.f32 %v7558_v49, %v3469_v51  ;;  %4821 = vmatmul.msk.bf16.gmra.mxu2 %vm2866_vm10, %v4588_v60  ;;  %v4520_v60 = vor.u32 %v4946_v8, %v4519_v3  ;;  %v4945_v8 = vld [vmem:[%s6882_s14 + $0x34c] sm:$0xf] }
 0x442   : > { %3971 = vst.msk [vmem:[%s7113_s18 + $0x198] sm:$0xff] %vm243_vm0, %v3763_v59  ;;  %v4599_v59 = vld [vmem:[%s6882_s14 + $0x3e0] sm:$0xf] }
 0x443   : > { %v7713_v46 = vpop.f32.mrf.mxu2  ;;  %v4600_v50 = vor.u32 %v4965_v62, %v4599_v59  ;;  %v4998_v62 = vld [vmem:[%s6882_s14 + $0x4f0] sm:$0xf0] }
 0x445   : > { %v3471_v56 = vpop.f32.mrf.mxu1  ;;  %v7718_v7 = vpop.f32.mrf.mxu3 }
 0x446   : > { %8121 = vst [vmem:[#allocation22_spill] sm:$0xff] %v7718_v7  ;;  %v3472_v49 = vadd.f32 %v3471_v56, %v3177_v26  ;;  %v4968_v7 = vld [vmem:[%s6882_s14 + $0x400] sm:$0xf0] }
 0x447   : > { %v3182_v51 = vpop.f32.mrf.mxu0 }
 0x448   : > { %v3766_v4 = vadd.f32 %v7569_v33, %v3472_v49  ;;  %3510 = vmatmul.bf16.gmra.mxu1 %v4512_v40  ;;  %v4731_v40 = vld [vmem:[%s6882_s14 + $0x4e8] sm:$0xf]  ;;  %v4531_v49 = vld [vmem:[%s6882_s14 + $0x360] sm:$0xf] }
 0x44a   : > { %3972 = vst.msk [vmem:[%s7113_s18 + $0x1a0] sm:$0xff] %vm243_vm0, %v3766_v4  ;;  %4832 = vmatmul.msk.bf16.gmra.mxu3 %vm2866_vm10, %v4720_v13  ;;  %3221 = vmatmul.bf16.gmra.mxu0 %v4520_v60  ;;  %v4521_v4 = vld [vmem:[%s6882_s14 + $0x354] sm:$0xf0]  ;;  %v4949_v13 = vld [vmem:[%s6882_s14 + $0x368] sm:$0xf0] }
 0x44b   : > { %v7726_v26 = vpop.f32.mrf.mxu2  ;;  %v4524_v60 = vor.u32 %v4945_v8, %v4521_v4 }
 0x44d   : > { %v3473_v43 = vpop.f32.mrf.mxu1  ;;  %v7728_v29 = vpop.f32.mrf.mxu3 }
 0x44e   : > { %8122 = vst [vmem:[#allocation23_spill] sm:$0xff] %v7728_v29  ;;  %v3474_v33 = vadd.f32 %v3473_v43, %v3179_v32  ;;  %v4732_v43 = vor.u32 %v4998_v62, %v4731_v40 }
 0x44f   : > { %v3184_v38 = vpop.f32.mrf.mxu0 }
 0x450   : > { %v3768_v3 = vadd.f32 %v7582_v25, %v3474_v33  ;;  %4822 = vmatmul.msk.bf16.gmra.mxu2 %vm2866_vm10, %v4600_v50  ;;  %v4532_v50 = vor.u32 %v4949_v13, %v4531_v49 }
 0x452   : > { %3973 = vst.msk [vmem:[%s7113_s18 + $0x1a8] sm:$0xff] %vm243_vm0, %v3768_v3  ;;  %v4611_v3 = vld [vmem:[%s6882_s14 + $0x3f8] sm:$0xf] }
 0x453   : > { %v7737_v56 = vpop.f32.mrf.mxu2 }
 0x455   : > { %v3476_v32 = vpop.f32.mrf.mxu1  ;;  %v7742_v59 = vpop.f32.mrf.mxu3 }
 0x456   : > { %8123 = vst [vmem:[#allocation24_spill] sm:$0xff] %v7742_v59  ;;  %v3477_v25 = vadd.f32 %v3476_v32, %v3182_v51  ;;  %v3562_v51 = vadd.f32 %v7444_v19, %v7122_v5  ;;  %v4533_v32 = vld [vmem:[%s6882_s14 + $0x36c] sm:$0xf0]  ;;  %v4743_v5 = vld [vmem:[%s6882_s14 + $0x500] sm:$0xf] }
 0x457   : > { %v3187_v33 = vpop.f32.mrf.mxu0  ;;  %v4971_v59 = vld [vmem:[%s6882_s14 + $0x418] sm:$0xf0] }
 0x458   : > { %v3771_v29 = vadd.f32 %v7593_v47, %v3477_v25  ;;  %3515 = vmatmul.bf16.gmra.mxu1 %v4524_v60  ;;  %v4612_v47 = vor.u32 %v4968_v7, %v4611_v3  ;;  %v4948_v60 = vld [vmem:[%s6882_s14 + $0x364] sm:$0xf]  ;;  %v5001_v7 = vld [vmem:[%s6882_s14 + $0x508] sm:$0xf0] }
 0x459   : > { %v4952_v25 = vld [vmem:[%s6882_s14 + $0x380] sm:$0xf0] }
 0x45a   : > { %3974 = vst.msk [vmem:[%s7113_s18 + $0x1b0] sm:$0xff] %vm243_vm0, %v3771_v29  ;;  %4833 = vmatmul.msk.bf16.gmra.mxu3 %vm2866_vm10, %v4732_v43  ;;  %3226 = vmatmul.bf16.gmra.mxu0 %v4532_v50  ;;  %v4536_v43 = vor.u32 %v4948_v60, %v4533_v32 }
 0x45b   : > { %v7750_v8 = vpop.f32.mrf.mxu2 }
 0x45d   : > { %v3478_v4 = vpop.f32.mrf.mxu1  ;;  %v3855_v40 = vpop.f32.mrf.mxu3 }
 0x45e   : > { %v3479_v62 = vadd.f32 %v3478_v4, %v3184_v38  ;;  %v3856_v49 = vadd.f32 %v3855_v40, %v3562_v51  ;;  %v4543_v38 = vld [vmem:[%s6882_s14 + $0x378] sm:$0xf]  ;;  %v4744_v4 = vor.u32 %v5001_v7, %v4743_v5 }
 0x45f   : > { %v3189_v13 = vpop.f32.mrf.mxu0  ;;  %v4544_v40 = vor.u32 %v4952_v25, %v4543_v38  ;;  %v4951_v25 = vld [vmem:[%s6882_s14 + $0x37c] sm:$0xf] }
 0x460   : > { %v3773_v29 = vadd.f32 %v7606_v37, %v3479_v62  ;;  %4008 = vst.msk [vmem:[%s7113_s18 + $0x2c0] sm:$0xff] %vm243_vm0, %v3856_v49  ;;  %4823 = vmatmul.msk.bf16.gmra.mxu2 %vm2866_vm10, %v4612_v47  ;;  %v3564_v37 = vadd.f32 %v7458_v35, %v7136_v42  ;;  %v3567_v35 = vadd.f32 %v7467_v15, %v7145_v24  ;;  %v4755_v24 = vld [vmem:[%s6882_s14 + $0x518] sm:$0xf] }
 0x462   : > { %3975 = vst.msk [vmem:[%s7113_s18 + $0x1b8] sm:$0xff] %vm243_vm0, %v3773_v29  ;;  %v4623_v29 = vld [vmem:[%s6882_s14 + $0x410] sm:$0xf] }
 0x463   : > { %v7763_v19 = vpop.f32.mrf.mxu2 }
 0x465   : > { %v3481_v50 = vpop.f32.mrf.mxu1  ;;  %v3857_v3 = vpop.f32.mrf.mxu3 }
 0x466   : > { %v3482_v51 = vadd.f32 %v3481_v50, %v3187_v33  ;;  %v3858_v47 = vadd.f32 %v3857_v3, %v3564_v37  ;;  %v4545_v37 = vld [vmem:[%s6882_s14 + $0x384] sm:$0xf0]  ;;  %v3569_v50 = vadd.f32 %v7481_v28, %v7159_v34  ;;  %v3572_v28 = vadd.f32 %v7490_v36, %v7168_v61  ;;  %v4958_v36 = vld [vmem:[%s6882_s14 + $0x3b0] sm:$0xf0] }
 0x467   : > { %v3192_v62 = vpop.f32.mrf.mxu0  ;;  %v4567_v61 = vld [vmem:[%s6882_s14 + $0x3a8] sm:$0xf] }
 0x468   : > { %v3776_v49 = vadd.f32 %v7617_v53, %v3482_v51  ;;  %4009 = vst.msk [vmem:[%s7113_s18 + $0x2c8] sm:$0xff] %vm243_vm0, %v3858_v47  ;;  %3520 = vmatmul.bf16.gmra.mxu1 %v4536_v43  ;;  %v4624_v53 = vor.u32 %v4971_v59, %v4623_v29  ;;  %v5004_v59 = vld [vmem:[%s6882_s14 + $0x520] sm:$0xf0]  ;;  %v4555_v43 = vld [vmem:[%s6882_s14 + $0x390] sm:$0xf] }
 0x46a   : > { %3976 = vst.msk [vmem:[%s7113_s18 + $0x1c0] sm:$0xff] %vm243_vm0, %v3776_v49  ;;  %4834 = vmatmul.msk.bf16.gmra.mxu3 %vm2866_vm10, %v4744_v4  ;;  %3231 = vmatmul.bf16.gmra.mxu0 %v4544_v40  ;;  %v4756_v40 = vor.u32 %v5004_v59, %v4755_v24  ;;  %v5007_v24 = vld [vmem:[%s6882_s14 + $0x538] sm:$0xf0] }
 0x46b   : > { %v7778_v42 = vpop.f32.mrf.mxu2 }
 0x46d   : > { %v3483_v33 = vpop.f32.mrf.mxu1  ;;  %v3860_v60 = vpop.f32.mrf.mxu3 }
 0x46e   : > { %v3484_v32 = vadd.f32 %v3483_v33, %v3189_v13  ;;  %v3861_v5 = vadd.f32 %v3860_v60, %v3567_v35  ;;  %v4955_v13 = vld [vmem:[%s6882_s14 + $0x398] sm:$0xf0] }
 0x46f   : > { %v3194_v7 = vpop.f32.mrf.mxu0  ;;  %v4556_v49 = vor.u32 %v4955_v13, %v4555_v43 }
 0x470   : > { %v3778_v38 = vadd.f32 %v7630_v63, %v3484_v32  ;;  %4010 = vst.msk [vmem:[%s7113_s18 + $0x2d0] sm:$0xff] %vm243_vm0, %v3861_v5  ;;  %4824 = vmatmul.msk.bf16.gmra.mxu2 %vm2866_vm10, %v4624_v53  ;;  %v4548_v63 = vor.u32 %v4951_v25, %v4545_v37  ;;  %v4954_v5 = vld [vmem:[%s6882_s14 + $0x394] sm:$0xf]  ;;  %v4767_v25 = vld [vmem:[%s6882_s14 + $0x530] sm:$0xf] }
 0x472   : > { %3977 = vst.msk [vmem:[%s7113_s18 + $0x1c8] sm:$0xff] %vm243_vm0, %v3778_v38  ;;  %v4557_v38 = vld [vmem:[%s6882_s14 + $0x39c] sm:$0xf0] }
 0x473   : > { %v7791_v15 = vpop.f32.mrf.mxu2  ;;  %v4560_v59 = vor.u32 %v4954_v5, %v4557_v38 }
 0x475   : > { %v3486_v3 = vpop.f32.mrf.mxu1  ;;  %v3862_v51 = vpop.f32.mrf.mxu3 }
 0x476   : > { %v3487_v47 = vadd.f32 %v3486_v3, %v3192_v62  ;;  %v3863_v4 = vadd.f32 %v3862_v51, %v3569_v50  ;;  %v4568_v3 = vor.u32 %v4958_v36, %v4567_v61 }
 0x477   : > { %v3197_v29 = vpop.f32.mrf.mxu0 }
 0x478   : > { %v3781_v35 = vadd.f32 %v7641_v18, %v3487_v47  ;;  %4011 = vst.msk [vmem:[%s7113_s18 + $0x2d8] sm:$0xff] %vm243_vm0, %v3863_v4  ;;  %3525 = vmatmul.bf16.gmra.mxu1 %v4548_v63  ;;  %v4768_v63 = vor.u32 %v5007_v24, %v4767_v25 }
 0x47a   : > { %3978 = vst.msk [vmem:[%s7113_s18 + $0x1d0] sm:$0xff] %vm243_vm0, %v3781_v35  ;;  %4835 = vmatmul.msk.bf16.gmra.mxu3 %vm2866_vm10, %v4756_v40  ;;  %3236 = vmatmul.bf16.gmra.mxu0 %v4556_v49 }
 0x47b   : > { %v7804_v34 = vpop.f32.mrf.mxu2 }
 0x47d   : > { %v3488_v18 = vpop.f32.mrf.mxu1  ;;  %v3865_v62 = vpop.f32.mrf.mxu3 }
 0x47e   : > { %v3489_v53 = vadd.f32 %v3488_v18, %v3194_v7  ;;  %v3866_v33 = vadd.f32 %v3865_v62, %v3572_v28  ;;  %v3574_v7 = vadd.f32 %v7504_v23, %v7182_v2  ;;  %v3577_v23 = vadd.f32 %v7513_v22, %v7191_v45  ;;  %v4957_v28 = vld [vmem:[%s6882_s14 + $0x3ac] sm:$0xf]  ;;  %v4569_v18 = vld [vmem:[%s6882_s14 + $0x3b4] sm:$0xf0]  ;;  %v4779_v62 = vld [vmem:[%s6882_s14 + $0x548] sm:$0xf] }
 0x47f   : > { %v3199_v60 = vpop.f32.mrf.mxu0  ;;  %v4579_v45 = vld [vmem:[%s6882_s14 + $0x3c0] sm:$0xf]  ;;  %v4961_v22 = vld [vmem:[%s6882_s14 + $0x3c8] sm:$0xf0] }
 0x480   : > { %v3783_v32 = vadd.f32 %v7654_v12, %v3489_v53  ;;  %4012 = vst.msk [vmem:[%s7113_s18 + $0x2e0] sm:$0xff] %vm243_vm0, %v3866_v33  ;;  %v5010_v33 = vld [vmem:[%s6882_s14 + $0x550] sm:$0xf0]  ;;  %v4580_v61 = vor.u32 %v4961_v22, %v4579_v45  ;;  %v4963_v22 = vld [vmem:[%s6882_s14 + $0x3dc] sm:$0xf] }
 0x481   : > { %v4780_v24 = vor.u32 %v5010_v33, %v4779_v62 }
 0x482   : > { %3979 = vst.msk [vmem:[%s7113_s18 + $0x1d8] sm:$0xff] %vm243_vm0, %v3783_v32  ;;  %v4572_v32 = vor.u32 %v4957_v28, %v4569_v18 }
 0x483   : > { %v7816_v37 = vpop.f32.mrf.mxu2 }
 0x485   : > { %v3491_v43 = vpop.f32.mrf.mxu1  ;;  %v3867_v12 = vpop.f32.mrf.mxu3 }
 0x486   : > { %v3492_v13 = vadd.f32 %v3491_v43, %v3197_v29  ;;  %v3868_v50 = vadd.f32 %v3867_v12, %v3574_v7 }
 0x487   : > { %v3202_v51 = vpop.f32.mrf.mxu0 }
 0x488   : > { %v3786_v47 = vadd.f32 %v7665_v17, %v3492_v13  ;;  %4013 = vst.msk [vmem:[%s7113_s18 + $0x2e8] sm:$0xff] %vm243_vm0, %v3868_v50  ;;  %3530 = vmatmul.bf16.gmra.mxu1 %v4560_v59 }
 0x48a   : > { %3980 = vst.msk [vmem:[%s7113_s18 + $0x1e0] sm:$0xff] %vm243_vm0, %v3786_v47  ;;  %4836 = vmatmul.msk.bf16.gmra.mxu3 %vm2866_vm10, %v4768_v63  ;;  %3241 = vmatmul.bf16.gmra.mxu0 %v4568_v3  ;;  %v4960_v63 = vld [vmem:[%s6882_s14 + $0x3c4] sm:$0xf]  ;;  %v4581_v3 = vld [vmem:[%s6882_s14 + $0x3cc] sm:$0xf0] }
 0x48b   : > { %v7829_v2 = vpop.f32.mrf.mxu2  ;;  %v4591_v47 = vld [vmem:[%s6882_s14 + $0x3d8] sm:$0xf] }
 0x48d   : > { %v3493_v17 = vpop.f32.mrf.mxu1  ;;  %v3870_v4 = vpop.f32.mrf.mxu3 }
 0x48e   : > { %v3494_v40 = vadd.f32 %v3493_v17, %v3199_v60  ;;  %v3871_v49 = vadd.f32 %v3870_v4, %v3577_v23  ;;  %v3579_v60 = vadd.f32 %v7527_v39, %v7205_v57  ;;  %v3582_v39 = vadd.f32 %v7536_v9, %v7214_v44  ;;  %v4964_v23 = vld [vmem:[%s6882_s14 + $0x3e0] sm:$0xf0] }
 0x48f   : > { %v3204_v29 = vpop.f32.mrf.mxu0  ;;  %v3584_v44 = vadd.f32 %v7550_v41, %v7228_v1  ;;  %v4584_v9 = vor.u32 %v4960_v63, %v4581_v3  ;;  %v3587_v41 = vadd.f32 %v7560_v10, %v7237_v54  ;;  %v3589_v54 = vadd.f32 %v7574_v48, %v7251_v6 }
 0x490   : > { %v3788_v35 = vadd.f32 %v7678_v20, %v3494_v40  ;;  %4014 = vst.msk [vmem:[%s7113_s18 + $0x2f0] sm:$0xff] %vm243_vm0, %v3871_v49  ;;  %v4592_v49 = vor.u32 %v4964_v23, %v4591_v47  ;;  %v3592_v48 = vadd.f32 %v7584_v55, %v7260_v21  ;;  %v3594_v21 = vadd.f32 %v7598_v16, %v7274_v52 }
 0x491   : > { %v3597_v52 = vadd.f32 %v7608_v14, %v7283_v31 }
 0x492   : > { %3981 = vst.msk [vmem:[%s7113_s18 + $0x1e8] sm:$0xff] %vm243_vm0, %v3788_v35 }
 0x493   : > { %v7841_v53 = vpop.f32.mrf.mxu2 }
 0x495   : > { %v3496_v5 = vpop.f32.mrf.mxu1  ;;  %v3872_v20 = vpop.f32.mrf.mxu3 }
 0x496   : > { %v3497_v38 = vadd.f32 %v3496_v5, %v3202_v51  ;;  %v3873_v25 = vadd.f32 %v3872_v20, %v3579_v60  ;;  %v4593_v60 = vld [vmem:[%s6882_s14 + $0x3e4] sm:$0xf0]  ;;  %v4603_v5 = vld [vmem:[%s6882_s14 + $0x3f0] sm:$0xf]  ;;  %v4967_v20 = vld [vmem:[%s6882_s14 + $0x3f8] sm:$0xf0] }
 0x497   : > { %v3207_v36 = vpop.f32.mrf.mxu0  ;;  %v4596_v10 = vor.u32 %v4963_v22, %v4593_v60 }
 0x498   : > { %v3791_v7 = vadd.f32 %v7689_v11, %v3497_v38  ;;  %4015 = vst.msk [vmem:[%s7113_s18 + $0x2f8] sm:$0xff] %vm243_vm0, %v3873_v25  ;;  %3535 = vmatmul.bf16.gmra.mxu1 %v4572_v32 }
 0x49a   : > { %3982 = vst.msk [vmem:[%s7113_s18 + $0x1f0] sm:$0xff] %vm243_vm0, %v3791_v7  ;;  %4837 = vmatmul.msk.bf16.gmra.mxu3 %vm2866_vm10, %v4780_v24  ;;  %3246 = vmatmul.bf16.gmra.mxu0 %v4580_v61  ;;  %v4604_v61 = vor.u32 %v4967_v20, %v4603_v5  ;;  %v8125_v20 = vld [vmem:[#allocation4_spill] sm:$0xff] }
 0x49b   : > { %v7854_v57 = vpop.f32.mrf.mxu2 }
 0x49d   : > { %v3498_v59 = vpop.f32.mrf.mxu1  ;;  %v3875_v43 = vpop.f32.mrf.mxu3 }
 0x49e   : > { %v3499_v11 = vadd.f32 %v3498_v59, %v3204_v29  ;;  %v3876_v12 = vadd.f32 %v3875_v43, %v3582_v39 }
 0x49f   : > { %v3209_v13 = vpop.f32.mrf.mxu0 }
 0x4a0   : > { %v3793_v50 = vadd.f32 %v7702_v27, %v3499_v11  ;;  %4016 = vst.msk [vmem:[%s7113_s18 + $0x300] sm:$0xff] %vm243_vm0, %v3876_v12 }
 0x4a2   : > { %3983 = vst.msk [vmem:[%s7113_s18 + $0x1f8] sm:$0xff] %vm243_vm0, %v3793_v50  ;;  %v4605_v50 = vld [vmem:[%s6882_s14 + $0x3fc] sm:$0xf0] }
 0x4a3   : > { %v7865_v51 = vpop.f32.mrf.mxu2 }
 0x4a5   : > { %v3501_v17 = vpop.f32.mrf.mxu1  ;;  %v3877_v4 = vpop.f32.mrf.mxu3 }
 0x4a6   : > { %v3502_v40 = vadd.f32 %v3501_v17, %v3207_v36  ;;  %v3878_v27 = vadd.f32 %v3877_v4, %v3584_v44 }
 0x4a7   : > { %v3212_v29 = vpop.f32.mrf.mxu0 }
 0x4a8   : > { %v3796_v35 = vadd.f32 %v7713_v46, %v3502_v40  ;;  %4017 = vst.msk [vmem:[%s7113_s18 + $0x308] sm:$0xff] %vm243_vm0, %v3878_v27  ;;  %3540 = vmatmul.bf16.gmra.mxu1 %v4584_v9 }
 0x4aa   : > { %3984 = vst.msk [vmem:[%s7113_s18 + $0x200] sm:$0xff] %vm243_vm0, %v3796_v35  ;;  %3251 = vmatmul.bf16.gmra.mxu0 %v4592_v49  ;;  %v3599_v35 = vadd.f32 %v7622_v58, %v7297_v30 }
 0x4ab   : > { %v7876_v1 = vpop.f32.mrf.mxu2 }
 0x4ad   : > { %v3503_v28 = vpop.f32.mrf.mxu1  ;;  %v3880_v18 = vpop.f32.mrf.mxu3 }
 0x4ae   : > { %v3504_v62 = vadd.f32 %v3503_v28, %v3209_v13  ;;  %v3881_v33 = vadd.f32 %v3880_v18, %v3587_v41  ;;  %v4966_v13 = vld [vmem:[%s6882_s14 + $0x3f4] sm:$0xf] }
 0x4af   : > { %v3214_v45 = vpop.f32.mrf.mxu0  ;;  %v4608_v55 = vor.u32 %v4966_v13, %v4605_v50  ;;  %v8130_v13 = vld [vmem:[#allocation13_spill] sm:$0xff] }
 0x4b0   : > { %v3798_v46 = vadd.f32 %v7726_v26, %v3504_v62  ;;  %4018 = vst.msk [vmem:[%s7113_s18 + $0x310] sm:$0xff] %vm243_vm0, %v3881_v33  ;;  %v8124_v33 = vld [vmem:[#allocation15_spill] sm:$0xff] }
 0x4b2   : > { %3985 = vst.msk [vmem:[%s7113_s18 + $0x208] sm:$0xff] %vm243_vm0, %v3798_v46 }
 0x4b3   : > { %v7887_v32 = vpop.f32.mrf.mxu2 }
 0x4b5   : > { %v3506_v38 = vpop.f32.mrf.mxu1  ;;  %v3882_v25 = vpop.f32.mrf.mxu3 }
 0x4b6   : > { %v3507_v24 = vadd.f32 %v3506_v38, %v3212_v29  ;;  %v3883_v26 = vadd.f32 %v3882_v25, %v3589_v54  ;;  %v8126_v54 = vld [vmem:[#allocation16_spill] sm:$0xff] }
 0x4b7   : > { %v3217_v36 = vpop.f32.mrf.mxu0 }
 0x4b8   : > { %v3801_v7 = vadd.f32 %v7737_v56, %v3507_v24  ;;  %4019 = vst.msk [vmem:[%s7113_s18 + $0x318] sm:$0xff] %vm243_vm0, %v3883_v26  ;;  %3545 = vmatmul.bf16.gmra.mxu1 %v4596_v10  ;;  %v3604_v10 = vadd.f32 %v8126_v54, %v8125_v20 }
 0x4ba   : > { %3986 = vst.msk [vmem:[%s7113_s18 + $0x210] sm:$0xff] %vm243_vm0, %v3801_v7  ;;  %3256 = vmatmul.bf16.gmra.mxu0 %v4604_v61  ;;  %v8128_v7 = vld [vmem:[#allocation17_spill] sm:$0xff] }
 0x4bb   : > { %v7898_v6 = vpop.f32.mrf.mxu2 }
 0x4bd   : > { %v3508_v39 = vpop.f32.mrf.mxu1  ;;  %v3885_v59 = vpop.f32.mrf.mxu3 }
 0x4be   : > { %v3509_v43 = vadd.f32 %v3508_v39, %v3214_v45  ;;  %v3886_v11 = vadd.f32 %v3885_v59, %v3592_v48  ;;  %v3602_v45 = vadd.f32 %v8124_v33, %v7306_v0 }
 0x4bf   : > { %v3219_v12 = vpop.f32.mrf.mxu0 }
 0x4c0   : > { %v3803_v56 = vadd.f32 %v7750_v8, %v3509_v43  ;;  %4020 = vst.msk [vmem:[%s7113_s18 + $0x320] sm:$0xff] %vm243_vm0, %v3886_v11 }
 0x4c2   : > { %3987 = vst.msk [vmem:[%s7113_s18 + $0x218] sm:$0xff] %vm243_vm0, %v3803_v56 }
 0x4c3   : > { %v7909_v63 = vpop.f32.mrf.mxu2 }
 0x4c5   : > { %v3511_v3 = vpop.f32.mrf.mxu1  ;;  %v3887_v47 = vpop.f32.mrf.mxu3 }
 0x4c6   : > { %v3512_v23 = vadd.f32 %v3511_v3, %v3217_v36  ;;  %v3888_v44 = vadd.f32 %v3887_v47, %v3594_v21  ;;  %v8127_v36 = vld [vmem:[#allocation5_spill] sm:$0xff]  ;;  %v8132_v3 = vld [vmem:[#allocation18_spill] sm:$0xff] }
 0x4c7   : > { %v3222_v8 = vpop.f32.mrf.mxu0  ;;  %v3607_v48 = vadd.f32 %v8128_v7, %v8127_v36  ;;  %v8142_v7 = vld [vmem:[#allocation22_spill] sm:$0xff] }
 0x4c8   : > { %v3806_v9 = vadd.f32 %v7763_v19, %v3512_v23  ;;  %4021 = vst.msk [vmem:[%s7113_s18 + $0x328] sm:$0xff] %vm243_vm0, %v3888_v44  ;;  %3550 = vmatmul.bf16.gmra.mxu1 %v4608_v55  ;;  %v8131_v55 = vld [vmem:[#allocation6_spill] sm:$0xff] }
 0x4c9   : > { %v3609_v47 = vadd.f32 %v8132_v3, %v8131_v55 }
 0x4ca   : > { %3988 = vst.msk [vmem:[%s7113_s18 + $0x220] sm:$0xff] %vm243_vm0, %v3806_v9 }
 0x4cb   : > { %v7918_v17 = vpop.f32.mrf.mxu2 }
 0x4cd   : > { %v3513_v16 = vpop.f32.mrf.mxu1  ;;  %v3890_v4 = vpop.f32.mrf.mxu3 }
 0x4ce   : > { %v3514_v40 = vadd.f32 %v3513_v16, %v3219_v12  ;;  %v3891_v27 = vadd.f32 %v3890_v4, %v3597_v52  ;;  %v8133_v4 = vld [vmem:[#allocation3_spill] sm:$0xff] }
 0x4cf   : > { %v3224_v49 = vpop.f32.mrf.mxu0 }
 0x4d0   : > { %v3808_v29 = vadd.f32 %v7778_v42, %v3514_v40  ;;  %4022 = vst.msk [vmem:[%s7113_s18 + $0x330] sm:$0xff] %vm243_vm0, %v3891_v27  ;;  %v8134_v40 = vld [vmem:[#allocation14_spill] sm:$0xff] }
 0x4d1   : > { %v3559_v27 = vadd.f32 %v8134_v40, %v8133_v4 }
 0x4d2   : > { %3989 = vst.msk [vmem:[%s7113_s18 + $0x228] sm:$0xff] %vm243_vm0, %v3808_v29  ;;  %v8135_v29 = vld [vmem:[#allocation7_spill] sm:$0xff] }
 0x4d3   : > { %v7927_v19 = vpop.f32.mrf.mxu2 }
 0x4d5   : > { %v3516_v41 = vpop.f32.mrf.mxu1  ;;  %v3892_v31 = vpop.f32.mrf.mxu3 }
 0x4d6   : > { %v3517_v14 = vadd.f32 %v3516_v41, %v3222_v8  ;;  %v3893_v28 = vadd.f32 %v3892_v31, %v3599_v35  ;;  %v8136_v35 = vld [vmem:[#allocation19_spill] sm:$0xff] }
 0x4d7   : > { %v3227_v18 = vpop.f32.mrf.mxu0  ;;  %v3612_v41 = vadd.f32 %v8136_v35, %v8135_v29 }
 0x4d8   : > { %v3811_v62 = vadd.f32 %v7791_v15, %v3517_v14  ;;  %4023 = vst.msk [vmem:[%s7113_s18 + $0x338] sm:$0xff] %vm243_vm0, %v3893_v28 }
 0x4da   : > { %3990 = vst.msk [vmem:[%s7113_s18 + $0x230] sm:$0xff] %vm243_vm0, %v3811_v62 }
 0x4db   : > { %v7936_v42 = vpop.f32.mrf.mxu2 }
 0x4dd   : > { %v3518_v46 = vpop.f32.mrf.mxu1  ;;  %v3895_v30 = vpop.f32.mrf.mxu3 }
 0x4de   : > { %v3519_v58 = vadd.f32 %v3518_v46, %v3224_v49  ;;  %v3896_v22 = vadd.f32 %v3895_v30, %v3602_v45  ;;  %v8137_v45 = vld [vmem:[#allocation8_spill] sm:$0xff] }
 0x4df   : > { %v3229_v60 = vpop.f32.mrf.mxu0  ;;  %v8138_v46 = vld [vmem:[#allocation20_spill] sm:$0xff] }
 0x4e0   : > { %v3813_v5 = vadd.f32 %v7804_v34, %v3519_v58  ;;  %4024 = vst.msk [vmem:[%s7113_s18 + $0x340] sm:$0xff] %vm243_vm0, %v3896_v22  ;;  %v3614_v30 = vadd.f32 %v8138_v46, %v8137_v45 }
 0x4e2   : > { %3991 = vst.msk [vmem:[%s7113_s18 + $0x238] sm:$0xff] %vm243_vm0, %v3813_v5 }
 0x4e3   : > { %v7945_v15 = vpop.f32.mrf.mxu2 }
 0x4e5   : > { %v3521_v38 = vpop.f32.mrf.mxu1  ;;  %v3897_v0 = vpop.f32.mrf.mxu3 }
 0x4e6   : > { %v3522_v25 = vadd.f32 %v3521_v38, %v3227_v18  ;;  %v3898_v24 = vadd.f32 %v3897_v0, %v3604_v10  ;;  %v8140_v10 = vld [vmem:[#allocation21_spill] sm:$0xff] }
 0x4e7   : > { %v3232_v26 = vpop.f32.mrf.mxu0 }
 0x4e8   : > { %v3816_v61 = vadd.f32 %v7816_v37, %v3522_v25  ;;  %4025 = vst.msk [vmem:[%s7113_s18 + $0x348] sm:$0xff] %vm243_vm0, %v3898_v24  ;;  %v8129_v37 = vld [vmem:[#allocation2_spill] sm:$0xff] }
 0x4e9   : > { %v3557_v50 = vadd.f32 %v8130_v13, %v8129_v37  ;;  %v8144_v37 = vld [vmem:[#allocation23_spill] sm:$0xff] }
 0x4ea   : > { %3992 = vst.msk [vmem:[%s7113_s18 + $0x240] sm:$0xff] %vm243_vm0, %v3816_v61 }
 0x4eb   : > { %v7954_v34 = vpop.f32.mrf.mxu2 }
 0x4ed   : > { %v3523_v39 = vpop.f32.mrf.mxu1  ;;  %v3900_v59 = vpop.f32.mrf.mxu3 }
 0x4ee   : > { %v3524_v43 = vadd.f32 %v3523_v39, %v3229_v60  ;;  %v3901_v11 = vadd.f32 %v3900_v59, %v3607_v48 }
 0x4ef   : > { %v3234_v12 = vpop.f32.mrf.mxu0 }
 0x4f0   : > { %v3818_v56 = vadd.f32 %v7829_v2, %v3524_v43  ;;  %4026 = vst.msk [vmem:[%s7113_s18 + $0x350] sm:$0xff] %vm243_vm0, %v3901_v11 }
 0x4f2   : > { %3993 = vst.msk [vmem:[%s7113_s18 + $0x248] sm:$0xff] %vm243_vm0, %v3818_v56  ;;  %v8143_v56 = vld [vmem:[#allocation11_spill] sm:$0xff] }
 0x4f3   : > { %v3850_v21 = vpop.f32.mrf.mxu2  ;;  %v3622_v13 = vadd.f32 %v8144_v37, %v8143_v56 }
 0x4f4   : > { %v3851_v23 = vadd.f32 %v3850_v21, %v3557_v50 }
 0x4f5   : > { %v3526_v44 = vpop.f32.mrf.mxu1  ;;  %v3902_v8 = vpop.f32.mrf.mxu3 }
 0x4f6   : > { %4006 = vst.msk [vmem:[%s7113_s18 + $0x2b0] sm:$0xff] %vm243_vm0, %v3851_v23  ;;  %v3527_v9 = vadd.f32 %v3526_v44, %v3232_v26  ;;  %v3903_v2 = vadd.f32 %v3902_v8, %v3609_v47  ;;  %v8146_v23 = vld [vmem:[#allocation24_spill] sm:$0xff] }
 0x4f7   : > { %v3237_v52 = vpop.f32.mrf.mxu0 }
 0x4f8   : > { %v3821_v16 = vadd.f32 %v7841_v53, %v3527_v9  ;;  %4027 = vst.msk [vmem:[%s7113_s18 + $0x358] sm:$0xff] %vm243_vm0, %v3903_v2 }
 0x4fa   : > { %3994 = vst.msk [vmem:[%s7113_s18 + $0x250] sm:$0xff] %vm243_vm0, %v3821_v16 }
 0x4fb   : > { %v3852_v49 = vpop.f32.mrf.mxu2 }
 0x4fc   : > { %v3853_v31 = vadd.f32 %v3852_v49, %v3559_v27 }
 0x4fd   : > { %v3528_v14 = vpop.f32.mrf.mxu1  ;;  %v3905_v28 = vpop.f32.mrf.mxu3 }
 0x4fe   : > { %4007 = vst.msk [vmem:[%s7113_s18 + $0x2b8] sm:$0xff] %vm243_vm0, %v3853_v31  ;;  %v3529_v18 = vadd.f32 %v3528_v14, %v3234_v12  ;;  %v3906_v53 = vadd.f32 %v3905_v28, %v3612_v41 }
 0x4ff   : > { %v3239_v62 = vpop.f32.mrf.mxu0 }
 0x500   : > { %v3823_v33 = vadd.f32 %v7854_v57, %v3529_v18  ;;  %4028 = vst.msk [vmem:[%s7113_s18 + $0x360] sm:$0xff] %vm243_vm0, %v3906_v53  ;;  %v8139_v57 = vld [vmem:[#allocation9_spill] sm:$0xff] }
 0x501   : > { %v3617_v38 = vadd.f32 %v8140_v10, %v8139_v57 }
 0x502   : > { %3995 = vst.msk [vmem:[%s7113_s18 + $0x258] sm:$0xff] %vm243_vm0, %v3823_v33 }
 0x505   : > { %v3531_v58 = vpop.f32.mrf.mxu1  ;;  %v3907_v22 = vpop.f32.mrf.mxu3 }
 0x506   : > { %v3532_v60 = vadd.f32 %v3531_v58, %v3237_v52  ;;  %v3908_v5 = vadd.f32 %v3907_v22, %v3614_v30 }
 0x507   : > { %v3242_v20 = vpop.f32.mrf.mxu0 }
 0x508   : > { %v3826_v54 = vadd.f32 %v7865_v51, %v3532_v60  ;;  %4029 = vst.msk [vmem:[%s7113_s18 + $0x368] sm:$0xff] %vm243_vm0, %v3908_v5  ;;  %v8141_v51 = vld [vmem:[#allocation10_spill] sm:$0xff] }
 0x509   : > { %v3619_v48 = vadd.f32 %v8142_v7, %v8141_v51 }
 0x50a   : > { %3996 = vst.msk [vmem:[%s7113_s18 + $0x260] sm:$0xff] %vm243_vm0, %v3826_v54 }
 0x50d   : > { %v3533_v0 = vpop.f32.mrf.mxu1  ;;  %v3910_v25 = vpop.f32.mrf.mxu3 }
 0x50e   : > { %v3534_v24 = vadd.f32 %v3533_v0, %v3239_v62  ;;  %v3911_v26 = vadd.f32 %v3910_v25, %v3617_v38 }
 0x50f   : > { %v3244_v36 = vpop.f32.mrf.mxu0 }
 0x510   : > { %v3828_v61 = vadd.f32 %v7876_v1, %v3534_v24  ;;  %4030 = vst.msk [vmem:[%s7113_s18 + $0x370] sm:$0xff] %vm243_vm0, %v3911_v26 }
 0x512   : > { %3997 = vst.msk [vmem:[%s7113_s18 + $0x268] sm:$0xff] %vm243_vm0, %v3828_v61 }
 0x515   : > { %v3536_v39 = vpop.f32.mrf.mxu1  ;;  %v3912_v59 = vpop.f32.mrf.mxu3 }
 0x516   : > { %v3537_v43 = vadd.f32 %v3536_v39, %v3242_v20  ;;  %v3913_v11 = vadd.f32 %v3912_v59, %v3619_v48 }
 0x517   : > { %v3247_v1 = vpop.f32.mrf.mxu0 }
 0x518   : > { %v3831_v12 = vadd.f32 %v7887_v32, %v3537_v43  ;;  %4031 = vst.msk [vmem:[%s7113_s18 + $0x378] sm:$0xff] %vm243_vm0, %v3913_v11  ;;  %v8145_v32 = vld [vmem:[#allocation12_spill] sm:$0xff] }
 0x519   : > { %v3624_v44 = vadd.f32 %v8146_v23, %v8145_v32 }
 0x51a   : > { %3998 = vst.msk [vmem:[%s7113_s18 + $0x270] sm:$0xff] %vm243_vm0, %v3831_v12 }
 0x51d   : > { %v3538_v50 = vpop.f32.mrf.mxu1  ;;  %v3915_v21 = vpop.f32.mrf.mxu3 }
 0x51e   : > { %v3539_v55 = vadd.f32 %v3538_v50, %v3244_v36  ;;  %v3916_v3 = vadd.f32 %v3915_v21, %v3622_v13 }
 0x51f   : > { %v3249_v8 = vpop.f32.mrf.mxu0 }
 0x520   : > { %v3833_v47 = vadd.f32 %v7898_v6, %v3539_v55  ;;  %4032 = vst.msk [vmem:[%s7113_s18 + $0x380] sm:$0xff] %vm243_vm0, %v3916_v3 }
 0x522   : > { %3999 = vst.msk [vmem:[%s7113_s18 + $0x278] sm:$0xff] %vm243_vm0, %v3833_v47 }
 0x525   : > { %v3541_v9 = vpop.f32.mrf.mxu1  ;;  %v3917_v2 = vpop.f32.mrf.mxu3 }
 0x526   : > { %v3542_v52 = vadd.f32 %v3541_v9, %v3247_v1  ;;  %v3918_v16 = vadd.f32 %v3917_v2, %v3624_v44 }
 0x527   : > { %v3252_v27 = vpop.f32.mrf.mxu0 }
 0x528   : > { %v3836_v4 = vadd.f32 %v7909_v63, %v3542_v52  ;;  %4033 = vst.msk [vmem:[%s7113_s18 + $0x388] sm:$0xff] %vm243_vm0, %v3918_v16 }
 0x52a   : > { %4000 = vst.msk [vmem:[%s7113_s18 + $0x280] sm:$0xff] %vm243_vm0, %v3836_v4 }
 0x52d   : > { %v3543_v6 = vpop.f32.mrf.mxu1 }
 0x52e   : > { %v3544_v40 = vadd.f32 %v3543_v6, %v3249_v8 }
 0x52f   : > { %v3254_v31 = vpop.f32.mrf.mxu0 }
 0x530   : > { %v3838_v49 = vadd.f32 %v7918_v17, %v3544_v40 }
 0x532   : > { %4001 = vst.msk [vmem:[%s7113_s18 + $0x288] sm:$0xff] %vm243_vm0, %v3838_v49 }
 0x535   : > { %v3546_v29 = vpop.f32.mrf.mxu1 }
 0x536   : > { %v3547_v35 = vadd.f32 %v3546_v29, %v3252_v27 }
 0x537   : > { %v3257_v18 = vpop.f32.mrf.mxu0 }
 0x538   : > { %v3841_v41 = vadd.f32 %v7927_v19, %v3547_v35 }
 0x53a   : > { %4002 = vst.msk [vmem:[%s7113_s18 + $0x290] sm:$0xff] %vm243_vm0, %v3841_v41 }
 0x53d   : > { %v3548_v63 = vpop.f32.mrf.mxu1 }
 0x53e   : > { %v3549_v14 = vadd.f32 %v3548_v63, %v3254_v31 }
 0x53f   : > { %v3259_v33 = vpop.f32.mrf.mxu0 }
 0x540   : > { %v3843_v28 = vadd.f32 %v7936_v42, %v3549_v14 }
 0x542   : > { %4003 = vst.msk [vmem:[%s7113_s18 + $0x298] sm:$0xff] %vm243_vm0, %v3843_v28 }
 0x545   : > { %v3551_v53 = vpop.f32.mrf.mxu1 }
 0x546   : > { %v3552_v62 = vadd.f32 %v3551_v53, %v3257_v18 }
 0x548   : > { %v3846_v17 = vadd.f32 %v7945_v15, %v3552_v62 }
 0x54a   : > { %4004 = vst.msk [vmem:[%s7113_s18 + $0x2a0] sm:$0xff] %vm243_vm0, %v3846_v17 }
 0x54d   : > { %v3553_v45 = vpop.f32.mrf.mxu1 }
 0x54e   : > { %v3554_v19 = vadd.f32 %v3553_v45, %v3259_v33 }
 0x550   : > { %v3848_v46 = vadd.f32 %v7954_v34, %v3554_v19 }
 0x552   : > { %4005 = vst.msk [vmem:[%s7113_s18 + $0x2a8] sm:$0xff] %vm243_vm0, %v3848_v46 }
 0x553 PF: > { %s14_s15 = sadd.s32 1, %s5163_s15  }
 0x554   : > { %p11_p4 = scmp.ge.s32.totalorder %s14_s15, 4  }
 0x556   :  { %13 = sbr.rel (!%p11_p4) target bundleno = 1 (0x1), region = 66 }

</bundles_post_ra>
